<compile_context>
chip_gen: v7x
topology: tpu7x:2x2x1
jax: 0.10.0
libtpu: 0.0.40
codegen_flags: <defaults>
</compile_context>

<pallas_src>
from functools import partial

import numpy as np
import jax
import jax.numpy as jnp
from jax.experimental import pallas as pl


# ---------------------------------------------------------------------------
# Fused kernel: RNN scan -> one-hot gather -> neighbourhood attention -> head.
# ---------------------------------------------------------------------------
def predictor_kernel(x_ref, oh_ref, wih_ref, whh_ref, brnn_ref,
                     wc_ref, wh_ref, blin_ref,
                     pred_ref, attn_ref, *, S, B, H, K):
    # ---- 1) ReLU-RNN scan; input projection hoisted out of the serial loop. ----
    xw = (jnp.dot(x_ref[...], wih_ref[...], preferred_element_type=jnp.float32)
          + brnn_ref[...])                                        # (S*B, H)
    whh = whh_ref[...]                                            # (H, H)
    h = jnp.zeros((B, H), jnp.float32)
    hs = []
    for t in range(S):                                            # serial part: 1 matmul/step
        h = jnp.maximum(
            xw[t * B:(t + 1) * B, :]
            + jnp.dot(h, whh, preferred_element_type=jnp.float32),
            0.0)
        hs.append(h)
    hid_bf = jnp.stack(hs, axis=1)                                # (B, S, H) batch-first

    # ---- 2) neighbourhood attention (LAG='ALL'), all query steps i at once. ----
    oh = oh_ref[...]                                              # (B*K, B) one-hot gather
    i_iota = jax.lax.broadcasted_iota(jnp.int32, (B, S, K), 1)
    ctx = jnp.zeros((B, S, H), jnp.float32)
    for j in range(S):
        # gather the 9-neighbourhood of timestep j via a one-hot matmul
        # (index == B -> all-zero "outside target" row).
        g = jnp.dot(oh, hs[j], preferred_element_type=jnp.float32)        # (B*K, H)
        g = g.reshape(B, K, H)                                            # (B, K, H)
        # scores[b, i, k] = <h_i[b], gathered[j, b, k]>  -- MXU batched matmul
        scores = jnp.einsum('bih,bkh->bik', hid_bf, g,
                            preferred_element_type=jnp.float32)           # (B, S, K)
        m = jnp.max(scores, axis=-1, keepdims=True)
        e = jnp.exp(scores - m)
        attn = e / jnp.sum(e, axis=-1, keepdims=True)
        # NOTE: masking j >= i AFTER the softmax is correct because the softmax
        # normalises over k only (per (j, b)). Do not move this mask into the
        # softmax denominator.
        attn = jnp.where(i_iota > j, attn, 0.0)
        attn_ref[j] = attn                                                # (B, S, K)
        ctx = ctx + jnp.einsum('bik,bkh->bih', attn, g,
                               preferred_element_type=jnp.float32)        # (B, S, H)

    # torch special-cases the first step: c_0 = h_0 (the j<i mask left it zero).
    first_i = jax.lax.broadcasted_iota(jnp.int32, (B, S, H), 1) == 0
    c = jnp.where(first_i, hid_bf, ctx)                                   # (B, S, H)

    # ---- 3) Linear(2H -> O) + ReLU without materialising the concat. ----
    c2 = c.reshape(B * S, H)
    h2 = hid_bf.reshape(B * S, H)
    out = (jnp.dot(c2, wc_ref[...], preferred_element_type=jnp.float32)
           + jnp.dot(h2, wh_ref[...], preferred_element_type=jnp.float32)
           + blin_ref[...])
    pred_ref[...] = jnp.maximum(out, 0.0)                                 # (B*S, O)


# ---------------------------------------------------------------------------
# Host wrapper: tiny parameter prep + one fused pallas_call + output relayout.
# ---------------------------------------------------------------------------
@jax.jit
def predictor_forward(x, nine_target_index, params):
    S, B, I = x.shape
    H = params["w_hh"].shape[0]
    O = params["w_lin"].shape[0]
    K = nine_target_index.shape[1]

    b_rnn = (params["b_ih"] + params["b_hh"]).reshape(1, H)
    w_c = params["w_lin"][:, :H].T          # (H, O), applied to the context c
    w_h = params["w_lin"][:, H:].T          # (H, O), applied to hidden_output
    b_lin = params["b_lin"].reshape(1, O)
    # one-hot gather matrix: row b*K+k selects hidden row nine_target_index[b, k];
    # index == B (outside target) yields an all-zero row.
    oh = (nine_target_index.reshape(B * K, 1)
          == jnp.arange(B, dtype=nine_target_index.dtype)[None, :]).astype(jnp.float32)

    pred_flat, attn_raw = pl.pallas_call(
        partial(predictor_kernel, S=S, B=B, H=H, K=K),
        out_shape=(jax.ShapeDtypeStruct((B * S, O), jnp.float32),
                   jax.ShapeDtypeStruct((S, B, S, K), jnp.float32)),
    )(x.reshape(S * B, I), oh, params["w_ih"].T, params["w_hh"].T, b_rnn,
      w_c, w_h, b_lin)

    prediction = jnp.transpose(pred_flat.reshape(B, S, O), (1, 0, 2))   # (S, B, O)
    # attn_raw[j, b, i, k] -> attn_params[i, j, b, k]
    attn_params = jnp.transpose(attn_raw, (2, 0, 1, 3))                 # (S, S, B, K)
    return prediction, attn_params


# ---------------------------------------------------------------------------
# Pure-JAX reference (mirrors the torch LAG='ALL', haven_flag=0 path).
# ---------------------------------------------------------------------------
def predictor_reference(x, nine_target_index, params):
    S, B, _ = x.shape
    H = params["w_hh"].shape[0]
    K = nine_target_index.shape[1]
    h = jnp.zeros((B, H), jnp.float32)
    hs = []
    for t in range(S):
        h = jax.nn.relu(x[t] @ params["w_ih"].T + params["b_ih"]
                        + h @ params["w_hh"].T + params["b_hh"])
        hs.append(h)
    hidden_output = jnp.stack(hs)                                        # (S, B, H)
    padded = jnp.concatenate([hidden_output, jnp.zeros((S, 1, H))], axis=1)
    c = [hidden_output[0]]
    attn_dense = jnp.zeros((S, S, B, K), jnp.float32)
    for i in range(1, S):
        ht = hidden_output[i]                                            # (B, H)
        past = padded[:i][:, nine_target_index, :]                       # (i, B, K, H)
        scores = jnp.einsum("jbkh,bh->jbk", past, ht,
                            precision=jax.lax.Precision.HIGHEST)
        attn = jax.nn.softmax(scores, axis=-1)                           # (i, B, K)
        attn_dense = attn_dense.at[i, :i].set(attn)
        c.append(jnp.sum(attn[..., None] * past, axis=(0, 2)))
    c = jnp.stack(c)                                                     # (S, B, H)
    cat = jnp.concatenate([c, hidden_output], axis=-1)
    pred = jax.nn.relu(cat @ params["w_lin"].T + params["b_lin"])
    return pred, attn_dense


if __name__ == "__main__":
    # small shapes consistent with the module
    S, B, I, H, O = 6, 8, 8, 32, 8      # seq, minibatch, num_input, num_hidden, num_output

    key = jax.random.PRNGKey(0)
    ks = jax.random.split(key, 8)
    params = {
        "w_ih":  0.2 * jax.random.normal(ks[0], (H, I), jnp.float32),
        "w_hh":  0.2 * jax.random.normal(ks[1], (H, H), jnp.float32),
        "b_ih":  0.1 * jax.random.normal(ks[2], (H,), jnp.float32),
        "b_hh":  0.1 * jax.random.normal(ks[3], (H,), jnp.float32),
        "w_lin": 0.2 * jax.random.normal(ks[4], (O, 2 * H), jnp.float32),
        "b_lin": 0.1 * jax.random.normal(ks[5], (O,), jnp.float32),
    }
    x = jax.random.normal(ks[6], (S, B, I), jnp.float32)
    nine_target_index = jax.random.randint(ks[7], (B, 9), 0, B + 1, jnp.int32)

    pred, attn_params = predictor_forward(x, nine_target_index, params)
    pred = jax.block_until_ready(pred)
    attn_params = jax.block_until_ready(attn_params)

    ref_pred, ref_attn = predictor_reference(x, nine_target_index, params)
    np.testing.assert_allclose(np.asarray(pred), np.asarray(ref_pred),
                               rtol=1e-2, atol=2e-3)
    np.testing.assert_allclose(np.asarray(attn_params), np.asarray(ref_attn),
                               rtol=1e-2, atol=2e-3)

    print("KERNEL_OK")
</pallas_src>

<mosaic_0001>
module attributes {stable_mosaic.version = 11 : i64} {
  func.func @predictor_kernel(%arg0: memref<48x8xf32, #tpu.memory_space<vmem>>, %arg1: memref<72x8xf32, #tpu.memory_space<vmem>>, %arg2: memref<8x32xf32, #tpu.memory_space<vmem>>, %arg3: memref<32x32xf32, #tpu.memory_space<vmem>>, %arg4: memref<1x32xf32, #tpu.memory_space<vmem>>, %arg5: memref<32x8xf32, #tpu.memory_space<vmem>>, %arg6: memref<32x8xf32, #tpu.memory_space<vmem>>, %arg7: memref<1x8xf32, #tpu.memory_space<vmem>>, %arg8: memref<48x8xf32, #tpu.memory_space<vmem>>, %arg9: memref<6x8x6x9xf32, #tpu.memory_space<vmem>>) attributes {dimension_semantics = [], scalar_prefetch = 0 : i64, scratch_operands = 0 : i64, tpu.core_type = #tpu.core_type<tc>} {
    %c0 = arith.constant 0 : index
    %c0_0 = arith.constant 0 : index
    %0 = vector.load %arg0[%c0, %c0_0] : memref<48x8xf32, #tpu.memory_space<vmem>>, vector<48x8xf32>
    %c0_1 = arith.constant 0 : index
    %c0_2 = arith.constant 0 : index
    %1 = vector.load %arg2[%c0_1, %c0_2] : memref<8x32xf32, #tpu.memory_space<vmem>>, vector<8x32xf32>
    %cst = arith.constant dense<0.000000e+00> : vector<48x32xf32>
    %2 = tpu.matmul %0, %1, %cst {dimension_numbers = #tpu.dot_dimension_numbers<[1], [0], [0], [1], [0, 0, 1, 1], [], []>} : vector<48x8xf32>, vector<8x32xf32>, vector<48x32xf32> -> vector<48x32xf32>
    %c0_3 = arith.constant 0 : index
    %c0_4 = arith.constant 0 : index
    %3 = vector.load %arg4[%c0_3, %c0_4] : memref<1x32xf32, #tpu.memory_space<vmem>>, vector<1x32xf32>
    %4 = vector.broadcast %3 : vector<1x32xf32> to vector<48x32xf32>
    %5 = arith.addf %2, %4 : vector<48x32xf32>
    %c0_5 = arith.constant 0 : index
    %c0_6 = arith.constant 0 : index
    %6 = vector.load %arg3[%c0_5, %c0_6] : memref<32x32xf32, #tpu.memory_space<vmem>>, vector<32x32xf32>
    %cst_7 = arith.constant 0.000000e+00 : f32
    %7 = vector.broadcast %cst_7 : f32 to vector<8x32xf32>
    %8 = vector.extract_strided_slice %5 {offsets = [0, 0], sizes = [8, 32], strides = [1, 1]} : vector<48x32xf32> to vector<8x32xf32>
    %cst_8 = arith.constant dense<0.000000e+00> : vector<8x32xf32>
    %9 = tpu.matmul %7, %6, %cst_8 {dimension_numbers = #tpu.dot_dimension_numbers<[1], [0], [0], [1], [0, 0, 1, 1], [], []>} : vector<8x32xf32>, vector<32x32xf32>, vector<8x32xf32> -> vector<8x32xf32>
    %10 = arith.addf %8, %9 : vector<8x32xf32>
    %cst_9 = arith.constant 0.000000e+00 : f32
    %11 = vector.broadcast %cst_9 : f32 to vector<8x32xf32>
    %12 = arith.maximumf %10, %11 : vector<8x32xf32>
    %13 = vector.extract_strided_slice %5 {offsets = [8, 0], sizes = [8, 32], strides = [1, 1]} : vector<48x32xf32> to vector<8x32xf32>
    %cst_10 = arith.constant dense<0.000000e+00> : vector<8x32xf32>
    %14 = tpu.matmul %12, %6, %cst_10 {dimension_numbers = #tpu.dot_dimension_numbers<[1], [0], [0], [1], [0, 0, 1, 1], [], []>} : vector<8x32xf32>, vector<32x32xf32>, vector<8x32xf32> -> vector<8x32xf32>
    %15 = arith.addf %13, %14 : vector<8x32xf32>
    %cst_11 = arith.constant 0.000000e+00 : f32
    %16 = vector.broadcast %cst_11 : f32 to vector<8x32xf32>
    %17 = arith.maximumf %15, %16 : vector<8x32xf32>
    %18 = vector.extract_strided_slice %5 {offsets = [16, 0], sizes = [8, 32], strides = [1, 1]} : vector<48x32xf32> to vector<8x32xf32>
    %cst_12 = arith.constant dense<0.000000e+00> : vector<8x32xf32>
    %19 = tpu.matmul %17, %6, %cst_12 {dimension_numbers = #tpu.dot_dimension_numbers<[1], [0], [0], [1], [0, 0, 1, 1], [], []>} : vector<8x32xf32>, vector<32x32xf32>, vector<8x32xf32> -> vector<8x32xf32>
    %20 = arith.addf %18, %19 : vector<8x32xf32>
    %cst_13 = arith.constant 0.000000e+00 : f32
    %21 = vector.broadcast %cst_13 : f32 to vector<8x32xf32>
    %22 = arith.maximumf %20, %21 : vector<8x32xf32>
    %23 = vector.extract_strided_slice %5 {offsets = [24, 0], sizes = [8, 32], strides = [1, 1]} : vector<48x32xf32> to vector<8x32xf32>
    %cst_14 = arith.constant dense<0.000000e+00> : vector<8x32xf32>
    %24 = tpu.matmul %22, %6, %cst_14 {dimension_numbers = #tpu.dot_dimension_numbers<[1], [0], [0], [1], [0, 0, 1, 1], [], []>} : vector<8x32xf32>, vector<32x32xf32>, vector<8x32xf32> -> vector<8x32xf32>
    %25 = arith.addf %23, %24 : vector<8x32xf32>
    %cst_15 = arith.constant 0.000000e+00 : f32
    %26 = vector.broadcast %cst_15 : f32 to vector<8x32xf32>
    %27 = arith.maximumf %25, %26 : vector<8x32xf32>
    %28 = vector.extract_strided_slice %5 {offsets = [32, 0], sizes = [8, 32], strides = [1, 1]} : vector<48x32xf32> to vector<8x32xf32>
    %cst_16 = arith.constant dense<0.000000e+00> : vector<8x32xf32>
    %29 = tpu.matmul %27, %6, %cst_16 {dimension_numbers = #tpu.dot_dimension_numbers<[1], [0], [0], [1], [0, 0, 1, 1], [], []>} : vector<8x32xf32>, vector<32x32xf32>, vector<8x32xf32> -> vector<8x32xf32>
    %30 = arith.addf %28, %29 : vector<8x32xf32>
    %cst_17 = arith.constant 0.000000e+00 : f32
    %31 = vector.broadcast %cst_17 : f32 to vector<8x32xf32>
    %32 = arith.maximumf %30, %31 : vector<8x32xf32>
    %33 = vector.extract_strided_slice %5 {offsets = [40, 0], sizes = [8, 32], strides = [1, 1]} : vector<48x32xf32> to vector<8x32xf32>
    %cst_18 = arith.constant dense<0.000000e+00> : vector<8x32xf32>
    %34 = tpu.matmul %32, %6, %cst_18 {dimension_numbers = #tpu.dot_dimension_numbers<[1], [0], [0], [1], [0, 0, 1, 1], [], []>} : vector<8x32xf32>, vector<32x32xf32>, vector<8x32xf32> -> vector<8x32xf32>
    %35 = arith.addf %33, %34 : vector<8x32xf32>
    %cst_19 = arith.constant 0.000000e+00 : f32
    %36 = vector.broadcast %cst_19 : f32 to vector<8x32xf32>
    %37 = arith.maximumf %35, %36 : vector<8x32xf32>
    %38 = vector.shape_cast %12 : vector<8x32xf32> to vector<8x1x32xf32>
    %39 = vector.shape_cast %17 : vector<8x32xf32> to vector<8x1x32xf32>
    %40 = vector.shape_cast %22 : vector<8x32xf32> to vector<8x1x32xf32>
    %41 = vector.shape_cast %27 : vector<8x32xf32> to vector<8x1x32xf32>
    %42 = vector.shape_cast %32 : vector<8x32xf32> to vector<8x1x32xf32>
    %43 = vector.shape_cast %37 : vector<8x32xf32> to vector<8x1x32xf32>
    %44 = tpu.concatenate %38, %39, %40, %41, %42, %43 in 1 : vector<8x1x32xf32>, vector<8x1x32xf32>, vector<8x1x32xf32>, vector<8x1x32xf32>, vector<8x1x32xf32>, vector<8x1x32xf32> -> vector<8x6x32xf32>
    %c0_20 = arith.constant 0 : index
    %c0_21 = arith.constant 0 : index
    %45 = vector.load %arg1[%c0_20, %c0_21] : memref<72x8xf32, #tpu.memory_space<vmem>>, vector<72x8xf32>
    %46 = tpu.iota {dimensions = array<i32: 1>} : vector<8x6x9xi32>
    %cst_22 = arith.constant 0.000000e+00 : f32
    %47 = vector.broadcast %cst_22 : f32 to vector<8x6x32xf32>
    %cst_23 = arith.constant dense<0.000000e+00> : vector<72x32xf32>
    %48 = tpu.matmul %45, %12, %cst_23 {dimension_numbers = #tpu.dot_dimension_numbers<[1], [0], [0], [1], [0, 0, 1, 1], [], []>} : vector<72x8xf32>, vector<8x32xf32>, vector<72x32xf32> -> vector<72x32xf32>
    %49 = vector.shape_cast %48 : vector<72x32xf32> to vector<8x9x32xf32>
    "tpu.trace_start"() <{level = 10 : i32, message = "bih,bkh->bik"}> : () -> ()
    %cst_24 = arith.constant dense<0.000000e+00> : vector<8x6x9xf32>
    %50 = tpu.matmul %44, %49, %cst_24 {dimension_numbers = #tpu.dot_dimension_numbers<[2], [2], [1], [1], [0, 0, 0, 1, 1, 1], [0], [0]>} : vector<8x6x32xf32>, vector<8x9x32xf32>, vector<8x6x9xf32> -> vector<8x6x9xf32>
    "tpu.trace_stop"() : () -> ()
    %cst_25 = arith.constant dense<0xFF800000> : vector<8x6xf32>
    %51 = vector.multi_reduction <maximumf>, %50, %cst_25 [2] : vector<8x6x9xf32> to vector<8x6xf32>
    %52 = vector.shape_cast %51 : vector<8x6xf32> to vector<8x6x1xf32>
    %53 = vector.broadcast %52 : vector<8x6x1xf32> to vector<8x6x9xf32>
    %54 = arith.subf %50, %53 : vector<8x6x9xf32>
    %55 = math.exp %54 : vector<8x6x9xf32>
    %cst_26 = arith.constant dense<0.000000e+00> : vector<8x6xf32>
    %56 = vector.multi_reduction <add>, %55, %cst_26 [2] : vector<8x6x9xf32> to vector<8x6xf32>
    %57 = vector.shape_cast %56 : vector<8x6xf32> to vector<8x6x1xf32>
    %58 = vector.broadcast %57 : vector<8x6x1xf32> to vector<8x6x9xf32>
    %59 = arith.divf %55, %58 : vector<8x6x9xf32>
    %c0_i32 = arith.constant 0 : i32
    %60 = vector.broadcast %c0_i32 : i32 to vector<8x6x9xi32>
    %61 = arith.cmpi sgt, %46, %60 : vector<8x6x9xi32>
    %cst_27 = arith.constant 0.000000e+00 : f32
    %62 = vector.broadcast %cst_27 : f32 to vector<8x6x9xf32>
    %63 = arith.select %61, %59, %62 : vector<8x6x9xi1>, vector<8x6x9xf32>
    %c0_28 = arith.constant 0 : index
    %c0_29 = arith.constant 0 : index
    %c0_30 = arith.constant 0 : index
    %c0_31 = arith.constant 0 : index
    %64 = vector.load %arg9[%c0_28, %c0_29, %c0_30, %c0_31] : memref<6x8x6x9xf32, #tpu.memory_space<vmem>>, vector<1x8x6x9xf32>
    %65 = vector.shape_cast %64 : vector<1x8x6x9xf32> to vector<8x6x9xf32>
    %66 = vector.shape_cast %63 : vector<8x6x9xf32> to vector<1x8x6x9xf32>
    tpu.vector_store %arg9[%c0_28, %c0_29, %c0_30, %c0_31], %66 {strides = array<i32>} : memref<6x8x6x9xf32, #tpu.memory_space<vmem>>, vector<1x8x6x9xf32>,
    "tpu.trace_start"() <{level = 10 : i32, message = "bik,bkh->bih"}> : () -> ()
    %cst_32 = arith.constant dense<0.000000e+00> : vector<8x6x32xf32>
    %67 = tpu.matmul %63, %49, %cst_32 {dimension_numbers = #tpu.dot_dimension_numbers<[2], [1], [1], [2], [0, 0, 0, 1, 1, 2], [0], [0]>} : vector<8x6x9xf32>, vector<8x9x32xf32>, vector<8x6x32xf32> -> vector<8x6x32xf32>
    "tpu.trace_stop"() : () -> ()
    %68 = arith.addf %47, %67 : vector<8x6x32xf32>
    %cst_33 = arith.constant dense<0.000000e+00> : vector<72x32xf32>
    %69 = tpu.matmul %45, %17, %cst_33 {dimension_numbers = #tpu.dot_dimension_numbers<[1], [0], [0], [1], [0, 0, 1, 1], [], []>} : vector<72x8xf32>, vector<8x32xf32>, vector<72x32xf32> -> vector<72x32xf32>
    %70 = vector.shape_cast %69 : vector<72x32xf32> to vector<8x9x32xf32>
    "tpu.trace_start"() <{level = 10 : i32, message = "bih,bkh->bik"}> : () -> ()
    %cst_34 = arith.constant dense<0.000000e+00> : vector<8x6x9xf32>
    %71 = tpu.matmul %44, %70, %cst_34 {dimension_numbers = #tpu.dot_dimension_numbers<[2], [2], [1], [1], [0, 0, 0, 1, 1, 1], [0], [0]>} : vector<8x6x32xf32>, vector<8x9x32xf32>, vector<8x6x9xf32> -> vector<8x6x9xf32>
    "tpu.trace_stop"() : () -> ()
    %cst_35 = arith.constant dense<0xFF800000> : vector<8x6xf32>
    %72 = vector.multi_reduction <maximumf>, %71, %cst_35 [2] : vector<8x6x9xf32> to vector<8x6xf32>
    %73 = vector.shape_cast %72 : vector<8x6xf32> to vector<8x6x1xf32>
    %74 = vector.broadcast %73 : vector<8x6x1xf32> to vector<8x6x9xf32>
    %75 = arith.subf %71, %74 : vector<8x6x9xf32>
    %76 = math.exp %75 : vector<8x6x9xf32>
    %cst_36 = arith.constant dense<0.000000e+00> : vector<8x6xf32>
    %77 = vector.multi_reduction <add>, %76, %cst_36 [2] : vector<8x6x9xf32> to vector<8x6xf32>
    %78 = vector.shape_cast %77 : vector<8x6xf32> to vector<8x6x1xf32>
    %79 = vector.broadcast %78 : vector<8x6x1xf32> to vector<8x6x9xf32>
    %80 = arith.divf %76, %79 : vector<8x6x9xf32>
    %c1_i32 = arith.constant 1 : i32
    %81 = vector.broadcast %c1_i32 : i32 to vector<8x6x9xi32>
    %82 = arith.cmpi sgt, %46, %81 : vector<8x6x9xi32>
    %cst_37 = arith.constant 0.000000e+00 : f32
    %83 = vector.broadcast %cst_37 : f32 to vector<8x6x9xf32>
    %84 = arith.select %82, %80, %83 : vector<8x6x9xi1>, vector<8x6x9xf32>
    %c1 = arith.constant 1 : index
    %c0_38 = arith.constant 0 : index
    %c0_39 = arith.constant 0 : index
    %c0_40 = arith.constant 0 : index
    %85 = vector.load %arg9[%c1, %c0_38, %c0_39, %c0_40] : memref<6x8x6x9xf32, #tpu.memory_space<vmem>>, vector<1x8x6x9xf32>
    %86 = vector.shape_cast %85 : vector<1x8x6x9xf32> to vector<8x6x9xf32>
    %87 = vector.shape_cast %84 : vector<8x6x9xf32> to vector<1x8x6x9xf32>
    tpu.vector_store %arg9[%c1, %c0_38, %c0_39, %c0_40], %87 {strides = array<i32>} : memref<6x8x6x9xf32, #tpu.memory_space<vmem>>, vector<1x8x6x9xf32>,
    "tpu.trace_start"() <{level = 10 : i32, message = "bik,bkh->bih"}> : () -> ()
    %cst_41 = arith.constant dense<0.000000e+00> : vector<8x6x32xf32>
    %88 = tpu.matmul %84, %70, %cst_41 {dimension_numbers = #tpu.dot_dimension_numbers<[2], [1], [1], [2], [0, 0, 0, 1, 1, 2], [0], [0]>} : vector<8x6x9xf32>, vector<8x9x32xf32>, vector<8x6x32xf32> -> vector<8x6x32xf32>
    "tpu.trace_stop"() : () -> ()
    %89 = arith.addf %68, %88 : vector<8x6x32xf32>
    %cst_42 = arith.constant dense<0.000000e+00> : vector<72x32xf32>
    %90 = tpu.matmul %45, %22, %cst_42 {dimension_numbers = #tpu.dot_dimension_numbers<[1], [0], [0], [1], [0, 0, 1, 1], [], []>} : vector<72x8xf32>, vector<8x32xf32>, vector<72x32xf32> -> vector<72x32xf32>
    %91 = vector.shape_cast %90 : vector<72x32xf32> to vector<8x9x32xf32>
    "tpu.trace_start"() <{level = 10 : i32, message = "bih,bkh->bik"}> : () -> ()
    %cst_43 = arith.constant dense<0.000000e+00> : vector<8x6x9xf32>
    %92 = tpu.matmul %44, %91, %cst_43 {dimension_numbers = #tpu.dot_dimension_numbers<[2], [2], [1], [1], [0, 0, 0, 1, 1, 1], [0], [0]>} : vector<8x6x32xf32>, vector<8x9x32xf32>, vector<8x6x9xf32> -> vector<8x6x9xf32>
    "tpu.trace_stop"() : () -> ()
    %cst_44 = arith.constant dense<0xFF800000> : vector<8x6xf32>
    %93 = vector.multi_reduction <maximumf>, %92, %cst_44 [2] : vector<8x6x9xf32> to vector<8x6xf32>
    %94 = vector.shape_cast %93 : vector<8x6xf32> to vector<8x6x1xf32>
    %95 = vector.broadcast %94 : vector<8x6x1xf32> to vector<8x6x9xf32>
    %96 = arith.subf %92, %95 : vector<8x6x9xf32>
    %97 = math.exp %96 : vector<8x6x9xf32>
    %cst_45 = arith.constant dense<0.000000e+00> : vector<8x6xf32>
    %98 = vector.multi_reduction <add>, %97, %cst_45 [2] : vector<8x6x9xf32> to vector<8x6xf32>
    %99 = vector.shape_cast %98 : vector<8x6xf32> to vector<8x6x1xf32>
    %100 = vector.broadcast %99 : vector<8x6x1xf32> to vector<8x6x9xf32>
    %101 = arith.divf %97, %100 : vector<8x6x9xf32>
    %c2_i32 = arith.constant 2 : i32
    %102 = vector.broadcast %c2_i32 : i32 to vector<8x6x9xi32>
    %103 = arith.cmpi sgt, %46, %102 : vector<8x6x9xi32>
    %cst_46 = arith.constant 0.000000e+00 : f32
    %104 = vector.broadcast %cst_46 : f32 to vector<8x6x9xf32>
    %105 = arith.select %103, %101, %104 : vector<8x6x9xi1>, vector<8x6x9xf32>
    %c2 = arith.constant 2 : index
    %c0_47 = arith.constant 0 : index
    %c0_48 = arith.constant 0 : index
    %c0_49 = arith.constant 0 : index
    %106 = vector.load %arg9[%c2, %c0_47, %c0_48, %c0_49] : memref<6x8x6x9xf32, #tpu.memory_space<vmem>>, vector<1x8x6x9xf32>
    %107 = vector.shape_cast %106 : vector<1x8x6x9xf32> to vector<8x6x9xf32>
    %108 = vector.shape_cast %105 : vector<8x6x9xf32> to vector<1x8x6x9xf32>
    tpu.vector_store %arg9[%c2, %c0_47, %c0_48, %c0_49], %108 {strides = array<i32>} : memref<6x8x6x9xf32, #tpu.memory_space<vmem>>, vector<1x8x6x9xf32>,
    "tpu.trace_start"() <{level = 10 : i32, message = "bik,bkh->bih"}> : () -> ()
    %cst_50 = arith.constant dense<0.000000e+00> : vector<8x6x32xf32>
    %109 = tpu.matmul %105, %91, %cst_50 {dimension_numbers = #tpu.dot_dimension_numbers<[2], [1], [1], [2], [0, 0, 0, 1, 1, 2], [0], [0]>} : vector<8x6x9xf32>, vector<8x9x32xf32>, vector<8x6x32xf32> -> vector<8x6x32xf32>
    "tpu.trace_stop"() : () -> ()
    %110 = arith.addf %89, %109 : vector<8x6x32xf32>
    %cst_51 = arith.constant dense<0.000000e+00> : vector<72x32xf32>
    %111 = tpu.matmul %45, %27, %cst_51 {dimension_numbers = #tpu.dot_dimension_numbers<[1], [0], [0], [1], [0, 0, 1, 1], [], []>} : vector<72x8xf32>, vector<8x32xf32>, vector<72x32xf32> -> vector<72x32xf32>
    %112 = vector.shape_cast %111 : vector<72x32xf32> to vector<8x9x32xf32>
    "tpu.trace_start"() <{level = 10 : i32, message = "bih,bkh->bik"}> : () -> ()
    %cst_52 = arith.constant dense<0.000000e+00> : vector<8x6x9xf32>
    %113 = tpu.matmul %44, %112, %cst_52 {dimension_numbers = #tpu.dot_dimension_numbers<[2], [2], [1], [1], [0, 0, 0, 1, 1, 1], [0], [0]>} : vector<8x6x32xf32>, vector<8x9x32xf32>, vector<8x6x9xf32> -> vector<8x6x9xf32>
    "tpu.trace_stop"() : () -> ()
    %cst_53 = arith.constant dense<0xFF800000> : vector<8x6xf32>
    %114 = vector.multi_reduction <maximumf>, %113, %cst_53 [2] : vector<8x6x9xf32> to vector<8x6xf32>
    %115 = vector.shape_cast %114 : vector<8x6xf32> to vector<8x6x1xf32>
    %116 = vector.broadcast %115 : vector<8x6x1xf32> to vector<8x6x9xf32>
    %117 = arith.subf %113, %116 : vector<8x6x9xf32>
    %118 = math.exp %117 : vector<8x6x9xf32>
    %cst_54 = arith.constant dense<0.000000e+00> : vector<8x6xf32>
    %119 = vector.multi_reduction <add>, %118, %cst_54 [2] : vector<8x6x9xf32> to vector<8x6xf32>
    %120 = vector.shape_cast %119 : vector<8x6xf32> to vector<8x6x1xf32>
    %121 = vector.broadcast %120 : vector<8x6x1xf32> to vector<8x6x9xf32>
    %122 = arith.divf %118, %121 : vector<8x6x9xf32>
    %c3_i32 = arith.constant 3 : i32
    %123 = vector.broadcast %c3_i32 : i32 to vector<8x6x9xi32>
    %124 = arith.cmpi sgt, %46, %123 : vector<8x6x9xi32>
    %cst_55 = arith.constant 0.000000e+00 : f32
    %125 = vector.broadcast %cst_55 : f32 to vector<8x6x9xf32>
    %126 = arith.select %124, %122, %125 : vector<8x6x9xi1>, vector<8x6x9xf32>
    %c3 = arith.constant 3 : index
    %c0_56 = arith.constant 0 : index
    %c0_57 = arith.constant 0 : index
    %c0_58 = arith.constant 0 : index
    %127 = vector.load %arg9[%c3, %c0_56, %c0_57, %c0_58] : memref<6x8x6x9xf32, #tpu.memory_space<vmem>>, vector<1x8x6x9xf32>
    %128 = vector.shape_cast %127 : vector<1x8x6x9xf32> to vector<8x6x9xf32>
    %129 = vector.shape_cast %126 : vector<8x6x9xf32> to vector<1x8x6x9xf32>
    tpu.vector_store %arg9[%c3, %c0_56, %c0_57, %c0_58], %129 {strides = array<i32>} : memref<6x8x6x9xf32, #tpu.memory_space<vmem>>, vector<1x8x6x9xf32>,
    "tpu.trace_start"() <{level = 10 : i32, message = "bik,bkh->bih"}> : () -> ()
    %cst_59 = arith.constant dense<0.000000e+00> : vector<8x6x32xf32>
    %130 = tpu.matmul %126, %112, %cst_59 {dimension_numbers = #tpu.dot_dimension_numbers<[2], [1], [1], [2], [0, 0, 0, 1, 1, 2], [0], [0]>} : vector<8x6x9xf32>, vector<8x9x32xf32>, vector<8x6x32xf32> -> vector<8x6x32xf32>
    "tpu.trace_stop"() : () -> ()
    %131 = arith.addf %110, %130 : vector<8x6x32xf32>
    %cst_60 = arith.constant dense<0.000000e+00> : vector<72x32xf32>
    %132 = tpu.matmul %45, %32, %cst_60 {dimension_numbers = #tpu.dot_dimension_numbers<[1], [0], [0], [1], [0, 0, 1, 1], [], []>} : vector<72x8xf32>, vector<8x32xf32>, vector<72x32xf32> -> vector<72x32xf32>
    %133 = vector.shape_cast %132 : vector<72x32xf32> to vector<8x9x32xf32>
    "tpu.trace_start"() <{level = 10 : i32, message = "bih,bkh->bik"}> : () -> ()
    %cst_61 = arith.constant dense<0.000000e+00> : vector<8x6x9xf32>
    %134 = tpu.matmul %44, %133, %cst_61 {dimension_numbers = #tpu.dot_dimension_numbers<[2], [2], [1], [1], [0, 0, 0, 1, 1, 1], [0], [0]>} : vector<8x6x32xf32>, vector<8x9x32xf32>, vector<8x6x9xf32> -> vector<8x6x9xf32>
    "tpu.trace_stop"() : () -> ()
    %cst_62 = arith.constant dense<0xFF800000> : vector<8x6xf32>
    %135 = vector.multi_reduction <maximumf>, %134, %cst_62 [2] : vector<8x6x9xf32> to vector<8x6xf32>
    %136 = vector.shape_cast %135 : vector<8x6xf32> to vector<8x6x1xf32>
    %137 = vector.broadcast %136 : vector<8x6x1xf32> to vector<8x6x9xf32>
    %138 = arith.subf %134, %137 : vector<8x6x9xf32>
    %139 = math.exp %138 : vector<8x6x9xf32>
    %cst_63 = arith.constant dense<0.000000e+00> : vector<8x6xf32>
    %140 = vector.multi_reduction <add>, %139, %cst_63 [2] : vector<8x6x9xf32> to vector<8x6xf32>
    %141 = vector.shape_cast %140 : vector<8x6xf32> to vector<8x6x1xf32>
    %142 = vector.broadcast %141 : vector<8x6x1xf32> to vector<8x6x9xf32>
    %143 = arith.divf %139, %142 : vector<8x6x9xf32>
    %c4_i32 = arith.constant 4 : i32
    %144 = vector.broadcast %c4_i32 : i32 to vector<8x6x9xi32>
    %145 = arith.cmpi sgt, %46, %144 : vector<8x6x9xi32>
    %cst_64 = arith.constant 0.000000e+00 : f32
    %146 = vector.broadcast %cst_64 : f32 to vector<8x6x9xf32>
    %147 = arith.select %145, %143, %146 : vector<8x6x9xi1>, vector<8x6x9xf32>
    %c4 = arith.constant 4 : index
    %c0_65 = arith.constant 0 : index
    %c0_66 = arith.constant 0 : index
    %c0_67 = arith.constant 0 : index
    %148 = vector.load %arg9[%c4, %c0_65, %c0_66, %c0_67] : memref<6x8x6x9xf32, #tpu.memory_space<vmem>>, vector<1x8x6x9xf32>
    %149 = vector.shape_cast %148 : vector<1x8x6x9xf32> to vector<8x6x9xf32>
    %150 = vector.shape_cast %147 : vector<8x6x9xf32> to vector<1x8x6x9xf32>
    tpu.vector_store %arg9[%c4, %c0_65, %c0_66, %c0_67], %150 {strides = array<i32>} : memref<6x8x6x9xf32, #tpu.memory_space<vmem>>, vector<1x8x6x9xf32>,
    "tpu.trace_start"() <{level = 10 : i32, message = "bik,bkh->bih"}> : () -> ()
    %cst_68 = arith.constant dense<0.000000e+00> : vector<8x6x32xf32>
    %151 = tpu.matmul %147, %133, %cst_68 {dimension_numbers = #tpu.dot_dimension_numbers<[2], [1], [1], [2], [0, 0, 0, 1, 1, 2], [0], [0]>} : vector<8x6x9xf32>, vector<8x9x32xf32>, vector<8x6x32xf32> -> vector<8x6x32xf32>
    "tpu.trace_stop"() : () -> ()
    %152 = arith.addf %131, %151 : vector<8x6x32xf32>
    %cst_69 = arith.constant dense<0.000000e+00> : vector<72x32xf32>
    %153 = tpu.matmul %45, %37, %cst_69 {dimension_numbers = #tpu.dot_dimension_numbers<[1], [0], [0], [1], [0, 0, 1, 1], [], []>} : vector<72x8xf32>, vector<8x32xf32>, vector<72x32xf32> -> vector<72x32xf32>
    %154 = vector.shape_cast %153 : vector<72x32xf32> to vector<8x9x32xf32>
    "tpu.trace_start"() <{level = 10 : i32, message = "bih,bkh->bik"}> : () -> ()
    %cst_70 = arith.constant dense<0.000000e+00> : vector<8x6x9xf32>
    %155 = tpu.matmul %44, %154, %cst_70 {dimension_numbers = #tpu.dot_dimension_numbers<[2], [2], [1], [1], [0, 0, 0, 1, 1, 1], [0], [0]>} : vector<8x6x32xf32>, vector<8x9x32xf32>, vector<8x6x9xf32> -> vector<8x6x9xf32>
    "tpu.trace_stop"() : () -> ()
    %cst_71 = arith.constant dense<0xFF800000> : vector<8x6xf32>
    %156 = vector.multi_reduction <maximumf>, %155, %cst_71 [2] : vector<8x6x9xf32> to vector<8x6xf32>
    %157 = vector.shape_cast %156 : vector<8x6xf32> to vector<8x6x1xf32>
    %158 = vector.broadcast %157 : vector<8x6x1xf32> to vector<8x6x9xf32>
    %159 = arith.subf %155, %158 : vector<8x6x9xf32>
    %160 = math.exp %159 : vector<8x6x9xf32>
    %cst_72 = arith.constant dense<0.000000e+00> : vector<8x6xf32>
    %161 = vector.multi_reduction <add>, %160, %cst_72 [2] : vector<8x6x9xf32> to vector<8x6xf32>
    %162 = vector.shape_cast %161 : vector<8x6xf32> to vector<8x6x1xf32>
    %163 = vector.broadcast %162 : vector<8x6x1xf32> to vector<8x6x9xf32>
    %164 = arith.divf %160, %163 : vector<8x6x9xf32>
    %c5_i32 = arith.constant 5 : i32
    %165 = vector.broadcast %c5_i32 : i32 to vector<8x6x9xi32>
    %166 = arith.cmpi sgt, %46, %165 : vector<8x6x9xi32>
    %cst_73 = arith.constant 0.000000e+00 : f32
    %167 = vector.broadcast %cst_73 : f32 to vector<8x6x9xf32>
    %168 = arith.select %166, %164, %167 : vector<8x6x9xi1>, vector<8x6x9xf32>
    %c5 = arith.constant 5 : index
    %c0_74 = arith.constant 0 : index
    %c0_75 = arith.constant 0 : index
    %c0_76 = arith.constant 0 : index
    %169 = vector.load %arg9[%c5, %c0_74, %c0_75, %c0_76] : memref<6x8x6x9xf32, #tpu.memory_space<vmem>>, vector<1x8x6x9xf32>
    %170 = vector.shape_cast %169 : vector<1x8x6x9xf32> to vector<8x6x9xf32>
    %171 = vector.shape_cast %168 : vector<8x6x9xf32> to vector<1x8x6x9xf32>
    tpu.vector_store %arg9[%c5, %c0_74, %c0_75, %c0_76], %171 {strides = array<i32>} : memref<6x8x6x9xf32, #tpu.memory_space<vmem>>, vector<1x8x6x9xf32>,
    "tpu.trace_start"() <{level = 10 : i32, message = "bik,bkh->bih"}> : () -> ()
    %cst_77 = arith.constant dense<0.000000e+00> : vector<8x6x32xf32>
    %172 = tpu.matmul %168, %154, %cst_77 {dimension_numbers = #tpu.dot_dimension_numbers<[2], [1], [1], [2], [0, 0, 0, 1, 1, 2], [0], [0]>} : vector<8x6x9xf32>, vector<8x9x32xf32>, vector<8x6x32xf32> -> vector<8x6x32xf32>
    "tpu.trace_stop"() : () -> ()
    %173 = arith.addf %152, %172 : vector<8x6x32xf32>
    %174 = tpu.iota {dimensions = array<i32: 1>} : vector<8x6x32xi32>
    %c0_i32_78 = arith.constant 0 : i32
    %175 = vector.broadcast %c0_i32_78 : i32 to vector<8x6x32xi32>
    %176 = arith.cmpi eq, %174, %175 : vector<8x6x32xi32>
    %177 = arith.select %176, %44, %173 : vector<8x6x32xi1>, vector<8x6x32xf32>
    %178 = vector.shape_cast %177 : vector<8x6x32xf32> to vector<48x32xf32>
    %179 = vector.shape_cast %44 : vector<8x6x32xf32> to vector<48x32xf32>
    %c0_79 = arith.constant 0 : index
    %c0_80 = arith.constant 0 : index
    %180 = vector.load %arg5[%c0_79, %c0_80] : memref<32x8xf32, #tpu.memory_space<vmem>>, vector<32x8xf32>
    %cst_81 = arith.constant dense<0.000000e+00> : vector<48x8xf32>
    %181 = tpu.matmul %178, %180, %cst_81 {dimension_numbers = #tpu.dot_dimension_numbers<[1], [0], [0], [1], [0, 0, 1, 1], [], []>} : vector<48x32xf32>, vector<32x8xf32>, vector<48x8xf32> -> vector<48x8xf32>
    %c0_82 = arith.constant 0 : index
    %c0_83 = arith.constant 0 : index
    %182 = vector.load %arg6[%c0_82, %c0_83] : memref<32x8xf32, #tpu.memory_space<vmem>>, vector<32x8xf32>
    %cst_84 = arith.constant dense<0.000000e+00> : vector<48x8xf32>
    %183 = tpu.matmul %179, %182, %cst_84 {dimension_numbers = #tpu.dot_dimension_numbers<[1], [0], [0], [1], [0, 0, 1, 1], [], []>} : vector<48x32xf32>, vector<32x8xf32>, vector<48x8xf32> -> vector<48x8xf32>
    %184 = arith.addf %181, %183 : vector<48x8xf32>
    %c0_85 = arith.constant 0 : index
    %c0_86 = arith.constant 0 : index
    %185 = vector.load %arg7[%c0_85, %c0_86] : memref<1x8xf32, #tpu.memory_space<vmem>>, vector<1x8xf32>
    %186 = vector.broadcast %185 : vector<1x8xf32> to vector<48x8xf32>
    %187 = arith.addf %184, %186 : vector<48x8xf32>
    %cst_87 = arith.constant 0.000000e+00 : f32
    %188 = vector.broadcast %cst_87 : f32 to vector<48x8xf32>
    %189 = arith.maximumf %187, %188 : vector<48x8xf32>
    %c0_88 = arith.constant 0 : index
    %c0_89 = arith.constant 0 : index
    %190 = vector.load %arg8[%c0_88, %c0_89] : memref<48x8xf32, #tpu.memory_space<vmem>>, vector<48x8xf32>
    tpu.vector_store %arg8[%c0_88, %c0_89], %189 {strides = array<i32>} : memref<48x8xf32, #tpu.memory_space<vmem>>, vector<48x8xf32>,
    return
  }
}

</mosaic_0001>

<bundles_post_ra>
// kernel: eq.8
= control target key start
LH: loop header
LB: loop body
LE: loop exit
PB: predicated region body
PF: predicated region fallthrough
CT: control target
= control target key end

     0   :  { %s67_s10 = smov 63   ;;  %s68_s11 = smov 45   ;;  %vm3_vm0 = vcmask 72704   ;;  %vm9_vm1 = vcmask 589304   ;;  %vm15_vm2 = vcmask 515504   ;;  %vm21_vm3 = vcmask 441704   ;;  %s111_s0 = inlined_call_operand.vmem [shape: s32[8,9], index: 0, kind: input, shape index: {}]   ;;  %s112_s1 = inlined_call_operand.vmem [shape: s32[72], index: 1, kind: output, shape index: {}]  }
   0x1   :  { %v53_v0 = vld [vmem:[%s111_s0 + $0x7] sm:$0x1]   ;;  %v55_v1 = vld [vmem:[%s111_s0 + $0x5] sm:$0x1]   ;;  %v54_v2 = vld [vmem:[%s111_s0 + $0x6] sm:$0x1]  }
   0x2   :  { %7 = vrot.lane.b32.xlu0 %v53_v0, %s67_s10  ;;  %19 = vrot.lane.b32.xlu1 %v55_v1, %s68_s11  ;;  %v56_v3 = vld [vmem:[%s111_s0 + $0x4] sm:$0x1]   ;;  %v2_v4 = vld [vmem:[%s111_s0] sm:$0x1]   ;;  %s69_s18 = smov 54   ;;  %s70_s19 = smov 36  }
   0x3   :  { %4 = vst.msk [vmem:[#allocation0] sm:$0x1] %vm3_vm0, %v2_v4   ;;  %v57_v5 = vld [vmem:[%s111_s0 + $0x3] sm:$0x1]   ;;  %v58_v6 = vld [vmem:[%s111_s0 + $0x2] sm:$0x1]  }
   0x4   :  { %s71_s24 = smov 27   ;;  %s72_s25 = smov 18   ;;  %v59_v7 = vld [vmem:[%s111_s0 + $0x1] sm:$0x1]   ;;  %vm27_vm4 = vcmask 367904   ;;  %vm33_vm5 = vcmask 294104  }
   0x5   :  { %s73_s0 = smov 9   ;;  %vm39_vm6 = vcmask 220304   ;;  %vm45_vm7 = vcmask 146504  }
   0x6   :  { %13 = vrot.lane.b32.xlu0 %v54_v2, %s69_s18  ;;  %25 = vrot.lane.b32.xlu1 %v56_v3, %s70_s19 }
   0xa   :  { %31 = vrot.lane.b32.xlu0 %v57_v5, %s71_s24  ;;  %37 = vrot.lane.b32.xlu1 %v58_v6, %s72_s25 }
   0xe   :  { %43 = vrot.lane.b32.xlu0 %v59_v7, %s73_s0 }
  0x74   :  { %v8_v8 = vpop.permute.xlu0 %7   ;;  %v20_v9 = vpop.permute.xlu1 %19  }
  0x75   :  { %10 = vst.msk [vmem:[#allocation0] sm:$0x1] %vm9_vm1, %v8_v8  }
  0x78   :  { %v14_v10 = vpop.permute.xlu0 %13   ;;  %v26_v11 = vpop.permute.xlu1 %25  }
  0x79   :  { %16 = vst.msk [vmem:[#allocation0] sm:$0x1] %vm15_vm2, %v14_v10  }
  0x7a   :  { %22 = vst.msk [vmem:[#allocation0] sm:$0x1] %vm21_vm3, %v20_v9  }
  0x7b   :  { %28 = vst.msk [vmem:[#allocation0] sm:$0x1] %vm27_vm4, %v26_v11  }
  0x7c   :  { %v32_v12 = vpop.permute.xlu0 %31   ;;  %v38_v13 = vpop.permute.xlu1 %37  }
  0x7d   :  { %34 = vst.msk [vmem:[#allocation0] sm:$0x1] %vm33_vm5, %v32_v12  }
  0x7e   :  { %40 = vst.msk [vmem:[#allocation0] sm:$0x1] %vm39_vm6, %v38_v13  }
  0x80   :  { %v44_v14 = vpop.permute.xlu0 %43  }
  0x81   :  { %46 = vst.msk [vmem:[#allocation0] sm:$0x1] %vm45_vm7, %v44_v14  }
  0x88   :  { %v50_v15 = vld [vmem:[#allocation0] sm:$0x1] }
  0x89   :  { %52 = vst [vmem:[%s112_s1] sm:$0x1] %v50_v15 }

// kernel: predictor_forward.1
= control target key start
LH: loop header
LB: loop body
LE: loop exit
PB: predicated region body
PF: predicated region fallthrough
CT: control target
= control target key end

     0   :  { %vm45_vm0 = vcmask 64512   ;;  %v21957_v0 = vmov 0.0|0.0   ;;  %vm18726_vm1 = vmmov 0   ;;  %v21959_v4 = vmov 0.0   ;;  %s21947_s3 = inlined_call_operand.vmem [shape: f32[32,32], index: 3, kind: input, shape index: {}]   ;;  %s21948_s2 = inlined_call_operand.vmem [shape: f32[8,32], index: 2, kind: input, shape index: {}]   ;;  %s21949_s0 = inlined_call_operand.vmem [shape: f32[48,8], index: 0, kind: input, shape index: {}]   ;;  %s21950_s4 = inlined_call_operand.vmem [shape: f32[1,32], index: 4, kind: input, shape index: {}]   ;;  %s21951_s1 = inlined_call_operand.vmem [shape: f32[72,8], index: 1, kind: input, shape index: {}]   ;;  %s21952_s9 = inlined_call_operand.vmem [shape: f32[6,8,6,9], index: 9, kind: output, shape index: {1}]   ;;  %s21953_s6 = inlined_call_operand.vmem [shape: f32[32,8], index: 6, kind: input, shape index: {}]   ;;  %s21954_s5 = inlined_call_operand.vmem [shape: f32[32,8], index: 5, kind: input, shape index: {}]   ;;  %s21955_s7 = inlined_call_operand.vmem [shape: f32[1,8], index: 7, kind: input, shape index: {}]   ;;  %s21956_s8 = inlined_call_operand.vmem [shape: f32[48,8], index: 8, kind: output, shape index: {0}]  }
   0x1   :  { %17978 = vmatprep.subr.bf16.mxu1 %v21957_v0  ;;  %v159_v1 = vld [vmem:[%s21947_s3] sm:$0xff]  ;;  %v160_v2 = vld [vmem:[%s21947_s3 + $0x8] sm:$0xff]  ;;  %17040 = vmatprep.mubr.msk.f32.mxu1 %vm18726_vm1, %v21959_v4  ;;  %v161_v8 = vld [vmem:[%s21947_s3 + $0x10] sm:$0xff]  ;;  %vm163_vm2 = vcmask 261120   ;;  %v18728_v51 = vmov 1966171168   ;;  %v618_v53 = vlaneseq }
   0x2   :  { %v37_v3 = vld [vmem:[%s21948_s2] sm:$0xff]  ;;  %v18793_v5 = vpack.c.bf16 %v160_v2, %v159_v1  ;;  %v32_v7 = vld [vmem:[%s21949_s0 + $0x8] sm:$0xff]  ;;  %v162_v9 = vld [vmem:[%s21947_s3 + $0x18] sm:$0xff]  ;;  %v616_v52 = vunpack.c.l.s4 %v18728_v51  ;;  %vm1117_vm4 = vcmask 1040384   ;;  %vm1126_vm5 = vcmask 1041408  }
   0x3   :  { %17021 = vmatprep.subr.mxu0 %v37_v3  ;;  %v31_v6 = vld [vmem:[%s21949_s0] sm:$0xff]  ;;  %v18810_v10 = vpack.c.bf16 %v162_v9, %v161_v8  ;;  %v33_v11 = vld [vmem:[%s21949_s0 + $0x10] sm:$0xff]  ;;  %v34_v20 = vld [vmem:[%s21949_s0 + $0x18] sm:$0xff]  ;;  %v18975_v55 = vshrl.u32 %v618_v53, 7  ;;  %vm1135_vm6 = vcmask 1042432   ;;  %vm1144_vm7 = vcmask 1043456  }
   0x4   :  { %17022 = vmatpush3.msra.mxu0 %v37_v3  ;;  %17023 = vmatprep.mubr.msk.f32.mxu0 %vm45_vm0, %v31_v6  ;;  %v18834_v13 = vld [vmem:[%s21950_s4] ss:$0 sm:$0xff]  ;;  %v36_v22 = vld [vmem:[%s21949_s0 + $0x28] sm:$0xff]  ;;  %v18915_v44 = vld [vmem:[%s21951_s1 + $0x10] sm:$0xff]  ;;  %v617_v54 = vunpack.c.0.s8 %v616_v52  ;;  %vm1153_vm8 = vcmask 1044480   ;;  %vm18729_vm9 = vmmov 1  }
   0x5   :  { %17980 = vmatpush3.bf16.msra.mxu1 %v18793_v5  ;;  %17024 = vmatmul.mubr.msk.f32.vlgmr.msra.gmra.mrb[0].mxu0 %vm45_vm0, %v32_v7  ;;  %v35_v21 = vld [vmem:[%s21949_s0 + $0x20] sm:$0xff]  ;;  %v18906_v43 = vld [vmem:[%s21951_s1 + $0x8] sm:$0xff]  ;;  %v18924_v45 = vld [vmem:[%s21951_s1 + $0x18] sm:$0xff]  ;;  %vm2880_vm11 = vcmask 70656   ;;  %vm4730_vm12 = vcmp.gt.s32.totalorder %v18975_v55, 1  ;;  %vm4749_vm13 = vcmask 72704  }
   0x6   :  { %17981 = vmatprep.subr.bf16.mxu1 %v21957_v0  ;;  %17996 = vmatprep.subr.bf16.mxu0 %v21957_v0  ;;  %v18896_v42 = vld [vmem:[%s21951_s1] sm:$0xff]  ;;  %v18942_v47 = vld [vmem:[%s21951_s1 + $0x28] sm:$0xff]  ;;  %v18951_v48 = vld [vmem:[%s21951_s1 + $0x30] sm:$0xff]  ;;  %v18979_v60 = vsub.s32 %v617_v54, %v18975_v55  ;;  %vm2969_vm14 = vcmp.gt.s32.totalorder %v18975_v55, 0  ;;  %vm7709_vm15 = vcmp.gt.s32.totalorder %v18975_v55, 2 }
   0x7   :  { %17998 = vmatpush3.bf16.msra.mxu0 %v18793_v5  ;;  %17026 = vmatprep.mubr.msk.f32.mxu0 %vm45_vm0, %v33_v11  ;;  %v18933_v46 = vld [vmem:[%s21951_s1 + $0x20] sm:$0xff]  ;;  %v18960_v49 = vld [vmem:[%s21951_s1 + $0x38] sm:$0xff]  ;;  %vm19015_vm3 = vmpackc.low %vm163_vm2, %vm163_vm2 }
   0x8   :  { %17999 = vmatprep.subr.bf16.mxu0 %v21957_v0  ;;  %v18969_v50 = vld [vmem:[%s21951_s1 + $0x40] sm:$0xff]  ;;  %vm19731_vm10 = vmpackc.low %vm1117_vm4, %vm18729_vm9 }
   0x9   :  { %17983 = vmatpush3.bf16.msra.mxu1 %v18810_v10  ;;  %17027 = vmatmul.mubr.msk.f32.gmra.mrb[2].mxu0 %vm45_vm0, %v34_v20 }
   0xa   :  { %17984 = vmatprep.subr.bf16.mxu1 %v21957_v0  ;;  %17029 = vmatprep.mubr.msk.f32.mxu0 %vm45_vm0, %v35_v21 }
   0xb   :  { %18001 = vmatpush3.bf16.msra.mxu0 %v18810_v10 }
   0xc   :  { %17041 = vmatmul.mubr.f32.vlgmr.msra.gmra.mrb[0].mxu1 %v21959_v4  ;;  %18008 = vmatprep.subr.bf16.mxu0 %v21957_v0 }
   0xd   :  { %17986 = vmatpush3.bf16.msra.mxu1 %v18793_v5  ;;  %17051 = vmatprep.mubr.msk.f32.mxu1 %vm18726_vm1, %v21959_v4 }
   0xe   :  { %17987 = vmatprep.subr.bf16.mxu1 %v21957_v0  ;;  %17030 = vmatmul.mubr.msk.f32.gmra.mrb[4].mxu0 %vm45_vm0, %v36_v22 }
   0xf   :  { %17073 = vmatprep.mubr.msk.f32.mxu0 %vm18726_vm1, %v21959_v4 }
  0x11   :  { %17989 = vmatpush3.bf16.msra.mxu1 %v18810_v10 }
  0x12   :  { %17990 = vmatprep.subr.bf16.mxu1 %v21957_v0 }
  0xd8   :  { %v17025_v12 = vpop.f32.mrb[0].mxu0 }
  0xd9   :  { %v130_v14 = vpop.f32.mrb[1].mxu0  ;;  %v136_v23 = vadd.f32 %v17025_v12, %v18834_v13 }
  0xda   :  { %v131_v15 = vadd.f32 %v18834_v13, %v130_v14 }
  0xdc   :  { %v17028_v28 = vpop.f32.mrb[2].mxu0 }
  0xdd   :  { %v140_v29 = vpop.f32.mrb[3].mxu0  ;;  %v146_v37 = vadd.f32 %v17028_v28, %v18834_v13 }
  0xde   :  { %v141_v32 = vadd.f32 %v18834_v13, %v140_v29 }
  0xdf   :  { %v233_v16 = vpop.f32.mrb[0].mxu1 }
  0xe0   :  { %v237_v17 = vadd.f32 %v233_v16, %v131_v15  ;;  %v17042_v18 = vpop.f32.mrb[1].mxu1 }
  0xe1   :  { %v18872_v30 = vpop.f32.mrb[4].mxu0 }
  0xe2   :  { %v18837_v19 = vmax.f32 %v237_v17, 0.0  ;;  %v150_v31 = vpop.f32.mrb[5].mxu0 }
  0xe3   :  { %v151_v56 = vadd.f32 %v18834_v13, %v150_v31 }
  0xe4   :  { %17052 = vmatmul.mubr.msk.f32.vlgmr.msra.gmra.mrb[2].mxu1 %vm163_vm2, %v18837_v19 }
  0xe5   :  { %17992 = vmatpush3.bf16.msra.mxu1 %v18793_v5  ;;  %17062 = vmatprep.mubr.msk.f32.mxu1 %vm18726_vm1, %v21959_v4 }
  0xe6   :  { %17993 = vmatprep.subr.bf16.mxu1 %v21957_v0 }
  0xe9   :  { %17995 = vmatpush3.bf16.msra.mxu1 %v18810_v10 }
  0xea   :  { %18002 = vmatprep.subr.bf16.mxu1 %v21957_v0 }
 0x1b7   :  { %v308_v24 = vpop.f32.mrb[2].mxu1 }
 0x1b8   :  { %v312_v25 = vadd.f32 %v308_v24, %v136_v23  ;;  %v17053_v26 = vpop.f32.mrb[3].mxu1 }
 0x1ba   :  { %v18862_v27 = vmax.f32 %v312_v25, 0.0 }
 0x1bc   :  { %17063 = vmatmul.mubr.msk.f32.vlgmr.msra.gmra.mrb[4].mxu1 %vm163_vm2, %v18862_v27 }
 0x1bd   :  { %18004 = vmatpush3.bf16.msra.mxu1 %v18793_v5  ;;  %17084 = vmatprep.mubr.msk.f32.mxu1 %vm18726_vm1, %v21959_v4 }
 0x1be   :  { %18005 = vmatprep.subr.bf16.mxu1 %v21957_v0 }
 0x1c1   :  { %18007 = vmatpush3.bf16.msra.mxu1 %v18810_v10 }
 0x1c2   :  { %17098 = vmatprep.subr.mxu1 %v21959_v4 }
 0x28f   :  { %v383_v33 = vpop.f32.mrb[4].mxu1 }
 0x290   :  { %v387_v34 = vadd.f32 %v383_v33, %v141_v32  ;;  %v17064_v35 = vpop.f32.mrb[5].mxu1 }
 0x292   :  { %v18875_v36 = vmax.f32 %v387_v34, 0.0 }
 0x294   :  { %17074 = vmatmul.mubr.msk.f32.vlgmr.msra.gmra.mrb[6].mxu0 %vm163_vm2, %v18875_v36 }
 0x295   :  { %18010 = vmatpush3.bf16.msra.mxu0 %v18793_v5  ;;  %17095 = vmatprep.mubr.msk.f32.mxu0 %vm18726_vm1, %v21959_v4 }
 0x296   :  { %18011 = vmatprep.subr.bf16.mxu0 %v21957_v0 }
 0x299   :  { %18013 = vmatpush3.bf16.msra.mxu0 %v18810_v10 }
 0x29a   :  { %18014 = vmatprep.subr.bf16.mxu0 %v21957_v0 }
 0x367   :  { %v458_v38 = vpop.f32.mrb[6].mxu0 }
 0x368   :  { %v462_v39 = vadd.f32 %v458_v38, %v146_v37  ;;  %v17075_v40 = vpop.f32.mrb[7].mxu0 }
 0x36a   :  { %v18886_v41 = vmax.f32 %v462_v39, 0.0 }
 0x36c   :  { %21964 = vst [vmem:[#allocation2_spill] sm:$0xff] %v18886_v41  ;;  %17085 = vmatmul.mubr.msk.f32.vlgmr.msra.gmra.mrb[6].mxu1 %vm163_vm2, %v18886_v41 }
 0x36d   :  { %17099 = vmatpush3.msra.mxu1 %v18837_v19  ;;  %17100 = vmatprep.mubr.msk.f32.mxu1 %vm18726_vm1, %v21959_v4 }
 0x36e   :  { %18030 = vmatprep.subr.bf16.mxu1 %v21957_v0 }
 0x370   :  { %17101 = vmatmul.mubr.msk.f32.vlgmr.msra.gmra.mrb[8].mxu1 %vm45_vm0, %v18896_v42 }
 0x371   :  { %17103 = vmatprep.mubr.msk.f32.mxu1 %vm18726_vm1, %v21959_v4 }
 0x374   :  { %17104 = vmatmul.mubr.msk.f32.gmra.mrb[10].mxu1 %vm45_vm0, %v18906_v43 }
 0x375   :  { %17106 = vmatprep.mubr.msk.f32.mxu1 %vm18726_vm1, %v21959_v4 }
 0x378   :  { %17107 = vmatmul.mubr.msk.f32.gmra.mrb[12].mxu1 %vm45_vm0, %v18915_v44 }
 0x379   :  { %17109 = vmatprep.mubr.msk.f32.mxu1 %vm18726_vm1, %v21959_v4 }
 0x37c   :  { %17110 = vmatmul.mubr.msk.f32.gmra.mrb[14].mxu1 %vm45_vm0, %v18924_v45 }
 0x37d   :  { %17112 = vmatprep.mubr.msk.f32.mxu1 %vm18726_vm1, %v21959_v4 }
 0x380   :  { %17113 = vmatmul.mubr.msk.f32.gmra.mrb[16].mxu1 %vm45_vm0, %v18933_v46 }
 0x381   :  { %17115 = vmatprep.mubr.msk.f32.mxu1 %vm18726_vm1, %v21959_v4 }
 0x384   :  { %17116 = vmatmul.mubr.msk.f32.gmra.mrb[18].mxu1 %vm45_vm0, %v18942_v47 }
 0x385   :  { %17118 = vmatprep.mubr.msk.f32.mxu1 %vm18726_vm1, %v21959_v4 }
 0x388   :  { %17119 = vmatmul.mubr.msk.f32.gmra.mrb[20].mxu1 %vm45_vm0, %v18951_v48 }
 0x389   :  { %17121 = vmatprep.mubr.msk.f32.mxu1 %vm18726_vm1, %v21959_v4 }
 0x38c   :  { %17122 = vmatmul.mubr.msk.f32.gmra.mrb[22].mxu1 %vm45_vm0, %v18960_v49 }
 0x38d   :  { %17124 = vmatprep.mubr.msk.f32.mxu1 %vm18726_vm1, %v21959_v4 }
 0x390   :  { %17125 = vmatmul.mubr.msk.f32.gmra.mrb[24].mxu1 %vm45_vm0, %v18969_v50 }
 0x391   :  { %17159 = vmatprep.mubr.msk.f32.mxu1 %vm18726_vm1, %v21959_v4 }
 0x43f   :  { %v533_v57 = vpop.f32.mrb[6].mxu1 }
 0x440   :  { %v537_v58 = vadd.f32 %v533_v57, %v151_v56  ;;  %v17086_v59 = vpop.f32.mrb[7].mxu1 }
 0x442   :  { %v18981_v61 = vmax.f32 %v537_v58, 0.0 }
 0x443   :  { %v1266_v62 = vpop.f32.mrb[8].mxu1 }
 0x444   :  { %21965 = vst [vmem:[#allocation3_spill] sm:$0xff] %v18981_v61  ;;  %17096 = vmatmul.mubr.msk.f32.vlgmr.msra.gmra.mrb[8].mxu0 %vm163_vm2, %v18981_v61  ;;  %v1319_v63 = vcombine.high %v1266_v62, %v1266_v62  ;;  %v1326_v1 = vrot.slane %v1266_v62, %v18979_v60  ;;  %v17102_v2 = vpop.f32.mrb[9].mxu1 }
 0x445   :  { %17131 = vmatprep.mubr.msk.f32.mxu0 %vm18726_vm1, %v21959_v4 }
 0x446   :  { %v1333_v3 = vrot.slane %v1319_v63, %v18979_v60  ;;  %v1334_v5 = vcombine.high %v1326_v1, %v1326_v1  ;;  %v1342_v6 = vrot.slane %v1326_v1, %v18979_v60 }
 0x447   :  { %v1271_v7 = vpop.f32.mrb[10].mxu1 }
 0x448   :  { %v17105_v8 = vpop.f32.mrb[11].mxu1  ;;  %v1335_v9 = vcombine.high %v1333_v3, %v1333_v3  ;;  %v1349_v10 = vrot.slane %v1333_v3, %v18979_v60  ;;  %v1356_v11 = vrot.slane %v1334_v5, %v18979_v60  ;;  %v1368_v22 = vcombine.high %v1271_v7, %v1271_v7 }
 0x449   :  { %v1375_v23 = vrot.slane %v1271_v7, %v18979_v60 }
 0x44a   :  { %v1363_v12 = vrot.slane %v1335_v9, %v18979_v60  ;;  %v1760_v14 = vcombine.low %v1342_v6, %v1356_v11  ;;  %v16230_v17 = vcombine.high %v1342_v6, %v1356_v11  ;;  %v1382_v32 = vrot.slane %v1368_v22, %v18979_v60 }
 0x44b   :  { %v1276_v15 = vpop.f32.mrb[12].mxu1  ;;  %v1383_v33 = vcombine.high %v1375_v23, %v1375_v23  ;;  %v1391_v34 = vrot.slane %v1375_v23, %v18979_v60 }
 0x44c   :  { %v17108_v16 = vpop.f32.mrb[13].mxu1  ;;  %v1762_v18 = vcombine.low %v1349_v10, %v1363_v12  ;;  %v16231_v20 = vcombine.high %v1349_v10, %v1363_v12  ;;  %v1770_v21 = vrot.slane %v1760_v14, %v18979_v60  ;;  %v1417_v24 = vcombine.high %v1276_v15, %v1276_v15 }
 0x44d   :  { %v1777_v25 = vrot.slane %v16230_v17, %v18979_v60  ;;  %v1424_v29 = vrot.slane %v1276_v15, %v18979_v60  ;;  %v1384_v52 = vcombine.high %v1382_v32, %v1382_v32  ;;  %v1398_v53 = vrot.slane %v1382_v32, %v18979_v60 }
 0x44e   :  { %v1784_v26 = vrot.slane %v1762_v18, %v18979_v60  ;;  %v1791_v28 = vrot.slane %v16231_v20, %v18979_v60  ;;  %v1431_v35 = vrot.slane %v1417_v24, %v18979_v60  ;;  %v1405_v54 = vrot.slane %v1383_v33, %v18979_v60 }
 0x44f   :  { %v1281_v31 = vpop.f32.mrb[14].mxu1  ;;  %v1792_v38 = vcombine.low %v1770_v21, %v1777_v25  ;;  %v1432_v40 = vcombine.high %v1424_v29, %v1424_v29  ;;  %v1440_v51 = vrot.slane %v1424_v29, %v18979_v60  ;;  %v1413_v56 = vcombine.high %v1391_v34, %v1391_v34 }
 0x450   :  { %v17111_v37 = vpop.f32.mrb[15].mxu1  ;;  %v1793_v39 = vcombine.low %v1784_v26, %v1791_v28  ;;  %v1815_v59 = vrot.slane %v1391_v34, %v18979_v60  ;;  %v1433_v62 = vcombine.high %v1431_v35, %v1431_v35  ;;  %v1412_v1 = vrot.slane %v1384_v52, %v18979_v60 }
 0x451   :  { %v1800_v57 = vrot.slane %v1792_v38, %v18979_v60  ;;  %v1414_v2 = vcombine.high %v1398_v53, %v1398_v53  ;;  %v1415_v3 = vcombine.high %v1405_v54, %v1405_v54  ;;  %v1900_v5 = vcombine.low %v1405_v54, %v1413_v56 }
 0x452   :  { %v1807_v58 = vrot.slane %v1793_v39, %v18979_v60  ;;  %v1822_v8 = vrot.slane %v1815_v59, %v18979_v60  ;;  %v1447_v9 = vrot.slane %v1431_v35, %v18979_v60  ;;  %v1454_v10 = vrot.slane %v1432_v40, %v18979_v60 }
 0x453   :  { %v1286_v63 = vpop.f32.mrb[16].mxu1  ;;  %v1901_v11 = vcombine.low %v1415_v3, %v1398_v53  ;;  %v1902_v12 = vcombine.low %v1412_v1, %v1414_v2  ;;  %v1910_v14 = vrot.slane %v1900_v5, %v18979_v60  ;;  %v1416_v15 = vcombine.high %v1412_v1, %v1412_v1 }
 0x454   :  { %v17114_v6 = vpop.f32.mrb[17].mxu1  ;;  %v1808_v7 = vcombine.low %v1800_v57, %v1807_v58  ;;  %v1461_v18 = vrot.slane %v1433_v62, %v18979_v60  ;;  %v1955_v20 = vrot.slane %v1454_v10, %v18979_v60  ;;  %v16238_v21 = vcombine.high %v1440_v51, %v1454_v10 }
 0x455   :  { %v1917_v23 = vrot.slane %v1901_v11, %v18979_v60  ;;  %v1903_v24 = vcombine.low %v1416_v15, %v1440_v51  ;;  %v1924_v25 = vrot.slane %v1902_v12, %v18979_v60  ;;  %v1466_v26 = vcombine.high %v1281_v31, %v1281_v31 }
 0x456   :  { %v19019_v17 = vpack.c.bf16 %v1822_v8, %v1808_v7  ;;  %v1962_v29 = vrot.slane %v1955_v20, %v18979_v60  ;;  %v2041_v32 = vcombine.low %v1447_v9, %v1461_v18  ;;  %v16239_v33 = vcombine.high %v1447_v9, %v1461_v18 }
 0x457   :  { %v19023_v22 = vpop.f32.mrb[18].mxu1  ;;  %v1932_v34 = vcombine.low %v1910_v14, %v1917_v23  ;;  %v1931_v35 = vrot.slane %v1903_v24, %v18979_v60  ;;  %v1473_v37 = vrot.slane %v1281_v31, %v18979_v60  ;;  %v1480_v38 = vrot.slane %v1466_v26, %v18979_v60 }
 0x458   :  { %v17117_v28 = vpop.f32.mrb[19].mxu1  ;;  %18017 = vmatpush3.bf16.xpose.msk.msra.mxu0 %vm19015_vm3, %v19019_v17  ;;  %v2050_v39 = vrot.slane %v16238_v21, %v18979_v60  ;;  %v2057_v40 = vrot.slane %v2041_v32, %v18979_v60  ;;  %v1515_v51 = vcombine.high %v1286_v63, %v1286_v63  ;;  %v1522_v52 = vrot.slane %v1286_v63, %v18979_v60 }
 0x459   :  { %18018 = vmatprep.subr.bf16.mxu0 %v21957_v0  ;;  %v1940_v54 = vrot.slane %v1932_v34, %v18979_v60  ;;  %v1933_v56 = vcombine.low %v1924_v25, %v1931_v35  ;;  %v1481_v57 = vcombine.high %v1473_v37, %v1473_v37  ;;  %v1482_v58 = vcombine.high %v1480_v38, %v1480_v38 }
 0x45a   :  { %v2064_v31 = vrot.slane %v16239_v33, %v18979_v60  ;;  %v1489_v62 = vrot.slane %v1473_v37, %v18979_v60  ;;  %v1496_v1 = vrot.slane %v1480_v38, %v18979_v60  ;;  %v1529_v2 = vrot.slane %v1515_v51, %v18979_v60 }
 0x45b   :  { %v19038_v53 = vpop.f32.mrb[20].mxu1  ;;  %v1947_v3 = vrot.slane %v1933_v56, %v18979_v60  ;;  %v1503_v63 = vrot.slane %v1481_v57, %v18979_v60  ;;  %v1510_v5 = vrot.slane %v1482_v58, %v18979_v60  ;;  %v1530_v6 = vcombine.high %v1522_v52, %v1522_v52 }
 0x45c   :  { %v17120_v59 = vpop.f32.mrb[21].mxu1  ;;  %v2072_v7 = vcombine.low %v2050_v39, %v2057_v40  ;;  %v1511_v8 = vcombine.high %v1489_v62, %v1489_v62  ;;  %v1512_v9 = vcombine.high %v1496_v1, %v1496_v1  ;;  %v1531_v10 = vcombine.high %v1529_v2, %v1529_v2 }
 0x45d   :  { %v1948_v12 = vcombine.low %v1940_v54, %v1947_v3  ;;  %v1513_v14 = vcombine.high %v1503_v63, %v1503_v63  ;;  %v2043_v15 = vcombine.low %v1489_v62, %v1503_v63  ;;  %v1514_v18 = vcombine.high %v1510_v5, %v1510_v5 }
 0x45e   :  { %v2095_v21 = vrot.slane %v1511_v8, %v18979_v60  ;;  %v2181_v23 = vcombine.low %v1510_v5, %v1512_v9  ;;  %v1538_v24 = vrot.slane %v1522_v52, %v18979_v60  ;;  %v1545_v25 = vrot.slane %v1529_v2, %v18979_v60 }
 0x45f   :  { %v19048_v11 = vpop.f32.mrb[22].mxu1  ;;  %v19053_v26 = vpack.c.bf16 %v1962_v29, %v1948_v12  ;;  %v2071_v28 = vrot.slane %v2043_v15, %v18979_v60  ;;  %v2180_v32 = vcombine.low %v1513_v14, %v1496_v1  ;;  %v19057_v33 = vrot.slane %v1530_v6, %v18979_v60 }
 0x460   :  { %v17123_v20 = vpop.f32.mrb[23].mxu1  ;;  %v2197_v34 = vrot.slane %v2181_v23, %v18979_v60  ;;  %v1559_v35 = vrot.slane %v1531_v10, %v18979_v60  ;;  %v1560_v37 = vcombine.high %v1538_v24, %v1538_v24  ;;  %v2080_v38 = vrot.slane %v2072_v7, %v18979_v60 }
 0x461   :  { %v2073_v39 = vcombine.low %v2064_v31, %v2071_v28  ;;  %v2190_v40 = vrot.slane %v2180_v32, %v18979_v60  ;;  %v2182_v51 = vcombine.low %v1514_v18, %v1538_v24  ;;  %v1564_v56 = vcombine.high %v19023_v22, %v19023_v22 }
 0x462   :  { %v2183_v29 = vcombine.low %v19057_v33, %v1560_v37  ;;  %v2320_v52 = vcombine.low %v1545_v25, %v1559_v35  ;;  %v16246_v54 = vcombine.high %v1545_v25, %v1559_v35  ;;  %v2102_v58 = vrot.slane %v2095_v21, %v18979_v60 }
 0x463   :  { %v2087_v57 = vrot.slane %v2073_v39, %v18979_v60  ;;  %v2212_v59 = vcombine.low %v2190_v40, %v2197_v34  ;;  %v2204_v62 = vrot.slane %v2182_v51, %v18979_v60  ;;  %v1571_v3 = vrot.slane %v19023_v22, %v18979_v60 }
 0x464   :  { %v2211_v1 = vrot.slane %v2183_v29, %v18979_v60  ;;  %v2330_v31 = vrot.slane %v2320_v52, %v18979_v60  ;;  %v2337_v2 = vrot.slane %v16246_v54, %v18979_v60  ;;  %v1578_v6 = vrot.slane %v1564_v56, %v18979_v60 }
 0x465   :  { %v2088_v63 = vcombine.low %v2080_v38, %v2087_v57  ;;  %v2220_v5 = vrot.slane %v2212_v59, %v18979_v60  ;;  %v1579_v9 = vcombine.high %v1571_v3, %v1571_v3  ;;  %v1587_v10 = vrot.slane %v1571_v3, %v18979_v60 }
 0x466   :  { %v2213_v7 = vcombine.low %v2204_v62, %v2211_v1  ;;  %v2352_v8 = vcombine.low %v2330_v31, %v2337_v2  ;;  %v1580_v14 = vcombine.high %v1578_v6, %v1578_v6  ;;  %v1594_v15 = vrot.slane %v1578_v6, %v18979_v60 }
 0x467   :  { %v19077_v12 = vpack.c.bf16 %v2102_v58, %v2088_v63  ;;  %v1613_v18 = vcombine.high %v19038_v53, %v19038_v53  ;;  %v1601_v20 = vrot.slane %v1579_v9, %v18979_v60  ;;  %v1620_v21 = vrot.slane %v19038_v53, %v18979_v60 }
 0x468   :  { %v2227_v22 = vrot.slane %v2213_v7, %v18979_v60  ;;  %v2360_v23 = vrot.slane %v2352_v8, %v18979_v60  ;;  %v1608_v24 = vrot.slane %v1580_v14, %v18979_v60  ;;  %v1610_v25 = vcombine.high %v1594_v15, %v1594_v15 }
 0x469   :  { %v1627_v28 = vrot.slane %v1613_v18, %v18979_v60  ;;  %v2322_v34 = vcombine.low %v1587_v10, %v1601_v20  ;;  %v16247_v35 = vcombine.high %v1587_v10, %v1601_v20  ;;  %v1628_v37 = vcombine.high %v1620_v21, %v1620_v21 }
 0x46a   :  { %v19089_v32 = vcombine.low %v2220_v5, %v2227_v22  ;;  %v2375_v38 = vrot.slane %v1594_v15, %v18979_v60  ;;  %v2460_v39 = vcombine.low %v1608_v24, %v1610_v25  ;;  %v1612_v40 = vcombine.high %v1608_v24, %v1608_v24 }
 0x46b   :  { %v1629_v51 = vcombine.high %v1627_v28, %v1627_v28  ;;  %v2344_v29 = vrot.slane %v2322_v34, %v18979_v60  ;;  %v2351_v53 = vrot.slane %v16247_v35, %v18979_v60  ;;  %v1636_v52 = vrot.slane %v1620_v21, %v18979_v60 }
 0x46c   :  { %v1643_v54 = vrot.slane %v1627_v28, %v18979_v60  ;;  %v1650_v56 = vrot.slane %v1628_v37, %v18979_v60  ;;  %v2470_v58 = vrot.slane %v2460_v39, %v18979_v60  ;;  %v1662_v59 = vcombine.high %v19048_v11, %v19048_v11 }
 0x46d   :  { %v19098_v57 = vrot.slane %v1629_v51, %v18979_v60  ;;  %v2353_v62 = vcombine.low %v2344_v29, %v2351_v53  ;;  %v1658_v1 = vcombine.high %v1636_v52, %v1636_v52  ;;  %v2461_v31 = vcombine.low %v1612_v40, %v1636_v52 }
 0x46e   :  { %v1669_v2 = vrot.slane %v19048_v11, %v18979_v60  ;;  %v2382_v3 = vrot.slane %v2375_v38, %v18979_v60  ;;  %v1660_v63 = vcombine.high %v1650_v56, %v1650_v56  ;;  %v1676_v6 = vrot.slane %v1662_v59, %v18979_v60 }
 0x46f   :  { %v16254_v5 = vcombine.high %v1643_v54, %v19098_v57  ;;  %v2367_v7 = vrot.slane %v2353_v62, %v18979_v60  ;;  %v2462_v8 = vcombine.low %v1650_v56, %v1658_v1  ;;  %v2477_v9 = vrot.slane %v2461_v31, %v18979_v60  ;;  %v1306_v31 = vpop.f32.mrb[24].mxu1 }
 0x470   :  { %v1677_v10 = vcombine.high %v1669_v2, %v1669_v2  ;;  %v2463_v14 = vcombine.low %v1660_v63, %v1643_v54  ;;  %v1678_v15 = vcombine.high %v1676_v6, %v1676_v6  ;;  %v1685_v11 = vrot.slane %v1669_v2, %v18979_v60  ;;  %v17126_v63 = vpop.f32.mrb[25].mxu1 }
 0x471   :  { %v2368_v18 = vcombine.low %v2360_v23, %v2367_v7  ;;  %v2484_v22 = vrot.slane %v2462_v8, %v18979_v60  ;;  %v2492_v20 = vcombine.low %v2470_v58, %v2477_v9  ;;  %v1692_v24 = vrot.slane %v1676_v6, %v18979_v60 }
 0x472   :  { %v2491_v21 = vrot.slane %v2463_v14, %v18979_v60  ;;  %v1699_v25 = vrot.slane %v1677_v10, %v18979_v60  ;;  %v1706_v28 = vrot.slane %v1678_v15, %v18979_v60  ;;  %v2610_v35 = vrot.slane %v16254_v5, %v18979_v60 }
 0x473   :  { %v19116_v34 = vpack.c.bf16 %v2382_v3, %v2368_v18  ;;  %v2500_v23 = vrot.slane %v2492_v20, %v18979_v60  ;;  %v1711_v2 = vcombine.high %v1306_v31, %v1306_v31  ;;  %v1718_v3 = vrot.slane %v1306_v31, %v18979_v60 }
 0x474   :  { %v2493_v37 = vcombine.low %v2484_v22, %v2491_v21  ;;  %v2601_v38 = vcombine.low %v1685_v11, %v1699_v25  ;;  %v16255_v39 = vcombine.high %v1685_v11, %v1699_v25  ;;  %v2603_v40 = vcombine.low %v1692_v24, %v1706_v28 }
 0x475   :  { %18033 = vmatpush3.bf16.xpose.msk.msra.mxu1 %vm19015_vm3, %v19116_v34  ;;  %v1710_v5 = vcombine.high %v1706_v28, %v1706_v28  ;;  %v1725_v6 = vrot.slane %v1711_v2, %v18979_v60  ;;  %v1726_v7 = vcombine.high %v1718_v3, %v1718_v3  ;;  %v1734_v8 = vrot.slane %v1718_v3, %v18979_v60 }
 0x476   :  { %v2507_v51 = vrot.slane %v2493_v37, %v18979_v60  ;;  %v2617_v29 = vrot.slane %v2601_v38, %v18979_v60  ;;  %v2624_v53 = vrot.slane %v16255_v39, %v18979_v60  ;;  %18038 = vmatprep.subr.bf16.mxu1 %v21957_v0  ;;  %v2631_v52 = vrot.slane %v2603_v40, %v18979_v60 }
 0x477   :  { %v1727_v9 = vcombine.high %v1725_v6, %v1725_v6  ;;  %v1741_v10 = vrot.slane %v1725_v6, %v18979_v60  ;;  %v1748_v14 = vrot.slane %v1726_v7, %v18979_v60  ;;  %v1756_v15 = vcombine.high %v1734_v8, %v1734_v8 }
 0x478   :  { %v2508_v54 = vcombine.low %v2500_v23, %v2507_v51  ;;  %v2632_v56 = vcombine.low %v2610_v35, %v2617_v29  ;;  %v2633_v58 = vcombine.low %v2624_v53, %v2631_v52  ;;  %v1708_v18 = vcombine.high %v1692_v24, %v1692_v24 }
 0x479   :  { %v2740_v22 = vcombine.low %v1710_v5, %v1734_v8  ;;  %v1755_v20 = vrot.slane %v1727_v9, %v18979_v60  ;;  %v1757_v11 = vcombine.high %v1741_v10, %v1741_v10  ;;  %v1758_v21 = vcombine.high %v1748_v14, %v1748_v14 }
 0x47a   :  { %v2640_v59 = vrot.slane %v2632_v56, %v18979_v60  ;;  %v2647_v62 = vrot.slane %v2633_v58, %v18979_v60  ;;  %v2741_v25 = vcombine.low %v1748_v14, %v1756_v15  ;;  %v2655_v38 = vrot.slane %v1708_v18, %v18979_v60 }
 0x47b   :  { %v2750_v28 = vrot.slane %v2740_v22, %v18979_v60  ;;  %v2742_v35 = vcombine.low %v1758_v21, %v1741_v10  ;;  %v2743_v37 = vcombine.low %v1755_v20, %v1757_v11  ;;  %v2515_v2 = vrot.slane %v19098_v57, %v18979_v60 }
 0x47c   :  { %v2648_v1 = vcombine.low %v2640_v59, %v2647_v62  ;;  %v2757_v23 = vrot.slane %v2741_v25, %v18979_v60  ;;  %v2662_v53 = vrot.slane %v2655_v38, %v18979_v60  ;;  %v1562_v59 = vcombine.high %v19057_v33, %v19057_v33 }
 0x47d   :  { %v2764_v39 = vrot.slane %v2742_v35, %v18979_v60  ;;  %v2771_v40 = vrot.slane %v2743_v37, %v18979_v60  ;;  %v2522_v63 = vrot.slane %v2515_v2, %v18979_v60  ;;  %v1759_v5 = vcombine.high %v1755_v20, %v1755_v20 }
 0x47e   :  { %v2772_v51 = vcombine.low %v2750_v28, %v2757_v23  ;;  %v19144_v58 = vpack.c.bf16 %v2662_v53, %v2648_v1  ;;  %v2235_v62 = vrot.slane %v1562_v59, %v18979_v60  ;;  %v671_v8 = vcombine.high %v18862_v27, %v18862_v27 }
 0x47f   :  { %v2773_v24 = vcombine.low %v2764_v39, %v2771_v40  ;;  %v2795_v6 = vrot.slane %v1759_v5, %v18979_v60  ;;  %v19157_v1 = vpack.c.bf16 %v2522_v63, %v2508_v54  ;;  %v678_v57 = vrot.slane %v18862_v27, %v18979_v60 }
 0x480   :  { %v2780_v29 = vrot.slane %v2772_v51, %v18979_v60  ;;  %v2242_v31 = vrot.slane %v2235_v62, %v18979_v60  ;;  %v614_v9 = vcombine.high %v18837_v19, %v18837_v19  ;;  %v621_v54 = vrot.slane %v18837_v19, %v18979_v60 }
 0x481   :  { %v2787_v52 = vrot.slane %v2773_v24, %v18979_v60  ;;  %v2802_v7 = vrot.slane %v2795_v6, %v18979_v60  ;;  %v720_v10 = vcombine.high %v18875_v36, %v18875_v36  ;;  %v686_v14 = vcombine.high %v678_v57, %v678_v57 }
 0x482   :  { %v19153_v3 = vpack.c.bf16 %v2242_v31, %v19089_v32  ;;  %v19167_v32 = vrot.slane %v671_v8, %v18979_v60  ;;  %v19176_v15 = vrot.slane %v678_v57, %v18979_v60  ;;  %v19179_v18 = vsub.s32 0, %v18975_v55 }
 0x483   :  { %v2788_v56 = vcombine.low %v2780_v29, %v2787_v52  ;;  %v769_v20 = vcombine.high %v18886_v41, %v18886_v41  ;;  %v19188_v11 = vrot.slane %v614_v9, %v18979_v60  ;;  %v727_v19 = vrot.slane %v18875_v36, %v18979_v60 }
 0x484   :  { %v19183_v22 = vrot.slane %v19167_v32, %v18979_v60  ;;  %v818_v21 = vcombine.high %v18981_v61, %v18981_v61  ;;  %v629_v25 = vcombine.high %v621_v54, %v621_v54  ;;  %v19195_v28 = vrot.slane %v720_v10, %v18979_v60 }
 0x485   :  { %v19160_v33 = vpack.c.bf16 %v2802_v7, %v2788_v56  ;;  %v776_v35 = vrot.slane %v18886_v41, %v18979_v60  ;;  %v19200_v37 = vrot.slane %v686_v14, %v18979_v60  ;;  %v920_v23 = vrot.slane %v19176_v15, %v19179_v18 }
 0x486   :  { %v156_v38 = vadd.f32 %v18872_v30, %v18834_v13  ;;  %v825_v39 = vrot.slane %v18981_v61, %v18979_v60  ;;  %v19209_v40 = vrot.slane %v621_v54, %v18979_v60  ;;  %v936_v51 = vrot.slane %v19183_v22, %v19179_v18 }
 0x487   :  { %v19214_v24 = vrot.slane %v769_v20, %v18979_v60  ;;  %v19218_v53 = vrot.slane %v19188_v11, %v18979_v60  ;;  %v19221_v13 = vrot.slane %v727_v19, %v18979_v60  ;;  %v19224_v30 = vrot.slane %v818_v21, %v18979_v60 }
 0x488   :  { %v19227_v59 = vrot.slane %v629_v25, %v18979_v60  ;;  %v717_v62 = vcombine.high %v19183_v22, %v19183_v22  ;;  %v750_v31 = vrot.slane %v19195_v28, %v18979_v60  ;;  %v19234_v2 = vrot.slane %v776_v35, %v18979_v60 }
 0x489   :  { %v924_v63 = vrot.slane %v19200_v37, %v19179_v18  ;;  %v1118_v5 = vsel %vm1117_vm4, %v19209_v40, %v920_v23  ;;  %v19241_v6 = vrot.slane %v825_v39, %v18979_v60  ;;  %v1122_v8 = vsel %vm1117_vm4, %v19218_v53, %v936_v51 }
 0x48a   :  { %v735_v57 = vcombine.high %v727_v19, %v727_v19  ;;  %v799_v9 = vrot.slane %v19214_v24, %v18979_v60  ;;  %v960_v54 = vrot.slane %v19221_v13, %v19179_v18  ;;  %v848_v10 = vrot.slane %v19224_v30, %v18979_v60 }
 0x48b   :  { %v976_v20 = vrot.slane %v750_v31, %v19179_v18  ;;  %v784_v21 = vcombine.high %v776_v35, %v776_v35  ;;  %v1000_v19 = vrot.slane %v19234_v2, %v19179_v18  ;;  %v833_v25 = vcombine.high %v825_v39, %v825_v39 }
 0x48c   :  { %v1040_v23 = vrot.slane %v19241_v6, %v19179_v18  ;;  %v1056_v39 = vrot.slane %v848_v10, %v19179_v18  ;;  %v815_v61 = vcombine.high %v799_v9, %v799_v9 }
 0x48d   :  { %v19277_v4 = vrot.slane %v784_v21, %v18979_v60 }
 0x517   :  { %v608_v29 = vpop.f32.mrb[8].mxu0 }
 0x518   :  { %v612_v52 = vadd.f32 %v608_v29, %v156_v38  ;;  %v17097_v56 = vpop.f32.mrb[9].mxu0  ;;  %v19269_v29 = vrot.slane %v735_v57, %v18979_v60 }
 0x519   :  { %v1127_v56 = vsel %vm1126_vm5, %v1118_v5, %v960_v54  ;;  %v19284_v5 = vrot.slane %v833_v25, %v18979_v60 }
 0x51a   :  { %v19243_v7 = vmax.f32 %v612_v52, 0.0  ;;  %v1016_v52 = vrot.slane %v799_v9, %v19179_v18  ;;  %v864_v9 = vcombine.high %v848_v10, %v848_v10  ;;  %v716_v10 = vcombine.high %v19176_v15, %v19176_v15 }
 0x51b   :  { %v21970_v15 = vmov 0.0|0.0  }
 0x51c   :  { %21968 = vst [vmem:[#allocation4_spill] sm:$0xff] %v19243_v7  ;;  %v868_v14 = vcombine.high %v19243_v7, %v19243_v7  ;;  %v875_v22 = vrot.slane %v19243_v7, %v18979_v60  ;;  %v1136_v7 = vsel %vm1135_vm6, %v1127_v56, %v1000_v19  ;;  %v944_v56 = vrot.slane %v717_v62, %v19179_v18 }
 0x51d   :  { %v1145_v54 = vsel %vm1144_vm7, %v1136_v7, %v1040_v23  ;;  %v1004_v7 = vrot.slane %v19277_v4, %v19179_v18  ;;  %v21969_v62 = vmov 0.0  }
 0x51e   :  { %v19263_v38 = vrot.slane %v868_v14, %v18979_v60  ;;  %v19266_v51 = vrot.slane %v875_v22, %v18979_v60  ;;  %v883_v35 = vcombine.high %v875_v22, %v875_v22  ;;  %v766_v14 = vcombine.high %v750_v31, %v750_v31 }
 0x51f   :  { %v1131_v22 = vsel %vm1126_vm5, %v1122_v8, %v976_v20  ;;  %v964_v8 = vrot.slane %v19269_v29, %v19179_v18 }
 0x520   :  { %v898_v0 = vrot.slane %v19263_v38, %v18979_v60  ;;  %v1080_v57 = vrot.slane %v19266_v51, %v19179_v18  ;;  %v1140_v41 = vsel %vm1135_vm6, %v1131_v22, %v1016_v52  ;;  %v19289_v31 = vrot.slane %v883_v35, %v18979_v60 }
 0x521   :  { %v1149_v20 = vsel %vm1144_vm7, %v1140_v41, %v1056_v39  ;;  %v660_v41 = vcombine.high %v19218_v53, %v19218_v53  ;;  %v984_v52 = vrot.slane %v766_v14, %v19179_v18  ;;  %v1119_v35 = vsel %vm1117_vm4, %v19227_v59, %v924_v63 }
 0x522   :  { %v1096_v21 = vrot.slane %v898_v0, %v19179_v18  ;;  %v19293_v19 = vsel %vm1153_vm8, %v1145_v54, %v1080_v57  ;;  %v914_v25 = vcombine.high %v898_v0, %v898_v0  ;;  %v1044_v0 = vrot.slane %v19284_v5, %v19179_v18 }
 0x523   :  { %17132 = vmatmul.mubr.msk.f32.vlgmr.msra.gmra.mrb[10].mxu0 %vm163_vm2, %v19293_v19  ;;  %v1024_v39 = vrot.slane %v815_v61, %v19179_v18  ;;  %v1084_v57 = vrot.slane %v19289_v31, %v19179_v18  ;;  %v765_v53 = vcombine.high %v19221_v13, %v19221_v13  ;;  %v1128_v14 = vsel %vm1126_vm5, %v1119_v35, %v964_v8 }
 0x524   :  { %v19304_v23 = vsel %vm1153_vm8, %v1149_v20, %v1096_v21  ;;  %18021 = vmatpush3.bf16.xpose.msk.msra.mxu0 %vm19015_vm3, %v19053_v26  ;;  %17138 = vmatprep.mubr.msk.f32.mxu0 %vm18726_vm1, %v21969_v62  ;;  %v1064_v22 = vrot.slane %v864_v9, %v19179_v18  ;;  %v1124_v61 = vsel %vm1117_vm4, %v660_v41, %v944_v56 }
 0x525   :  { %17160 = vmatmul.mubr.msk.f32.vlgmr.msra.gmra.mrb[26].mxu1 %vm163_vm2, %v19304_v23  ;;  %18022 = vmatprep.subr.bf16.mxu0 %v21970_v15  ;;  %v814_v63 = vcombine.high %v19234_v2, %v19234_v2  ;;  %v1137_v54 = vsel %vm1135_vm6, %v1128_v14, %v1004_v7  ;;  %v1104_v21 = vrot.slane %v914_v25, %v19179_v18 }
 0x526   :  { %18041 = vmatpush3.bf16.xpose.msk.msra.mxu1 %vm19015_vm3, %v19144_v58  ;;  %17173 = vmatprep.mubr.msk.f32.mxu1 %vm18726_vm1, %v21969_v62  ;;  %v1133_v13 = vsel %vm1126_vm5, %v1124_v61, %v984_v52  ;;  %v863_v8 = vcombine.high %v19241_v6, %v19241_v6  ;;  %v1146_v9 = vsel %vm1144_vm7, %v1137_v54, %v1044_v0 }
 0x527   :  { %17183 = vmatprep.subr.mxu1 %v21969_v62  ;;  %v928_v20 = vrot.slane %v716_v10, %v19179_v18  ;;  %v1142_v35 = vsel %vm1135_vm6, %v1133_v13, %v1024_v39  ;;  %v913_v56 = vcombine.high %v19266_v51, %v19266_v51  ;;  %v19350_v2 = vsel %vm1153_vm8, %v1146_v9, %v1084_v57 }
 0x528   :  { %v968_v7 = vrot.slane %v765_v53, %v19179_v18  ;;  %v1151_v25 = vsel %vm1144_vm7, %v1142_v35, %v1064_v22  ;;  %v659_v6 = vcombine.high %v19209_v40, %v19209_v40  ;;  %v1008_v41 = vrot.slane %v814_v63, %v19179_v18 }
 0x529   :  { %v19360_v10 = vsel %vm1153_vm8, %v1151_v25, %v1104_v21  ;;  %v1048_v51 = vrot.slane %v863_v8, %v19179_v18  ;;  %v718_v40 = vcombine.high %v19200_v37, %v19200_v37  ;;  %v1088_v0 = vrot.slane %v913_v56, %v19179_v18 }
 0x52a   :  { %v1120_v52 = vsel %vm1117_vm4, %v659_v6, %v928_v20  ;;  %v767_v39 = vcombine.high %v19269_v29, %v19269_v29  ;;  %v816_v53 = vcombine.high %v19277_v4, %v19277_v4  ;;  %v865_v14 = vcombine.high %v19284_v5, %v19284_v5 }
 0x52b   :  { %17139 = vmatmul.mubr.msk.f32.vlgmr.msra.gmra.mrb[12].mxu0 %vm163_vm2, %v19350_v2  ;;  %v1129_v57 = vsel %vm1126_vm5, %v1120_v52, %v968_v7  ;;  %v687_v29 = vcombine.high %v19167_v32, %v19167_v32  ;;  %v932_v22 = vrot.slane %v718_v40, %v19179_v18  ;;  %v915_v61 = vcombine.high %v19289_v31, %v19289_v31 }
 0x52c   :  { %18025 = vmatpush3.bf16.xpose.msk.msra.mxu0 %vm19015_vm3, %v19077_v12  ;;  %17145 = vmatprep.mubr.msk.f32.mxu0 %vm18726_vm1, %v21969_v62  ;;  %v1138_v37 = vsel %vm1135_vm6, %v1129_v57, %v1008_v41  ;;  %v736_v5 = vcombine.high %v19195_v28, %v19195_v28  ;;  %v972_v63 = vrot.slane %v767_v39, %v19179_v18 }
 0x52d   :  { %17174 = vmatmul.mubr.msk.f32.vlgmr.msra.gmra.mrb[28].mxu1 %vm163_vm2, %v19360_v10  ;;  %18026 = vmatprep.subr.bf16.mxu0 %v21970_v15  ;;  %v785_v32 = vcombine.high %v19214_v24, %v19214_v24  ;;  %v1012_v31 = vrot.slane %v816_v53, %v19179_v18  ;;  %v834_v28 = vcombine.high %v19224_v30, %v19224_v30 }
 0x52e   :  { %17184 = vmatpush3.msra.mxu1 %v18862_v27  ;;  %17185 = vmatprep.mubr.msk.f32.mxu1 %vm18726_vm1, %v21969_v62  ;;  %v1147_v27 = vsel %vm1144_vm7, %v1138_v37, %v1048_v51  ;;  %v1052_v54 = vrot.slane %v865_v14, %v19179_v18  ;;  %v715_v24 = vrot.slane %v687_v29, %v18979_v60 }
 0x52f   :  { %18062 = vmatprep.subr.bf16.mxu1 %v21970_v15  ;;  %v19396_v4 = vsel %vm1153_vm8, %v1147_v27, %v1088_v0  ;;  %v884_v21 = vcombine.high %v19263_v38, %v19263_v38  ;;  %v1092_v13 = vrot.slane %v915_v61, %v19179_v18  ;;  %v764_v30 = vrot.slane %v736_v5, %v18979_v60 }
 0x530   :  { %v813_v9 = vrot.slane %v785_v32, %v18979_v60  ;;  %v862_v35 = vrot.slane %v834_v28, %v18979_v60  ;;  %v940_v56 = vrot.slane %v715_v24, %v19179_v18  ;;  %v719_v51 = vcombine.high %v715_v24, %v715_v24 }
 0x531   :  { %17186 = vmatmul.mubr.msk.f32.vlgmr.msra.gmra.mrb[30].mxu1 %vm45_vm0, %v18896_v42  ;;  %v661_v42 = vcombine.high %v19227_v59, %v19227_v59  ;;  %v912_v7 = vrot.slane %v884_v21, %v18979_v60  ;;  %v768_v0 = vcombine.high %v764_v30, %v764_v30 }
 0x532   :  { %17188 = vmatprep.mubr.msk.f32.mxu1 %vm18726_vm1, %v21969_v62  ;;  %v1020_v41 = vrot.slane %v813_v9, %v19179_v18  ;;  %v817_v57 = vcombine.high %v813_v9, %v813_v9  ;;  %v866_v37 = vcombine.high %v862_v35, %v862_v35 }
 0x533   :  { %17146 = vmatmul.mubr.msk.f32.vlgmr.msra.gmra.mrb[14].mxu0 %vm163_vm2, %v19396_v4  ;;  %v1121_v59 = vsel %vm1117_vm4, %v661_v42, %v932_v22  ;;  %v1100_v52 = vrot.slane %v912_v7, %v19179_v18  ;;  %v916_v27 = vcombine.high %v912_v7, %v912_v7  ;;  %v988_v22 = vrot.slane %v768_v0, %v19179_v18 }
 0x534   :  { %18029 = vmatpush3.bf16.xpose.msk.msra.mxu0 %vm19015_vm3, %v19153_v3  ;;  %17152 = vmatprep.mubr.msk.f32.mxu0 %vm18726_vm1, %v21969_v62  ;;  %v1130_v8 = vsel %vm1126_vm5, %v1121_v59, %v972_v63  ;;  %v1028_v5 = vrot.slane %v817_v57, %v19179_v18 }
 0x535   :  { %17189 = vmatmul.mubr.msk.f32.gmra.mrb[32].mxu1 %vm45_vm0, %v18906_v43  ;;  %18034 = vmatprep.subr.bf16.mxu0 %v21970_v15  ;;  %v630_v43 = vcombine.high %v19188_v11, %v19188_v11  ;;  %v1139_v20 = vsel %vm1135_vm6, %v1130_v8, %v1012_v31  ;;  %v980_v11 = vrot.slane %v764_v30, %v19179_v18 }
 0x536   :  { %17191 = vmatprep.mubr.msk.f32.mxu1 %vm18726_vm1, %v21969_v62  ;;  %v1148_v38 = vsel %vm1144_vm7, %v1139_v20, %v1052_v54  ;;  %v1108_v42 = vrot.slane %v916_v27, %v19179_v18 }
 0x537   :  { %v19441_v25 = vsel %vm1153_vm8, %v1148_v38, %v1092_v13  ;;  %v658_v6 = vrot.slane %v630_v43, %v18979_v60 }
 0x539   :  { %17192 = vmatmul.mubr.msk.f32.gmra.mrb[34].mxu1 %vm45_vm0, %v18915_v44  ;;  %v1060_v44 = vrot.slane %v862_v35, %v19179_v18  ;;  %v1123_v40 = vsel %vm1117_vm4, %v658_v6, %v940_v56  ;;  %v662_v61 = vcombine.high %v658_v6, %v658_v6 }
 0x53a   :  { %17194 = vmatprep.mubr.msk.f32.mxu1 %vm18726_vm1, %v21969_v62  ;;  %v1132_v39 = vsel %vm1126_vm5, %v1123_v40, %v980_v11 }
 0x53b   :  { %17153 = vmatmul.mubr.msk.f32.vlgmr.msra.gmra.mrb[16].mxu0 %vm163_vm2, %v19441_v25  ;;  %v1141_v53 = vsel %vm1135_vm6, %v1132_v39, %v1020_v41 }
 0x53c   :  { %18037 = vmatpush3.bf16.xpose.msk.msra.mxu0 %vm19015_vm3, %v19157_v1  ;;  %17166 = vmatprep.mubr.msk.f32.mxu0 %vm18726_vm1, %v21969_v62  ;;  %v1150_v14 = vsel %vm1144_vm7, %v1141_v53, %v1060_v44 }
 0x53d   :  { %17195 = vmatmul.mubr.msk.f32.gmra.mrb[36].mxu1 %vm45_vm0, %v18924_v45  ;;  %18042 = vmatprep.subr.bf16.mxu0 %v21970_v15  ;;  %v948_v45 = vrot.slane %v719_v51, %v19179_v18  ;;  %v19470_v29 = vsel %vm1153_vm8, %v1150_v14, %v1100_v52 }
 0x53e   :  { %17197 = vmatprep.mubr.msk.f32.mxu1 %vm18726_vm1, %v21969_v62 }
 0x53f   :  { %v1125_v63 = vsel %vm1117_vm4, %v662_v61, %v948_v45  ;;  %vm10087_vm4 = vcmp.gt.s32.totalorder %v18975_v55, 3 }
 0x540   :  { %v1134_v32 = vsel %vm1126_vm5, %v1125_v63, %v988_v22  ;;  %vm12465_vm5 = vcmp.gt.s32.totalorder %v18975_v55, 4 }
 0x541   :  { %17198 = vmatmul.mubr.msk.f32.gmra.mrb[38].mxu1 %vm45_vm0, %v18933_v46  ;;  %v1068_v46 = vrot.slane %v866_v37, %v19179_v18  ;;  %v1143_v31 = vsel %vm1135_vm6, %v1134_v32, %v1028_v5 }
 0x542   :  { %17200 = vmatprep.mubr.msk.f32.mxu1 %vm18726_vm1, %v21969_v62 }
 0x543   :  { %17167 = vmatmul.mubr.msk.f32.vlgmr.msra.gmra.mrb[18].mxu0 %vm163_vm2, %v19470_v29  ;;  %v1152_v28 = vsel %vm1144_vm7, %v1143_v31, %v1068_v46 }
 0x544   :  { %18045 = vmatpush3.bf16.xpose.msk.msra.mxu0 %vm19015_vm3, %v19160_v33  ;;  %17180 = vmatprep.mubr.msk.f32.mxu0 %vm18726_vm1, %v21969_v62 }
 0x545   :  { %17201 = vmatmul.mubr.msk.f32.gmra.mrb[40].mxu1 %vm45_vm0, %v18942_v47  ;;  %18046 = vmatprep.subr.bf16.mxu0 %v21970_v15  ;;  %v19497_v47 = vsel %vm1153_vm8, %v1152_v28, %v1108_v42 }
 0x546   :  { %17203 = vmatprep.mubr.msk.f32.mxu1 %vm18726_vm1, %v21969_v62 }
 0x549   :  { %17204 = vmatmul.mubr.msk.f32.gmra.mrb[42].mxu1 %vm45_vm0, %v18951_v48 }
 0x54a   :  { %17206 = vmatprep.mubr.msk.f32.mxu1 %vm18726_vm1, %v21969_v62 }
 0x54b   :  { %17181 = vmatmul.mubr.msk.f32.vlgmr.msra.gmra.mrb[20].mxu0 %vm163_vm2, %v19497_v47 }
 0x54c   :  { %17216 = vmatprep.mubr.msk.f32.mxu0 %vm18726_vm1, %v21969_v62 }
 0x54d   :  { %17207 = vmatmul.mubr.msk.f32.gmra.mrb[44].mxu1 %vm45_vm0, %v18960_v49 }
 0x54e   :  { %17209 = vmatprep.mubr.msk.f32.mxu1 %vm18726_vm1, %v21969_v62 }
 0x551   :  { %17210 = vmatmul.mubr.msk.f32.gmra.mrb[46].mxu1 %vm45_vm0, %v18969_v50 }
 0x552   :  { %17244 = vmatprep.mubr.msk.f32.mxu1 %vm18726_vm1, %v21969_v62 }
 0x5f6   :  { %v19513_v48 = vpop.f32.mrb[10].mxu0 }
 0x5f7   :  { %v17133_v18 = vpop.f32.mrb[11].mxu0 }
 0x5f8   :  { %v19515_v54 = vpop.f32.mrb[26].mxu1 }
 0x5f9   :  { %v17161_v24 = vpop.f32.mrb[27].mxu1 }
 0x5fe   :  { %v19517_v59 = vpop.f32.mrb[12].mxu0 }
 0x5ff   :  { %v17140_v21 = vpop.f32.mrb[13].mxu0 }
 0x600   :  { %v19519_v13 = vpop.f32.mrb[28].mxu1 }
 0x601   :  { %v17175_v49 = vpop.f32.mrb[29].mxu1 }
 0x604   :  { %v3052_v30 = vpop.f32.mrb[30].mxu1 }
 0x605   :  { %v3105_v8 = vcombine.high %v3052_v30, %v3052_v30  ;;  %v3112_v43 = vrot.slane %v3052_v30, %v18979_v60  ;;  %v17187_v50 = vpop.f32.mrb[31].mxu1 }
 0x606   :  { %v19522_v9 = vpop.f32.mrb[14].mxu0 }
 0x607   :  { %v3119_v20 = vrot.slane %v3105_v8, %v18979_v60  ;;  %v3120_v35 = vcombine.high %v3112_v43, %v3112_v43  ;;  %v17147_v38 = vpop.f32.mrb[15].mxu0  ;;  %v3128_v11 = vrot.slane %v3112_v43, %v18979_v60 }
 0x608   :  { %v3057_v56 = vpop.f32.mrb[32].mxu1 }
 0x609   :  { %v3121_v7 = vcombine.high %v3119_v20, %v3119_v20  ;;  %v3142_v6 = vrot.slane %v3120_v35, %v18979_v60  ;;  %v3154_v41 = vcombine.high %v3057_v56, %v3057_v56  ;;  %v17190_v44 = vpop.f32.mrb[33].mxu1  ;;  %v3135_v51 = vrot.slane %v3119_v20, %v18979_v60 }
 0x60a   :  { %v3161_v40 = vrot.slane %v3057_v56, %v18979_v60 }
 0x60b   :  { %v3149_v52 = vrot.slane %v3121_v7, %v18979_v60  ;;  %v3546_v0 = vcombine.low %v3128_v11, %v3142_v6  ;;  %v16271_v39 = vcombine.high %v3128_v11, %v3142_v6  ;;  %v3168_v57 = vrot.slane %v3154_v41, %v18979_v60 }
 0x60c   :  { %v3169_v53 = vcombine.high %v3161_v40, %v3161_v40  ;;  %v3177_v37 = vrot.slane %v3161_v40, %v18979_v60  ;;  %v3062_v14 = vpop.f32.mrb[34].mxu1 }
 0x60d   :  { %v3548_v45 = vcombine.low %v3135_v51, %v3149_v52  ;;  %v16272_v27 = vcombine.high %v3135_v51, %v3149_v52  ;;  %v3556_v22 = vrot.slane %v3546_v0, %v18979_v60  ;;  %v3563_v61 = vrot.slane %v16271_v39, %v18979_v60  ;;  %v17193_v5 = vpop.f32.mrb[35].mxu1 }
 0x60e   :  { %v3170_v46 = vcombine.high %v3168_v57, %v3168_v57  ;;  %v3184_v63 = vrot.slane %v3168_v57, %v18979_v60  ;;  %v3191_v42 = vrot.slane %v3169_v53, %v18979_v60  ;;  %v3199_v32 = vcombine.high %v3177_v37, %v3177_v37  ;;  %v19536_v31 = vpop.f32.mrb[16].mxu0 }
 0x60f   :  { %v3570_v28 = vrot.slane %v3548_v45, %v18979_v60  ;;  %v3577_v18 = vrot.slane %v16272_v27, %v18979_v60  ;;  %v3578_v24 = vcombine.low %v3556_v22, %v3563_v61  ;;  %v3601_v21 = vrot.slane %v3177_v37, %v18979_v60  ;;  %v17154_v49 = vpop.f32.mrb[17].mxu0 }
 0x610   :  { %v3198_v30 = vrot.slane %v3170_v46, %v18979_v60  ;;  %v3200_v8 = vcombine.high %v3184_v63, %v3184_v63  ;;  %v3201_v43 = vcombine.high %v3191_v42, %v3191_v42  ;;  %v3683_v50 = vcombine.low %v3191_v42, %v3199_v32  ;;  %v3067_v20 = vpop.f32.mrb[36].mxu1 }
 0x611   :  { %v3579_v35 = vcombine.low %v3570_v28, %v3577_v18  ;;  %v3203_v38 = vcombine.high %v3062_v14, %v3062_v14  ;;  %v17196_v56 = vpop.f32.mrb[37].mxu1  ;;  %v3586_v7 = vrot.slane %v3578_v24, %v18979_v60  ;;  %v3608_v11 = vrot.slane %v3601_v21, %v18979_v60 }
 0x612   :  { %v3684_v6 = vcombine.low %v3201_v43, %v3184_v63  ;;  %v3202_v41 = vcombine.high %v3198_v30, %v3198_v30  ;;  %v3210_v51 = vrot.slane %v3062_v14, %v18979_v60  ;;  %v3252_v52 = vcombine.high %v3067_v20, %v3067_v20 }
 0x613   :  { %v3593_v44 = vrot.slane %v3579_v35, %v18979_v60  ;;  %v3217_v40 = vrot.slane %v3203_v38, %v18979_v60  ;;  %v3685_v0 = vcombine.low %v3198_v30, %v3200_v8  ;;  %v3693_v39 = vrot.slane %v3683_v50, %v18979_v60 }
 0x614   :  { %v3700_v57 = vrot.slane %v3684_v6, %v18979_v60  ;;  %v3259_v53 = vrot.slane %v3067_v20, %v18979_v60  ;;  %v3072_v37 = vpop.f32.mrb[38].mxu1  ;;  %v3218_v27 = vcombine.high %v3210_v51, %v3210_v51  ;;  %v3226_v61 = vrot.slane %v3210_v51, %v18979_v60 }
 0x615   :  { %v3594_v45 = vcombine.low %v3586_v7, %v3593_v44  ;;  %v3219_v22 = vcombine.high %v3217_v40, %v3217_v40  ;;  %v17199_v5 = vpop.f32.mrb[39].mxu1  ;;  %v3233_v14 = vrot.slane %v3217_v40, %v18979_v60  ;;  %v3266_v63 = vrot.slane %v3252_v52, %v18979_v60 }
 0x616   :  { %v3715_v46 = vcombine.low %v3693_v39, %v3700_v57  ;;  %v3267_v42 = vcombine.high %v3259_v53, %v3259_v53  ;;  %v19553_v32 = vpop.f32.mrb[18].mxu0  ;;  %v3240_v18 = vrot.slane %v3218_v27, %v18979_v60  ;;  %v3686_v21 = vcombine.low %v3202_v41, %v3226_v61 }
 0x617   :  { %v19555_v28 = vpack.c.bf16 %v3608_v11, %v3594_v45  ;;  %v3247_v24 = vrot.slane %v3219_v22, %v18979_v60  ;;  %v17168_v49 = vpop.f32.mrb[19].mxu0  ;;  %v3707_v30 = vrot.slane %v3685_v0, %v18979_v60  ;;  %v3268_v8 = vcombine.high %v3266_v63, %v3266_v63 }
 0x618   :  { %v3275_v43 = vrot.slane %v3259_v53, %v18979_v60  ;;  %v3282_v50 = vrot.slane %v3266_v63, %v18979_v60  ;;  %v3077_v20 = vpop.f32.mrb[40].mxu1  ;;  %v3714_v35 = vrot.slane %v3686_v21, %v18979_v60  ;;  %v3738_v38 = vrot.slane %v3240_v18, %v18979_v60 }
 0x619   :  { %v16279_v56 = vcombine.high %v3226_v61, %v3240_v18  ;;  %v3821_v7 = vcombine.low %v3233_v14, %v3247_v24  ;;  %v17202_v11 = vpop.f32.mrb[41].mxu1  ;;  %18049 = vmatpush3.bf16.xpose.msk.msra.mxu0 %vm19015_vm3, %v19555_v28  ;;  %v16280_v6 = vcombine.high %v3233_v14, %v3247_v24  ;;  %v3289_v41 = vrot.slane %v3267_v42, %v18979_v60 }
 0x61a   :  { %v3296_v44 = vrot.slane %v3268_v8, %v18979_v60  ;;  %v3297_v51 = vcombine.high %v3275_v43, %v3275_v43  ;;  %18050 = vmatprep.subr.bf16.mxu0 %v21970_v15  ;;  %v3723_v40 = vrot.slane %v3715_v46, %v18979_v60  ;;  %v3716_v52 = vcombine.low %v3707_v30, %v3714_v35 }
 0x61b   :  { %v3830_v0 = vrot.slane %v16279_v56, %v18979_v60  ;;  %v3837_v39 = vrot.slane %v3821_v7, %v18979_v60  ;;  %v3745_v57 = vrot.slane %v3738_v38, %v18979_v60  ;;  %v3298_v53 = vcombine.high %v3282_v50, %v3282_v50 }
 0x61c   :  { %v3299_v45 = vcombine.high %v3289_v41, %v3289_v41  ;;  %v3823_v27 = vcombine.low %v3275_v43, %v3289_v41  ;;  %v19574_v22 = vpop.f32.mrb[42].mxu1  ;;  %v3730_v61 = vrot.slane %v3716_v52, %v18979_v60  ;;  %v3844_v5 = vrot.slane %v16280_v6, %v18979_v60 }
 0x61d   :  { %v3852_v14 = vcombine.low %v3830_v0, %v3837_v39  ;;  %v3875_v63 = vrot.slane %v3297_v51, %v18979_v60  ;;  %v17205_v46 = vpop.f32.mrb[43].mxu1  ;;  %v3958_v24 = vcombine.low %v3296_v44, %v3298_v53  ;;  %v3301_v21 = vcombine.high %v3072_v37, %v3072_v37 }
 0x61e   :  { %v3851_v42 = vrot.slane %v3823_v27, %v18979_v60  ;;  %v3957_v18 = vcombine.low %v3299_v45, %v3282_v50  ;;  %v19580_v49 = vpop.f32.mrb[20].mxu0  ;;  %v3731_v30 = vcombine.low %v3723_v40, %v3730_v61  ;;  %v3300_v43 = vcombine.high %v3296_v44, %v3296_v44 }
 0x61f   :  { %v3860_v8 = vrot.slane %v3852_v14, %v18979_v60  ;;  %v3308_v35 = vrot.slane %v3072_v37, %v18979_v60  ;;  %v17182_v38 = vpop.f32.mrb[21].mxu0  ;;  %v3974_v11 = vrot.slane %v3958_v24, %v18979_v60  ;;  %v3315_v6 = vrot.slane %v3301_v21, %v18979_v60 }
 0x620   :  { %v3853_v56 = vcombine.low %v3844_v5, %v3851_v42  ;;  %v3967_v7 = vrot.slane %v3957_v18, %v18979_v60  ;;  %v19587_v41 = vpop.f32.mrb[44].mxu1  ;;  %17217 = vmatmul.mubr.msk.f32.vlgmr.msra.gmra.mrb[22].mxu0 %vm163_vm2, %v19293_v19  ;;  %v19591_v50 = vpack.c.bf16 %v3745_v57, %v3731_v30  ;;  %v3350_v40 = vcombine.high %v3077_v20, %v3077_v20 }
 0x621   :  { %v3316_v51 = vcombine.high %v3308_v35, %v3308_v35  ;;  %v3324_v44 = vrot.slane %v3308_v35, %v18979_v60  ;;  %v17208_v37 = vpop.f32.mrb[45].mxu1  ;;  %17223 = vmatprep.mubr.msk.f32.mxu0 %vm18726_vm1, %v21969_v62  ;;  %v3882_v0 = vrot.slane %v3875_v63, %v18979_v60  ;;  %v3317_v53 = vcombine.high %v3315_v6, %v3315_v6 }
 0x622   :  { %v3867_v52 = vrot.slane %v3853_v56, %v18979_v60  ;;  %v3989_v39 = vcombine.low %v3967_v7, %v3974_v11  ;;  %v3357_v57 = vrot.slane %v3077_v20, %v18979_v60  ;;  %18053 = vmatpush3.bf16.xpose.msk.msra.mxu0 %vm19015_vm3, %v19591_v50  ;;  %v3331_v14 = vrot.slane %v3315_v6, %v18979_v60 }
 0x623   :  { %v3338_v45 = vrot.slane %v3316_v51, %v18979_v60  ;;  %v3346_v27 = vcombine.high %v3324_v44, %v3324_v44  ;;  %v3959_v61 = vcombine.low %v3300_v43, %v3324_v44  ;;  %v3345_v46 = vrot.slane %v3317_v53, %v18979_v60  ;;  %18054 = vmatprep.subr.bf16.mxu0 %v21970_v15 }
 0x624   :  { %v3868_v5 = vcombine.low %v3860_v8, %v3867_v52  ;;  %v3364_v42 = vrot.slane %v3350_v40, %v18979_v60  ;;  %v19606_v63 = vpop.f32.mrb[46].mxu1  ;;  %v3365_v20 = vcombine.high %v3357_v57, %v3357_v57  ;;  %v3373_v11 = vrot.slane %v3357_v57, %v18979_v60 }
 0x625   :  { %v3348_v18 = vcombine.high %v3338_v45, %v3338_v45  ;;  %v3960_v24 = vcombine.low %v3338_v45, %v3346_v27  ;;  %v3981_v21 = vrot.slane %v3959_v61, %v18979_v60  ;;  %v17211_v30 = vpop.f32.mrb[47].mxu1  ;;  %v4094_v35 = vcombine.low %v3331_v14, %v3345_v46 }
 0x626   :  { %v19610_v43 = vpack.c.bf16 %v3882_v0, %v3868_v5  ;;  %v16287_v8 = vcombine.high %v3331_v14, %v3345_v46  ;;  %v3366_v38 = vcombine.high %v3364_v42, %v3364_v42  ;;  %v3380_v6 = vrot.slane %v3364_v42, %v18979_v60 }
 0x627   :  { %v3988_v56 = vrot.slane %v3960_v24, %v18979_v60  ;;  %v19614_v7 = vrot.slane %v3348_v18, %v18979_v60  ;;  %v4104_v51 = vrot.slane %v4094_v35, %v18979_v60  ;;  %v3387_v40 = vrot.slane %v3365_v20, %v18979_v60 }
 0x628   :  { %v4111_v44 = vrot.slane %v16287_v8, %v18979_v60  ;;  %v3394_v37 = vrot.slane %v3366_v38, %v18979_v60  ;;  %v3997_v52 = vrot.slane %v3989_v39, %v18979_v60  ;;  %v3396_v53 = vcombine.high %v3380_v6, %v3380_v6 }
 0x629   :  { %v3990_v0 = vcombine.low %v3981_v21, %v3988_v56  ;;  %v4149_v45 = vrot.slane %v3380_v6, %v18979_v60  ;;  %v4019_v27 = vrot.slane %v19614_v7, %v18979_v60  ;;  %v4096_v57 = vcombine.low %v3373_v11, %v3387_v40  ;;  %17224 = vmatmul.mubr.msk.f32.vlgmr.msra.gmra.mrb[24].mxu0 %vm163_vm2, %v19350_v2 }
 0x62a   :  { %v4126_v61 = vcombine.low %v4104_v51, %v4111_v44  ;;  %v16288_v5 = vcombine.high %v3373_v11, %v3387_v40  ;;  %v4231_v46 = vcombine.low %v3394_v37, %v3396_v53  ;;  %v3398_v42 = vcombine.high %v3394_v37, %v3394_v37  ;;  %18057 = vmatpush3.bf16.xpose.msk.msra.mxu0 %vm19015_vm3, %v19610_v43 }
 0x62b   :  { %v4004_v14 = vrot.slane %v3990_v0, %v18979_v60  ;;  %v3399_v39 = vcombine.high %v19574_v22, %v19574_v22  ;;  %v4118_v18 = vrot.slane %v4096_v57, %v18979_v60  ;;  %v4156_v21 = vrot.slane %v4149_v45, %v18979_v60  ;;  %17230 = vmatprep.mubr.msk.f32.mxu0 %vm18726_vm1, %v21969_v62 }
 0x62c   :  { %v4125_v24 = vrot.slane %v16288_v5, %v18979_v60  ;;  %v3406_v20 = vrot.slane %v19574_v22, %v18979_v60  ;;  %v4134_v35 = vrot.slane %v4126_v61, %v18979_v60  ;;  %v3448_v38 = vcombine.high %v19587_v41, %v19587_v41  ;;  %18058 = vmatprep.subr.bf16.mxu0 %v21970_v15 }
 0x62d   :  { %v19641_v30 = vcombine.low %v3997_v52, %v4004_v14  ;;  %v3413_v8 = vrot.slane %v3399_v39, %v18979_v60  ;;  %v3455_v22 = vrot.slane %v19587_v41, %v18979_v60  ;;  %v4241_v40 = vrot.slane %v4231_v46, %v18979_v60 }
 0x62e   :  { %v4127_v56 = vcombine.low %v4118_v18, %v4125_v24  ;;  %v3414_v11 = vcombine.high %v3406_v20, %v3406_v20  ;;  %v3422_v6 = vrot.slane %v3406_v20, %v18979_v60  ;;  %v3462_v37 = vrot.slane %v3448_v38, %v18979_v60 }
 0x62f   :  { %v3415_v51 = vcombine.high %v3413_v8, %v3413_v8  ;;  %v3429_v44 = vrot.slane %v3413_v8, %v18979_v60  ;;  %v3463_v57 = vcombine.high %v3455_v22, %v3455_v22  ;;  %v3497_v41 = vcombine.high %v19606_v63, %v19606_v63 }
 0x630   :  { %v4141_v52 = vrot.slane %v4127_v56, %v18979_v60  ;;  %v3436_v0 = vrot.slane %v3414_v11, %v18979_v60  ;;  %v3444_v53 = vcombine.high %v3422_v6, %v3422_v6  ;;  %v4232_v45 = vcombine.low %v3398_v42, %v3422_v6 }
 0x631   :  { %v3443_v61 = vrot.slane %v3415_v51, %v18979_v60  ;;  %v3464_v5 = vcombine.high %v3462_v37, %v3462_v37  ;;  %17231 = vmatmul.mubr.msk.f32.vlgmr.msra.gmra.mrb[26].mxu0 %vm163_vm2, %v19396_v4  ;;  %v3478_v42 = vrot.slane %v3462_v37, %v18979_v60  ;;  %v3485_v8 = vrot.slane %v3463_v57, %v18979_v60 }
 0x632   :  { %v4142_v14 = vcombine.low %v4134_v35, %v4141_v52  ;;  %v3446_v39 = vcombine.high %v3436_v0, %v3436_v0  ;;  %v4233_v18 = vcombine.low %v3436_v0, %v3444_v53  ;;  %v4248_v46 = vrot.slane %v4232_v45, %v18979_v60  ;;  %17237 = vmatprep.mubr.msk.f32.mxu0 %vm18726_vm1, %v21969_v62 }
 0x633   :  { %v4286_v24 = vrot.slane %v3443_v61, %v18979_v60  ;;  %v16295_v20 = vcombine.high %v3429_v44, %v3443_v61  ;;  %v3471_v11 = vrot.slane %v3455_v22, %v18979_v60  ;;  %v3492_v52 = vrot.slane %v3464_v5, %v18979_v60 }
 0x634   :  { %v19667_v38 = vpack.c.bf16 %v4156_v21, %v4142_v14  ;;  %v4234_v35 = vcombine.low %v3446_v39, %v3429_v44  ;;  %v4263_v56 = vcombine.low %v4241_v40, %v4248_v46  ;;  %v4255_v6 = vrot.slane %v4233_v18, %v18979_v60 }
 0x635   :  { %v4293_v51 = vrot.slane %v4286_v24, %v18979_v60  ;;  %v3494_v0 = vcombine.high %v3478_v42, %v3478_v42  ;;  %v4378_v53 = vrot.slane %v16295_v20, %v18979_v60  ;;  %v4369_v45 = vcombine.low %v3471_v11, %v3485_v8 }
 0x636   :  { %v4262_v37 = vrot.slane %v4234_v35, %v18979_v60  ;;  %v16296_v61 = vcombine.high %v3471_v11, %v3485_v8  ;;  %18065 = vmatpush3.bf16.xpose.msk.msra.mxu1 %vm19015_vm3, %v19667_v38  ;;  %v4271_v21 = vrot.slane %v4263_v56, %v18979_v60  ;;  %v4371_v22 = vcombine.low %v3478_v42, %v3492_v52 }
 0x637   :  { %v3496_v44 = vcombine.high %v3492_v52, %v3492_v52  ;;  %v3504_v40 = vrot.slane %v19606_v63, %v18979_v60  ;;  %18070 = vmatprep.subr.bf16.mxu1 %v21970_v15  ;;  %v4385_v5 = vrot.slane %v4369_v45, %v18979_v60  ;;  %v4423_v14 = vrot.slane %v3494_v0, %v18979_v60 }
 0x638   :  { %v4264_v57 = vcombine.low %v4255_v6, %v4262_v37  ;;  %v3511_v39 = vrot.slane %v3497_v41, %v18979_v60  ;;  %v4392_v18 = vrot.slane %v16296_v61, %v18979_v60  ;;  %v4399_v46 = vrot.slane %v4371_v22, %v18979_v60 }
 0x639   :  { %v3512_v24 = vcombine.high %v3504_v40, %v3504_v40  ;;  %v3520_v20 = vrot.slane %v3504_v40, %v18979_v60  ;;  %v4400_v8 = vcombine.low %v4378_v53, %v4385_v5 }
 0x63a   :  { %v4278_v42 = vrot.slane %v4264_v57, %v18979_v60  ;;  %v3513_v63 = vcombine.high %v3511_v39, %v3511_v39  ;;  %v3527_v35 = vrot.slane %v3511_v39, %v18979_v60  ;;  %v4401_v56 = vcombine.low %v4392_v18, %v4399_v46 }
 0x63b   :  { %v3534_v11 = vrot.slane %v3512_v24, %v18979_v60  ;;  %v3542_v6 = vcombine.high %v3520_v20, %v3520_v20  ;;  %v4505_v52 = vcombine.low %v3496_v44, %v3520_v20  ;;  %v4408_v41 = vrot.slane %v4400_v8, %v18979_v60 }
 0x63c   :  { %v4279_v0 = vcombine.low %v4271_v21, %v4278_v42  ;;  %v3541_v37 = vrot.slane %v3513_v63, %v18979_v60  ;;  %v3543_v45 = vcombine.high %v3527_v35, %v3527_v35  ;;  %v4415_v61 = vrot.slane %v4401_v56, %v18979_v60 }
 0x63d   :  { %v3544_v22 = vcombine.high %v3534_v11, %v3534_v11  ;;  %v4506_v40 = vcombine.low %v3534_v11, %v3542_v6  ;;  %v4515_v53 = vrot.slane %v4505_v52, %v18979_v60  ;;  %17245 = vmatmul.mubr.msk.f32.vlgmr.msra.gmra.mrb[48].mxu1 %vm163_vm2, %v19304_v23  ;;  %v19701_v21 = vpack.c.bf16 %v4019_v27, %v19641_v30 }
 0x63e   :  { %v3545_v57 = vcombine.high %v3541_v37, %v3541_v37  ;;  %v4508_v5 = vcombine.low %v3541_v37, %v3543_v45  ;;  %v19703_v44 = vpack.c.bf16 %v4293_v51, %v4279_v0  ;;  %17258 = vmatprep.mubr.msk.f32.mxu1 %vm18726_vm1, %v21969_v62  ;;  %v4416_v39 = vcombine.low %v4408_v41, %v4415_v61 }
 0x63f   :  { %v4430_v18 = vrot.slane %v4423_v14, %v18979_v60  ;;  %v4507_v46 = vcombine.low %v3544_v22, %v3527_v35  ;;  %v4522_v24 = vrot.slane %v4506_v40, %v18979_v60  ;;  %18061 = vmatpush3.bf16.xpose.msk.msra.mxu0 %vm19015_vm3, %v19701_v21  ;;  %v2893_v40 = vsel %vm2880_vm11, %v19515_v54, -inf }
 0x640   :  { %v4536_v20 = vrot.slane %v4508_v5, %v18979_v60  ;;  %v4560_v30 = vrot.slane %v3545_v57, %v18979_v60  ;;  %18066 = vmatprep.subr.bf16.mxu0 %v21970_v15 }
 0x641   :  { %v4529_v7 = vrot.slane %v4507_v46, %v18979_v60  ;;  %v4537_v27 = vcombine.low %v4515_v53, %v4522_v24  ;;  %v19715_v51 = vpack.c.bf16 %v4430_v18, %v4416_v39  ;;  %v2887_v24 = vsel %vm2880_vm11, %v19522_v9, -inf }
 0x642   :  { %v4567_v63 = vrot.slane %v4560_v30, %v18979_v60 }
 0x643   :  { %v4538_v42 = vcombine.low %v4529_v7, %v4536_v20  ;;  %18073 = vmatpush3.bf16.xpose.msk.msra.mxu1 %vm19015_vm3, %v19715_v51  ;;  %v4545_v14 = vrot.slane %v4537_v27, %v18979_v60  ;;  %v2899_v7 = vsel %vm2880_vm11, %v19519_v13, -inf }
 0x644   :  { %18078 = vmatprep.subr.bf16.mxu1 %v21970_v15 }
 0x645   :  { %v4552_v8 = vrot.slane %v4538_v42, %v18979_v60 }
 0x646   :  { %17238 = vmatmul.mubr.msk.f32.vlgmr.msra.gmra.mrb[28].mxu0 %vm163_vm2, %v19441_v25 }
 0x647   :  { %v4553_v35 = vcombine.low %v4545_v14, %v4552_v8  ;;  %18069 = vmatpush3.bf16.xpose.msk.msra.mxu0 %vm19015_vm3, %v19703_v44  ;;  %17251 = vmatprep.mubr.msk.f32.mxu0 %vm18726_vm1, %v21969_v62 }
 0x648   :  { %18074 = vmatprep.subr.bf16.mxu0 %v21970_v15 }
 0x649   :  { %v19738_v11 = vpack.c.bf16 %v4567_v63, %v4553_v35 }
 0x64a   :  { %17259 = vmatmul.mubr.msk.f32.vlgmr.msra.gmra.mrb[50].mxu1 %vm163_vm2, %v19360_v10 }
 0x64b   :  { %18081 = vmatpush3.bf16.msk.msra.mxu1 %vm19731_vm10, %v19555_v28  ;;  %17272 = vmatprep.mubr.msk.f32.mxu1 %vm18726_vm1, %v21969_v62 }
 0x64c   :  { %18082 = vmatprep.subr.bf16.mxu1 %v21970_v15 }
 0x64e   :  { %17252 = vmatmul.mubr.msk.f32.vlgmr.msra.gmra.mrb[30].mxu0 %vm163_vm2, %v19470_v29 }
 0x64f   :  { %18077 = vmatpush3.bf16.xpose.msk.msra.mxu0 %vm19015_vm3, %v19738_v11  ;;  %17265 = vmatprep.mubr.msk.f32.mxu0 %vm18726_vm1, %v21969_v62 }
 0x650   :  { %18086 = vmatprep.subr.bf16.mxu0 %v21970_v15 }
 0x656   :  { %17266 = vmatmul.mubr.msk.f32.vlgmr.msra.gmra.mrb[32].mxu0 %vm163_vm2, %v19497_v47 }
 0x657   :  { %18089 = vmatpush3.bf16.msk.msra.mxu0 %vm19731_vm10, %v19610_v43  ;;  %17286 = vmatprep.mubr.msk.f32.mxu0 %vm18726_vm1, %v21969_v62 }
 0x658   :  { %18094 = vmatprep.subr.bf16.mxu0 %v21970_v15 }
 0x6f3   :  { %v19764_v28 = vpop.f32.mrb[22].mxu0 }
 0x6f4   :  { %v17218_v6 = vpop.f32.mrb[23].mxu0 }
 0x6fc   :  { %v19766_v52 = vpop.f32.mrb[24].mxu0 }
 0x6fd   :  { %v17225_v0 = vpop.f32.mrb[25].mxu0 }
 0x704   :  { %v3953_v41 = vpop.f32.mrb[26].mxu0 }
 0x705   :  { %v17232_v37 = vpop.f32.mrb[27].mxu0  ;;  %v4648_v45 = vsel %vm2880_vm11, %v3953_v41, -inf }
 0x706   :  { %4649 = vmax.xlane.f32.xlu0 %v4648_v45 }
 0x710   :  { %v4227_v61 = vpop.f32.mrb[48].mxu1 }
 0x711   :  { %v17246_v22 = vpop.f32.mrb[49].mxu1  ;;  %v4654_v43 = vsel %vm2880_vm11, %v4227_v61, -inf }
 0x712   :  { %4655 = vmax.xlane.f32.xlu0 %v4654_v43 }
 0x716   :  { %2894 = vmax.xlane.f32.xlu0 %v2893_v40 }
 0x719   :  { %v19772_v53 = vpop.f32.mrb[28].mxu0 }
 0x71a   :  { %v17239_v57 = vpop.f32.mrb[29].mxu0 }
 0x71d   :  { %v4501_v5 = vpop.f32.mrb[50].mxu1 }
 0x71e   :  { %v17260_v39 = vpop.f32.mrb[51].mxu1  ;;  %v4660_v18 = vsel %vm2880_vm11, %v4501_v5, -inf }
 0x71f   :  { %4661 = vmax.xlane.f32.xlu1 %v4660_v18 }
 0x721   :  { %v19775_v46 = vpop.f32.mrb[30].mxu0 }
 0x722   :  { %v17253_v20 = vpop.f32.mrb[31].mxu0 }
 0x723   :  { %2888 = vmax.xlane.f32.xlu1 %v2887_v24 }
 0x727   :  { %2900 = vmax.xlane.f32.xlu1 %v2899_v7 }
 0x729   :  { %v19781_v27 = vpop.f32.mrb[32].mxu0 }
 0x72a   :  { %v17267_v30 = vpop.f32.mrb[33].mxu0 }
 0x793   :  { %v4650_v42 = vpop.xlane.xlu0 %4649 }
 0x794   :  { %v4668_v14 = vsub.f32 %v3953_v41, %v4650_v42 }
 0x796   :  { %v4678_v8 = vmul.f32 1.442695, %v4668_v14 }
 0x798   :  { %18506 = vpow2.f32 %v4678_v8 }
 0x79f   :  { %v4656_v63 = vpop.xlane.xlu0 %4655 }
 0x7a0   :  { %v4670_v35 = vsub.f32 %v4227_v61, %v4656_v63 }
 0x7a2   :  { %v4682_v6 = vmul.f32 1.442695, %v4670_v35  ;;  %v18507_v0 = vpop.eup %18506  ;;  %v4642_v35 = vsel %vm2880_vm11, %v19764_v28, -inf }
 0x7a3   :  { %v4696_v37 = vsel %vm2880_vm11, %v18507_v0, 0.0  ;;  %v2895_v45 = vpop.xlane.xlu0 %2894 }
 0x7a4   :  { %18508 = vpow2.f32 %v4682_v6  ;;  %4697 = vadd.xlane.f32.xlu0 %v4696_v37  ;;  %v2909_v22 = vsub.f32 %v19515_v54, %v2895_v45  ;;  %v4651_v37 = vsel %vm2880_vm11, %v19772_v53, -inf  ;;  %v4645_v45 = vsel %vm2880_vm11, %v19766_v52, -inf }
 0x7a6   :  { %v2921_v39 = vmul.f32 1.442695, %v2909_v22  ;;  %v4663_v22 = vsel %vm2880_vm11, %v19781_v27, -inf }
 0x7ac   :  { %v4662_v43 = vpop.xlane.xlu1 %4661 }
 0x7ad   :  { %v4672_v40 = vsub.f32 %v4501_v5, %v4662_v43  ;;  %v4657_v43 = vsel %vm2880_vm11, %v19775_v46, -inf }
 0x7ae   :  { %v19785_v57 = vpop.eup %18508 }
 0x7af   :  { %v4686_v18 = vmul.f32 1.442695, %v4672_v40  ;;  %v4702_v41 = vsel %vm2880_vm11, %v19785_v57, 0.0  ;;  %v2884_v40 = vsel %vm2880_vm11, %v19517_v59, -inf }
 0x7b0   :  { %v2889_v24 = vpop.xlane.xlu1 %2888  ;;  %4703 = vadd.xlane.f32.xlu1 %v4702_v41  ;;  %v2890_v41 = vsel %vm2880_vm11, %v19536_v31, -inf }
 0x7b1   :  { %18510 = vpow2.f32 %v4686_v18  ;;  %v2907_v61 = vsub.f32 %v19522_v9, %v2889_v24  ;;  %v2896_v18 = vsel %vm2880_vm11, %v19553_v32, -inf  ;;  %v2902_v24 = vsel %vm2880_vm11, %v19580_v49, -inf }
 0x7b2   :  { %18512 = vpow2.f32 %v2921_v39  ;;  %v2881_v39 = vsel %vm2880_vm11, %v19513_v48, -inf }
 0x7b3   :  { %v2917_v20 = vmul.f32 1.442695, %v2907_v61 }
 0x7b4   :  { %v2901_v7 = vpop.xlane.xlu1 %2900 }
 0x7b5   :  { %18514 = vpow2.f32 %v2917_v20  ;;  %v2911_v54 = vsub.f32 %v19519_v13, %v2901_v7 }
 0x7b7   :  { %v2925_v30 = vmul.f32 1.442695, %v2911_v54 }
 0x7b9   :  { %18516 = vpow2.f32 %v2925_v30 }
 0x7bb   :  { %v19791_v5 = vpop.eup %18510 }
 0x7bc   :  { %v4708_v42 = vsel %vm2880_vm11, %v19791_v5, 0.0  ;;  %v19795_v14 = vpop.eup %18512 }
 0x7bd   :  { %4709 = vadd.xlane.f32.xlu0 %v4708_v42  ;;  %v2941_v9 = vsel %vm2880_vm11, %v19795_v14, 0.0 }
 0x7bf   :  { %v19797_v8 = vpop.eup %18514 }
 0x7c0   :  { %v2935_v63 = vsel %vm2880_vm11, %v19797_v8, 0.0 }
 0x7c1   :  { %2942 = vadd.xlane.f32.xlu0 %v2941_v9  ;;  %2936 = vadd.xlane.f32.xlu1 %v2935_v63 }
 0x7c3   :  { %v19803_v13 = vpop.eup %18516 }
 0x7c4   :  { %v2947_v6 = vsel %vm2880_vm11, %v19803_v13, 0.0 }
 0x7c5   :  { %4643 = vmax.xlane.f32.xlu0 %v4642_v35  ;;  %2948 = vadd.xlane.f32.xlu1 %v2947_v6 }
 0x7c9   :  { %4652 = vmax.xlane.f32.xlu0 %v4651_v37  ;;  %4646 = vmax.xlane.f32.xlu1 %v4645_v45 }
 0x7cd   :  { %4664 = vmax.xlane.f32.xlu0 %v4663_v22  ;;  %4658 = vmax.xlane.f32.xlu1 %v4657_v43 }
 0x7d1   :  { %2885 = vmax.xlane.f32.xlu0 %v2884_v40  ;;  %2882 = vmax.xlane.f32.xlu1 %v2881_v39 }
 0x7d5   :  { %2897 = vmax.xlane.f32.xlu0 %v2896_v18  ;;  %2891 = vmax.xlane.f32.xlu1 %v2890_v41 }
 0x7d9   :  { %2903 = vmax.xlane.f32.xlu1 %v2902_v24 }
 0x831   :  { %v4698_v61 = vpop.xlane.xlu0 %4697 }
 0x832   :  { %18518 = vrcp.f32 %v4698_v61 }
 0x83c   :  { %v18519_v20 = vpop.eup %18518 }
 0x83d   :  { %v4704_v7 = vpop.xlane.xlu1 %4703  ;;  %v4719_v54 = vmul.f32 %v18519_v20, %v18507_v0 }
 0x83e   :  { %18520 = vrcp.f32 %v4704_v7 }
 0x83f   :  { %v4733_v30 = vsel %vm4730_vm12, %v4719_v54, 0.0 }
 0x840   :  { %16305 = vst.msk [vmem:[%s21952_s9 + $0x50] sm:$0x3f] %vm2880_vm11, %v4733_v30  ;;  %17287 = vmatmul.mubr.msk.f32.vlgmr.msra.gmra.mrb[34].mxu0 %vm4749_vm13, %v4733_v30 }
 0x841   :  { %18097 = vmatpush3.bf16.msk.msra.mxu0 %vm19731_vm10, %v19667_v38  ;;  %17300 = vmatprep.mubr.msk.f32.mxu0 %vm18726_vm1, %v21969_v62 }
 0x842   :  { %18102 = vmatprep.subr.bf16.mxu0 %v21970_v15 }
 0x848   :  { %v18521_v0 = vpop.eup %18520 }
 0x849   :  { %v4723_v42 = vmul.f32 %v18521_v0, %v19785_v57 }
 0x84a   :  { %v4710_v9 = vpop.xlane.xlu0 %4709 }
 0x84b   :  { %18522 = vrcp.f32 %v4710_v9  ;;  %v4735_v63 = vsel %vm4730_vm12, %v4723_v42, 0.0 }
 0x84c   :  { %16307 = vst.msk [vmem:[%s21952_s9 + $0x60] sm:$0x3f] %vm2880_vm11, %v4735_v63  ;;  %17301 = vmatmul.mubr.msk.f32.vlgmr.msra.gmra.mrb[36].mxu0 %vm4749_vm13, %v4735_v63 }
 0x84d   :  { %18105 = vmatpush3.bf16.msk.msra.mxu0 %vm19731_vm10, %v19715_v51  ;;  %17314 = vmatprep.mubr.msk.f32.mxu0 %vm18726_vm1, %v21969_v62 }
 0x84e   :  { %v2943_v38 = vpop.xlane.xlu0 %2942  ;;  %v2937_v57 = vpop.xlane.xlu1 %2936  ;;  %18118 = vmatprep.subr.bf16.mxu0 %v21970_v15 }
 0x84f   :  { %18524 = vrcp.f32 %v2943_v38 }
 0x850   :  { %18526 = vrcp.f32 %v2937_v57 }
 0x852   :  { %v4644_v35 = vpop.xlane.xlu0 %4643  ;;  %v2949_v6 = vpop.xlane.xlu1 %2948 }
 0x853   :  { %v4666_v37 = vsub.f32 %v19764_v28, %v4644_v35  ;;  %18528 = vrcp.f32 %v2949_v6 }
 0x855   :  { %v18523_v45 = vpop.eup %18522  ;;  %v4674_v22 = vmul.f32 1.442695, %v4666_v37 }
 0x856   :  { %v4653_v43 = vpop.xlane.xlu0 %4652  ;;  %v4647_v40 = vpop.xlane.xlu1 %4646  ;;  %v4727_v51 = vmul.f32 %v18523_v45, %v19791_v5 }
 0x857   :  { %18530 = vpow2.f32 %v4674_v22  ;;  %v4669_v39 = vsub.f32 %v19772_v53, %v4653_v43  ;;  %v4667_v18 = vsub.f32 %v19766_v52, %v4647_v40 }
 0x858   :  { %v4737_v41 = vsel %vm4730_vm12, %v4727_v51, 0.0 }
 0x859   :  { %v18525_v24 = vpop.eup %18524  ;;  %v4680_v61 = vmul.f32 1.442695, %v4669_v39  ;;  %v4676_v20 = vmul.f32 1.442695, %v4667_v18  ;;  %16309 = vst.msk [vmem:[%s21952_s9 + $0x70] sm:$0x3f] %vm2880_vm11, %v4737_v41  ;;  %17315 = vmatmul.mubr.msk.f32.vlgmr.msra.gmra.mrb[38].mxu0 %vm4749_vm13, %v4737_v41 }
 0x85a   :  { %v18527_v28 = vpop.eup %18526  ;;  %18121 = vmatpush3.bf16.msk.msra.mxu0 %vm19731_vm10, %v19077_v12  ;;  %v4665_v52 = vpop.xlane.xlu0 %4664  ;;  %17342 = vmatprep.mubr.msk.f32.mxu0 %vm18726_vm1, %v21969_v62  ;;  %v2962_v5 = vmul.f32 %v18525_v24, %v19795_v14 }
 0x85b   :  { %v4659_v53 = vpop.xlane.xlu1 %4658  ;;  %18532 = vpow2.f32 %v4680_v61  ;;  %v4673_v7 = vsub.f32 %v19781_v27, %v4665_v52  ;;  %18126 = vmatprep.subr.bf16.mxu0 %v21970_v15  ;;  %v2958_v30 = vmul.f32 %v18527_v28, %v19797_v8  ;;  %v18699_v52 = vld [vmem:[%s21951_s1 + $0x8] sm:$0xff] }
 0x85c   :  { %v4671_v54 = vsub.f32 %v19775_v46, %v4659_v53  ;;  %18534 = vpow2.f32 %v4676_v20  ;;  %v2974_v12 = vsel %vm2969_vm14, %v2962_v5, 0.0 }
 0x85d   :  { %v18529_v0 = vpop.eup %18528  ;;  %v4688_v42 = vmul.f32 1.442695, %v4673_v7  ;;  %v2972_v63 = vsel %vm2969_vm14, %v2958_v30, 0.0  ;;  %2982 = vst.msk [vmem:[%s21952_s9 + $0x20] sm:$0x3f] %vm2880_vm11, %v2974_v12  ;;  %v18700_v30 = vld [vmem:[%s21951_s1 + $0x10] sm:$0xff] }
 0x85e   :  { %v4684_v9 = vmul.f32 1.442695, %v4671_v54  ;;  %2980 = vst.msk [vmem:[%s21952_s9 + $0x10] sm:$0x3f] %vm2880_vm11, %v2972_v63  ;;  %17343 = vmatmul.mubr.msk.f32.vlgmr.msra.gmra.mrb[34].mxu0 %vm4749_vm13, %v2972_v63  ;;  %v2886_v46 = vpop.xlane.xlu0 %2885  ;;  %v2966_v14 = vmul.f32 %v18529_v0, %v19803_v13 }
 0x85f   :  { %v2883_v27 = vpop.xlane.xlu1 %2882  ;;  %18536 = vpow2.f32 %v4688_v42  ;;  %18129 = vmatpush3.bf16.msk.msra.mxu0 %vm19731_vm10, %v19116_v34  ;;  %v2906_v8 = vsub.f32 %v19517_v59, %v2886_v46  ;;  %17356 = vmatprep.mubr.msk.f32.mxu0 %vm18726_vm1, %v21969_v62  ;;  %v18702_v46 = vld [vmem:[%s21951_s1 + $0x20] sm:$0xff] }
 0x860   :  { %v2905_v38 = vsub.f32 %v19513_v48, %v2883_v27  ;;  %18538 = vpow2.f32 %v4684_v9  ;;  %18134 = vmatprep.subr.bf16.mxu0 %v21970_v15  ;;  %v2976_v57 = vsel %vm2969_vm14, %v2966_v14, 0.0  ;;  %v18701_v9 = vld [vmem:[%s21951_s1 + $0x18] sm:$0xff]  ;;  %v18703_v27 = vld [vmem:[%s21951_s1 + $0x28] sm:$0xff]  ;;  %v18704_v14 = vld [vmem:[%s21951_s1 + $0x30] sm:$0xff] }
 0x861   :  { %v19901_v35 = vpop.eup %18530  ;;  %v2915_v13 = vmul.f32 1.442695, %v2906_v8  ;;  %2984 = vst.msk [vmem:[%s21952_s9 + $0x30] sm:$0x3f] %vm2880_vm11, %v2976_v57  ;;  %v18705_v8 = vld [vmem:[%s21951_s1 + $0x38] sm:$0xff] }
 0x862   :  { %v2913_v6 = vmul.f32 1.442695, %v2905_v38  ;;  %17357 = vmatmul.mubr.msk.f32.vlgmr.msra.gmra.mrb[36].mxu0 %vm4749_vm13, %v2974_v12  ;;  %v2898_v34 = vpop.xlane.xlu0 %2897  ;;  %v4690_v59 = vsel %vm2880_vm11, %v19901_v35, 0.0  ;;  %v18706_v38 = vld [vmem:[%s21951_s1 + $0x40] sm:$0xff] }
 0x863   :  { %v2892_v48 = vpop.xlane.xlu1 %2891  ;;  %18540 = vpow2.f32 %v2915_v13  ;;  %18137 = vmatpush3.bf16.msk.msra.mxu0 %vm19731_vm10, %v19144_v58  ;;  %v2910_v37 = vsub.f32 %v19553_v32, %v2898_v34  ;;  %4691 = vadd.xlane.f32.xlu0 %v4690_v59 }
 0x864   :  { %v2908_v45 = vsub.f32 %v19536_v31, %v2892_v48  ;;  %18542 = vpow2.f32 %v2913_v6  ;;  %17370 = vmatprep.mubr.msk.f32.mxu0 %vm18726_vm1, %v21969_v62  ;;  %17380 = vmatprep.subr.mxu0 %v21969_v62 }
 0x865   :  { %v19918_v22 = vpop.eup %18532  ;;  %v2923_v43 = vmul.f32 1.442695, %v2910_v37 }
 0x866   :  { %v2919_v40 = vmul.f32 1.442695, %v2908_v45  ;;  %v19920_v51 = vpop.eup %18534  ;;  %17371 = vmatmul.mubr.msk.f32.vlgmr.msra.gmra.mrb[38].mxu0 %vm4749_vm13, %v2976_v57  ;;  %v4699_v32 = vsel %vm2880_vm11, %v19918_v22, 0.0 }
 0x867   :  { %v2904_v58 = vpop.xlane.xlu1 %2903  ;;  %18544 = vpow2.f32 %v2923_v43  ;;  %17381 = vmatpush3.msra.mxu0 %v18875_v36  ;;  %4700 = vadd.xlane.f32.xlu0 %v4699_v32  ;;  %v4693_v39 = vsel %vm2880_vm11, %v19920_v51, 0.0  ;;  %v18698_v36 = vld [vmem:[%s21951_s1] sm:$0xff] }
 0x868   :  { %v2912_v31 = vsub.f32 %v19580_v49, %v2904_v58  ;;  %18546 = vpow2.f32 %v2919_v40  ;;  %4694 = vadd.xlane.f32.xlu1 %v4693_v39  ;;  %17382 = vmatprep.mubr.msk.f32.mxu0 %vm18726_vm1, %v21969_v62 }
 0x869   :  { %v19931_v18 = vpop.eup %18536  ;;  %18154 = vmatprep.subr.bf16.mxu0 %v21970_v15 }
 0x86a   :  { %v2927_v41 = vmul.f32 1.442695, %v2912_v31  ;;  %v19934_v24 = vpop.eup %18538  ;;  %17383 = vmatmul.mubr.msk.f32.vlgmr.msra.gmra.mrb[40].mxu0 %vm45_vm0, %v18698_v36  ;;  %v4711_v49 = vsel %vm2880_vm11, %v19931_v18, 0.0 }
 0x86b   :  { %4712 = vadd.xlane.f32.xlu0 %v4711_v49  ;;  %v4705_v61 = vsel %vm2880_vm11, %v19934_v24, 0.0  ;;  %17385 = vmatprep.mubr.msk.f32.mxu0 %vm18726_vm1, %v21969_v62 }
 0x86c   :  { %18548 = vpow2.f32 %v2927_v41  ;;  %4706 = vadd.xlane.f32.xlu1 %v4705_v61 }
 0x86d   :  { %v19946_v20 = vpop.eup %18540 }
 0x86e   :  { %v19948_v28 = vpop.eup %18542  ;;  %17386 = vmatmul.mubr.msk.f32.gmra.mrb[42].mxu0 %vm45_vm0, %v18699_v52  ;;  %v2932_v53 = vsel %vm2880_vm11, %v19946_v20, 0.0 }
 0x86f   :  { %2933 = vadd.xlane.f32.xlu0 %v2932_v53  ;;  %v2929_v5 = vsel %vm2880_vm11, %v19948_v28, 0.0  ;;  %17388 = vmatprep.mubr.msk.f32.mxu0 %vm18726_vm1, %v21969_v62 }
 0x870   :  { %2930 = vadd.xlane.f32.xlu1 %v2929_v5 }
 0x871   :  { %v19960_v7 = vpop.eup %18544 }
 0x872   :  { %v19962_v54 = vpop.eup %18546  ;;  %17389 = vmatmul.mubr.msk.f32.gmra.mrb[44].mxu0 %vm45_vm0, %v18700_v30  ;;  %v2944_v12 = vsel %vm2880_vm11, %v19960_v7, 0.0 }
 0x873   :  { %2945 = vadd.xlane.f32.xlu0 %v2944_v12  ;;  %v2938_v0 = vsel %vm2880_vm11, %v19962_v54, 0.0  ;;  %17391 = vmatprep.mubr.msk.f32.mxu0 %vm18726_vm1, %v21969_v62 }
 0x874   :  { %2939 = vadd.xlane.f32.xlu1 %v2938_v0 }
 0x876   :  { %v19974_v42 = vpop.eup %18548  ;;  %17392 = vmatmul.mubr.msk.f32.gmra.mrb[46].mxu0 %vm45_vm0, %v18701_v9 }
 0x877   :  { %v2950_v63 = vsel %vm2880_vm11, %v19974_v42, 0.0  ;;  %17394 = vmatprep.mubr.msk.f32.mxu0 %vm18726_vm1, %v21969_v62 }
 0x878   :  { %2951 = vadd.xlane.f32.xlu1 %v2950_v63 }
 0x87a   :  { %17395 = vmatmul.mubr.msk.f32.gmra.mrb[48].mxu0 %vm45_vm0, %v18702_v46 }
 0x87b   :  { %17397 = vmatprep.mubr.msk.f32.mxu0 %vm18726_vm1, %v21969_v62 }
 0x87e   :  { %17398 = vmatmul.mubr.msk.f32.gmra.mrb[50].mxu0 %vm45_vm0, %v18703_v27 }
 0x87f   :  { %17400 = vmatprep.mubr.msk.f32.mxu0 %vm18726_vm1, %v21969_v62 }
 0x882   :  { %17401 = vmatmul.mubr.msk.f32.gmra.mrb[52].mxu0 %vm45_vm0, %v18704_v14 }
 0x883   :  { %17403 = vmatprep.mubr.msk.f32.mxu0 %vm18726_vm1, %v21969_v62 }
 0x886   :  { %17404 = vmatmul.mubr.msk.f32.gmra.mrb[54].mxu0 %vm45_vm0, %v18705_v8 }
 0x887   :  { %17406 = vmatprep.mubr.msk.f32.mxu0 %vm18726_vm1, %v21969_v62 }
 0x88a   :  { %17407 = vmatmul.mubr.msk.f32.gmra.mrb[56].mxu0 %vm45_vm0, %v18706_v38 }
 0x88b   :  { %17434 = vmatprep.mubr.msk.f32.mxu0 %vm18726_vm1, %v21969_v62 }
 0x8f0   :  { %v4692_v57 = vpop.xlane.xlu0 %4691 }
 0x8f1   :  { %18550 = vrcp.f32 %v4692_v57 }
 0x8f4   :  { %v4701_v13 = vpop.xlane.xlu0 %4700 }
 0x8f5   :  { %18552 = vrcp.f32 %v4701_v13  ;;  %v4695_v6 = vpop.xlane.xlu1 %4694 }
 0x8f6   :  { %18554 = vrcp.f32 %v4695_v6 }
 0x8f8   :  { %v4713_v34 = vpop.xlane.xlu0 %4712 }
 0x8f9   :  { %18556 = vrcp.f32 %v4713_v34  ;;  %v4707_v48 = vpop.xlane.xlu1 %4706 }
 0x8fa   :  { %18558 = vrcp.f32 %v4707_v48 }
 0x8fb   :  { %v18551_v59 = vpop.eup %18550 }
 0x8fc   :  { %v2934_v37 = vpop.xlane.xlu0 %2933  ;;  %v4715_v45 = vmul.f32 %v18551_v59, %v19901_v35 }
 0x8fd   :  { %18560 = vrcp.f32 %v2934_v37  ;;  %v2931_v43 = vpop.xlane.xlu1 %2930 }
 0x8fe   :  { %18562 = vrcp.f32 %v2931_v43  ;;  %v4731_v40 = vsel %vm4730_vm12, %v4715_v45, 0.0 }
 0x8ff   :  { %v18553_v58 = vpop.eup %18552  ;;  %16303 = vst.msk [vmem:[%s21952_s9 + $0x40] sm:$0x3f] %vm2880_vm11, %v4731_v40  ;;  %17273 = vmatmul.mubr.msk.f32.vlgmr.msra.gmra.mrb[52].mxu1 %vm4749_vm13, %v4731_v40 }
 0x900   :  { %v18555_v32 = vpop.eup %18554  ;;  %18085 = vmatpush3.bf16.msk.msra.mxu1 %vm19731_vm10, %v19591_v50  ;;  %v2946_v35 = vpop.xlane.xlu0 %2945  ;;  %17279 = vmatprep.mubr.msk.f32.mxu1 %vm18726_vm1, %v21969_v62  ;;  %v4721_v31 = vmul.f32 %v18553_v58, %v19918_v22 }
 0x901   :  { %18564 = vrcp.f32 %v2946_v35  ;;  %v2940_v39 = vpop.xlane.xlu1 %2939  ;;  %18090 = vmatprep.subr.bf16.mxu1 %v21970_v15  ;;  %v4717_v41 = vmul.f32 %v18555_v32, %v19920_v51 }
 0x902   :  { %18566 = vrcp.f32 %v2940_v39  ;;  %v4734_v36 = vsel %vm4730_vm12, %v4721_v31, 0.0 }
 0x903   :  { %v18557_v49 = vpop.eup %18556  ;;  %v4732_v50 = vsel %vm4730_vm12, %v4717_v41, 0.0  ;;  %16306 = vst.msk [vmem:[%s21952_s9 + $0x58] sm:$0x3f] %vm2880_vm11, %v4734_v36 }
 0x904   :  { %v18559_v22 = vpop.eup %18558  ;;  %16304 = vst.msk [vmem:[%s21952_s9 + $0x48] sm:$0x3f] %vm2880_vm11, %v4732_v50  ;;  %17280 = vmatmul.mubr.msk.f32.vlgmr.msra.gmra.mrb[54].mxu1 %vm4749_vm13, %v4732_v50  ;;  %v4729_v51 = vmul.f32 %v18557_v49, %v19931_v18 }
 0x905   :  { %18093 = vmatpush3.bf16.msk.msra.mxu1 %vm19731_vm10, %v19701_v21  ;;  %v2952_v61 = vpop.xlane.xlu1 %2951  ;;  %17293 = vmatprep.mubr.msk.f32.mxu1 %vm18726_vm1, %v21969_v62  ;;  %v4725_v52 = vmul.f32 %v18559_v22, %v19934_v24 }
 0x906   :  { %18568 = vrcp.f32 %v2952_v61  ;;  %18098 = vmatprep.subr.bf16.mxu1 %v21970_v15  ;;  %v4738_v53 = vsel %vm4730_vm12, %v4729_v51, 0.0 }
 0x907   :  { %v18561_v5 = vpop.eup %18560  ;;  %v4736_v18 = vsel %vm4730_vm12, %v4725_v52, 0.0  ;;  %16310 = vst.msk [vmem:[%s21952_s9 + $0x78] sm:$0x3f] %vm2880_vm11, %v4738_v53 }
 0x908   :  { %v18563_v21 = vpop.eup %18562  ;;  %17294 = vmatmul.mubr.msk.f32.vlgmr.msra.gmra.mrb[56].mxu1 %vm4749_vm13, %v4734_v36  ;;  %16308 = vst.msk [vmem:[%s21952_s9 + $0x68] sm:$0x3f] %vm2880_vm11, %v4736_v18  ;;  %v2956_v24 = vmul.f32 %v18561_v5, %v19946_v20 }
 0x909   :  { %18101 = vmatpush3.bf16.msk.msra.mxu1 %vm19731_vm10, %v19703_v44  ;;  %17307 = vmatprep.mubr.msk.f32.mxu1 %vm18726_vm1, %v21969_v62  ;;  %v2954_v30 = vmul.f32 %v18563_v21, %v19948_v28 }
 0x90a   :  { %18106 = vmatprep.subr.bf16.mxu1 %v21970_v15  ;;  %v2971_v12 = vsel %vm2969_vm14, %v2956_v24, 0.0 }
 0x90b   :  { %v18565_v0 = vpop.eup %18564  ;;  %v2970_v9 = vsel %vm2969_vm14, %v2954_v30, 0.0  ;;  %2979 = vst.msk [vmem:[%s21952_s9 + $0x8] sm:$0x3f] %vm2880_vm11, %v2971_v12 }
 0x90c   :  { %v18567_v44 = vpop.eup %18566  ;;  %17308 = vmatmul.mubr.msk.f32.vlgmr.msra.gmra.mrb[58].mxu1 %vm4749_vm13, %v4736_v18  ;;  %2978 = vst.msk [vmem:[%s21952_s9] sm:$0x3f] %vm2880_vm11, %v2970_v9  ;;  %v2964_v20 = vmul.f32 %v18565_v0, %v19960_v7 }
 0x90d   :  { %18109 = vmatpush3.bf16.msk.msra.mxu1 %vm19731_vm10, %v19738_v11  ;;  %17321 = vmatprep.mubr.msk.f32.mxu1 %vm18726_vm1, %v21969_v62  ;;  %v2960_v28 = vmul.f32 %v18567_v44, %v19962_v54 }
 0x90e   :  { %18110 = vmatprep.subr.bf16.mxu1 %v21970_v15  ;;  %v2975_v63 = vsel %vm2969_vm14, %v2964_v20, 0.0 }
 0x90f   :  { %v2973_v46 = vsel %vm2969_vm14, %v2960_v28, 0.0  ;;  %2983 = vst.msk [vmem:[%s21952_s9 + $0x28] sm:$0x3f] %vm2880_vm11, %v2975_v63 }
 0x910   :  { %v18569_v7 = vpop.eup %18568  ;;  %17322 = vmatmul.mubr.msk.f32.vlgmr.msra.gmra.mrb[60].mxu1 %vm4749_vm13, %v4738_v53  ;;  %2981 = vst.msk [vmem:[%s21952_s9 + $0x18] sm:$0x3f] %vm2880_vm11, %v2973_v46 }
 0x911   :  { %18113 = vmatpush3.bf16.msk.msra.mxu1 %vm19731_vm10, %v19019_v17  ;;  %17328 = vmatprep.mubr.msk.f32.mxu1 %vm18726_vm1, %v21969_v62  ;;  %v2968_v11 = vmul.f32 %v18569_v7, %v19974_v42 }
 0x912   :  { %18114 = vmatprep.subr.bf16.mxu1 %v21970_v15 }
 0x913   :  { %v2977_v54 = vsel %vm2969_vm14, %v2968_v11, 0.0 }
 0x914   :  { %17329 = vmatmul.mubr.msk.f32.vlgmr.msra.gmra.mrb[52].mxu1 %vm4749_vm13, %v2970_v9  ;;  %2985 = vst.msk [vmem:[%s21952_s9 + $0x38] sm:$0x3f] %vm2880_vm11, %v2977_v54 }
 0x915   :  { %18117 = vmatpush3.bf16.msk.msra.mxu1 %vm19731_vm10, %v19053_v26  ;;  %17335 = vmatprep.mubr.msk.f32.mxu1 %vm18726_vm1, %v21969_v62 }
 0x916   :  { %18122 = vmatprep.subr.bf16.mxu1 %v21970_v15 }
 0x918   :  { %17336 = vmatmul.mubr.msk.f32.vlgmr.msra.gmra.mrb[54].mxu1 %vm4749_vm13, %v2971_v12 }
 0x919   :  { %18125 = vmatpush3.bf16.msk.msra.mxu1 %vm19731_vm10, %v19153_v3  ;;  %17349 = vmatprep.mubr.msk.f32.mxu1 %vm18726_vm1, %v21969_v62 }
 0x91a   :  { %18130 = vmatprep.subr.bf16.mxu1 %v21970_v15 }
 0x91c   :  { %17350 = vmatmul.mubr.msk.f32.vlgmr.msra.gmra.mrb[56].mxu1 %vm4749_vm13, %v2973_v46 }
 0x91d   :  { %18133 = vmatpush3.bf16.msk.msra.mxu1 %vm19731_vm10, %v19157_v1  ;;  %17363 = vmatprep.mubr.msk.f32.mxu1 %vm18726_vm1, %v21969_v62 }
 0x91e   :  { %18138 = vmatprep.subr.bf16.mxu1 %v21970_v15 }
 0x920   :  { %17364 = vmatmul.mubr.msk.f32.vlgmr.msra.gmra.mrb[58].mxu1 %vm4749_vm13, %v2975_v63 }
 0x921   :  { %18141 = vmatpush3.bf16.msk.msra.mxu1 %vm19731_vm10, %v19160_v33  ;;  %17377 = vmatprep.mubr.msk.f32.mxu1 %vm18726_vm1, %v21969_v62 }
 0x922   :  { %18142 = vmatprep.subr.bf16.mxu1 %v21970_v15 }
 0x924   :  { %17378 = vmatmul.mubr.msk.f32.vlgmr.msra.gmra.mrb[60].mxu1 %vm4749_vm13, %v2977_v54 }
 0x925   :  { %17413 = vmatprep.mubr.msk.f32.mxu1 %vm18726_vm1, %v21969_v62 }
 0x93d   :  { %v6031_v17 = vpop.f32.mrb[40].mxu0 }
 0x93e   :  { %v6084_v26 = vcombine.high %v6031_v17, %v6031_v17  ;;  %v6091_v3 = vrot.slane %v6031_v17, %v18979_v60  ;;  %v17384_v1 = vpop.f32.mrb[41].mxu0 }
 0x940   :  { %v6098_v42 = vrot.slane %v6084_v26, %v18979_v60  ;;  %v6099_v27 = vcombine.high %v6091_v3, %v6091_v3  ;;  %v6107_v8 = vrot.slane %v6091_v3, %v18979_v60 }
 0x941   :  { %v6036_v14 = vpop.f32.mrb[42].mxu0 }
 0x942   :  { %v6100_v33 = vcombine.high %v6098_v42, %v6098_v42  ;;  %v6121_v38 = vrot.slane %v6099_v27, %v18979_v60  ;;  %v6133_v57 = vcombine.high %v6036_v14, %v6036_v14  ;;  %v17387_v13 = vpop.f32.mrb[43].mxu0  ;;  %v6114_v6 = vrot.slane %v6098_v42, %v18979_v60 }
 0x943   :  { %v6140_v34 = vrot.slane %v6036_v14, %v18979_v60 }
 0x944   :  { %v6128_v48 = vrot.slane %v6100_v33, %v18979_v60  ;;  %v6525_v59 = vcombine.low %v6107_v8, %v6121_v38  ;;  %v16352_v37 = vcombine.high %v6107_v8, %v6121_v38  ;;  %v6147_v45 = vrot.slane %v6133_v57, %v18979_v60 }
 0x945   :  { %v6148_v43 = vcombine.high %v6140_v34, %v6140_v34  ;;  %v6156_v40 = vrot.slane %v6140_v34, %v18979_v60  ;;  %v6041_v58 = vpop.f32.mrb[44].mxu0 }
 0x946   :  { %v6527_v32 = vcombine.low %v6114_v6, %v6128_v48  ;;  %v16353_v35 = vcombine.high %v6114_v6, %v6128_v48  ;;  %v6535_v31 = vrot.slane %v6525_v59, %v18979_v60  ;;  %v6542_v39 = vrot.slane %v16352_v37, %v18979_v60  ;;  %v17390_v41 = vpop.f32.mrb[45].mxu0 }
 0x947   :  { %v6149_v36 = vcombine.high %v6147_v45, %v6147_v45  ;;  %v6163_v49 = vrot.slane %v6147_v45, %v18979_v60  ;;  %v6170_v50 = vrot.slane %v6148_v43, %v18979_v60  ;;  %v6178_v22 = vcombine.high %v6156_v40, %v6156_v40 }
 0x948   :  { %v6549_v51 = vrot.slane %v6527_v32, %v18979_v60  ;;  %v6556_v61 = vrot.slane %v16353_v35, %v18979_v60  ;;  %v6557_v52 = vcombine.low %v6535_v31, %v6542_v39  ;;  %v6580_v53 = vrot.slane %v6156_v40, %v18979_v60 }
 0x949   :  { %v6177_v5 = vrot.slane %v6149_v36, %v18979_v60  ;;  %v6179_v18 = vcombine.high %v6163_v49, %v6163_v49  ;;  %v6180_v21 = vcombine.high %v6170_v50, %v6170_v50  ;;  %v6662_v24 = vcombine.low %v6170_v50, %v6178_v22  ;;  %v6046_v30 = vpop.f32.mrb[46].mxu0 }
 0x94a   :  { %v6558_v12 = vcombine.low %v6549_v51, %v6556_v61  ;;  %v6565_v0 = vrot.slane %v6557_v52, %v18979_v60  ;;  %v6182_v9 = vcombine.high %v6041_v58, %v6041_v58  ;;  %v17393_v44 = vpop.f32.mrb[47].mxu0  ;;  %v6189_v11 = vrot.slane %v6041_v58, %v18979_v60 }
 0x94b   :  { %v6663_v20 = vcombine.low %v6180_v21, %v6163_v49  ;;  %v6664_v28 = vcombine.low %v6177_v5, %v6179_v18  ;;  %v6672_v63 = vrot.slane %v6662_v24, %v18979_v60  ;;  %v6181_v46 = vcombine.high %v6177_v5, %v6177_v5 }
 0x94c   :  { %v6572_v7 = vrot.slane %v6558_v12, %v18979_v60  ;;  %v6196_v54 = vrot.slane %v6182_v9, %v18979_v60  ;;  %v6231_v17 = vcombine.high %v6046_v30, %v6046_v30  ;;  %v6587_v26 = vrot.slane %v6580_v53, %v18979_v60 }
 0x94d   :  { %v6679_v3 = vrot.slane %v6663_v20, %v18979_v60  ;;  %v6686_v1 = vrot.slane %v6664_v28, %v18979_v60  ;;  %v6238_v42 = vrot.slane %v6046_v30, %v18979_v60  ;;  %v6051_v27 = vpop.f32.mrb[48].mxu0  ;;  %v6197_v33 = vcombine.high %v6189_v11, %v6189_v11 }
 0x94e   :  { %v6573_v14 = vcombine.low %v6565_v0, %v6572_v7  ;;  %v6198_v8 = vcombine.high %v6196_v54, %v6196_v54  ;;  %v6205_v38 = vrot.slane %v6189_v11, %v18979_v60  ;;  %v17396_v57 = vpop.f32.mrb[49].mxu0  ;;  %v6212_v6 = vrot.slane %v6196_v54, %v18979_v60 }
 0x94f   :  { %v6694_v13 = vcombine.low %v6672_v63, %v6679_v3  ;;  %v6245_v34 = vrot.slane %v6231_v17, %v18979_v60  ;;  %v6246_v48 = vcombine.high %v6238_v42, %v6238_v42  ;;  %v6219_v37 = vrot.slane %v6197_v33, %v18979_v60 }
 0x950   :  { %v20179_v59 = vpack.c.bf16 %v6587_v26, %v6573_v14  ;;  %v6226_v45 = vrot.slane %v6198_v8, %v18979_v60  ;;  %v6665_v43 = vcombine.low %v6181_v46, %v6205_v38  ;;  %v6254_v58 = vrot.slane %v6238_v42, %v18979_v60 }
 0x951   :  { %v6247_v40 = vcombine.high %v6245_v34, %v6245_v34  ;;  %v6261_v32 = vrot.slane %v6245_v34, %v18979_v60  ;;  %v6056_v35 = vpop.f32.mrb[50].mxu0  ;;  %v6717_v39 = vrot.slane %v6219_v37, %v18979_v60  ;;  %v16360_v41 = vcombine.high %v6205_v38, %v6219_v37 }
 0x952   :  { %v6693_v31 = vrot.slane %v6665_v43, %v18979_v60  ;;  %v6800_v36 = vcombine.low %v6212_v6, %v6226_v45  ;;  %18145 = vmatpush3.bf16.xpose.msk.msra.mxu1 %vm19015_vm3, %v20179_v59  ;;  %v17399_v49 = vpop.f32.mrb[51].mxu0  ;;  %v6702_v50 = vrot.slane %v6694_v13, %v18979_v60  ;;  %v16361_v22 = vcombine.high %v6212_v6, %v6226_v45 }
 0x953   :  { %v6268_v51 = vrot.slane %v6246_v48, %v18979_v60  ;;  %v6276_v61 = vcombine.high %v6254_v58, %v6254_v58  ;;  %18146 = vmatprep.subr.bf16.mxu1 %v21970_v15  ;;  %v6809_v53 = vrot.slane %v16360_v41, %v18979_v60  ;;  %v6275_v18 = vrot.slane %v6247_v40, %v18979_v60 }
 0x954   :  { %v6695_v52 = vcombine.low %v6686_v1, %v6693_v31  ;;  %v6816_v5 = vrot.slane %v6800_v36, %v18979_v60  ;;  %v6823_v21 = vrot.slane %v16361_v22, %v18979_v60  ;;  %v6277_v24 = vcombine.high %v6261_v32, %v6261_v32 }
 0x955   :  { %v6278_v30 = vcombine.high %v6268_v51, %v6268_v51  ;;  %v6802_v12 = vcombine.low %v6254_v58, %v6268_v51  ;;  %v20197_v0 = vpop.f32.mrb[52].mxu0  ;;  %v6724_v44 = vrot.slane %v6717_v39, %v18979_v60  ;;  %v6854_v28 = vrot.slane %v6276_v61, %v18979_v60 }
 0x956   :  { %v6709_v9 = vrot.slane %v6695_v52, %v18979_v60  ;;  %v6831_v20 = vcombine.low %v6809_v53, %v6816_v5  ;;  %v17402_v63 = vpop.f32.mrb[53].mxu0  ;;  %v6937_v11 = vcombine.low %v6275_v18, %v6277_v24  ;;  %v6280_v54 = vcombine.high %v6051_v27, %v6051_v27 }
 0x957   :  { %v6830_v46 = vrot.slane %v6802_v12, %v18979_v60  ;;  %v6936_v7 = vcombine.low %v6278_v30, %v6261_v32  ;;  %v6279_v3 = vcombine.high %v6275_v18, %v6275_v18  ;;  %v6287_v1 = vrot.slane %v6051_v27, %v18979_v60 }
 0x958   :  { %v6710_v17 = vcombine.low %v6702_v50, %v6709_v9  ;;  %v6839_v26 = vrot.slane %v6831_v20, %v18979_v60  ;;  %v6953_v33 = vrot.slane %v6937_v11, %v18979_v60  ;;  %v6294_v8 = vrot.slane %v6280_v54, %v18979_v60 }
 0x959   :  { %v6832_v42 = vcombine.low %v6823_v21, %v6830_v46  ;;  %v6946_v14 = vrot.slane %v6936_v7, %v18979_v60  ;;  %v20208_v38 = vpop.f32.mrb[54].mxu0  ;;  %17414 = vmatmul.mubr.msk.f32.vlgmr.msra.gmra.mrb[62].mxu1 %vm163_vm2, %v19293_v19  ;;  %v6295_v13 = vcombine.high %v6287_v1, %v6287_v1  ;;  %v6303_v6 = vrot.slane %v6287_v1, %v18979_v60 }
 0x95a   :  { %v20212_v57 = vpack.c.bf16 %v6724_v44, %v6710_v17  ;;  %v6329_v34 = vcombine.high %v6056_v35, %v6056_v35  ;;  %v17405_v48 = vpop.f32.mrb[55].mxu0  ;;  %17420 = vmatprep.mubr.msk.f32.mxu1 %vm18726_vm1, %v21969_v62  ;;  %v6296_v45 = vcombine.high %v6294_v8, %v6294_v8  ;;  %v6310_v43 = vrot.slane %v6294_v8, %v18979_v60 }
 0x95b   :  { %v6846_v27 = vrot.slane %v6832_v42, %v18979_v60  ;;  %v6968_v37 = vcombine.low %v6946_v14, %v6953_v33  ;;  %v6317_v40 = vrot.slane %v6295_v13, %v18979_v60  ;;  %v6325_v58 = vcombine.high %v6303_v6, %v6303_v6 }
 0x95c   :  { %v6938_v32 = vcombine.low %v6279_v3, %v6303_v6  ;;  %v6336_v31 = vrot.slane %v6056_v35, %v18979_v60  ;;  %18149 = vmatpush3.bf16.xpose.msk.msra.mxu1 %vm19015_vm3, %v20212_v57  ;;  %v6861_v41 = vrot.slane %v6854_v28, %v18979_v60  ;;  %v6324_v36 = vrot.slane %v6296_v45, %v18979_v60 }
 0x95d   :  { %v6847_v39 = vcombine.low %v6839_v26, %v6846_v27  ;;  %v6343_v49 = vrot.slane %v6329_v34, %v18979_v60  ;;  %v20227_v50 = vpop.f32.mrb[56].mxu0  ;;  %18150 = vmatprep.subr.bf16.mxu1 %v21970_v15  ;;  %v6327_v22 = vcombine.high %v6317_v40, %v6317_v40  ;;  %v6939_v51 = vcombine.low %v6317_v40, %v6325_v58 }
 0x95e   :  { %v6960_v61 = vrot.slane %v6938_v32, %v18979_v60  ;;  %v6344_v35 = vcombine.high %v6336_v31, %v6336_v31  ;;  %v17408_v52 = vpop.f32.mrb[57].mxu0  ;;  %v7073_v5 = vcombine.low %v6310_v43, %v6324_v36  ;;  %v16368_v18 = vcombine.high %v6310_v43, %v6324_v36 }
 0x95f   :  { %v20231_v53 = vpack.c.bf16 %v6861_v41, %v6847_v39  ;;  %v6345_v21 = vcombine.high %v6343_v49, %v6343_v49  ;;  %v6976_v24 = vrot.slane %v6968_v37, %v18979_v60  ;;  %v6967_v30 = vrot.slane %v6939_v51, %v18979_v60 }
 0x960   :  { %v6352_v12 = vrot.slane %v6336_v31, %v18979_v60  ;;  %v6359_v9 = vrot.slane %v6343_v49, %v18979_v60  ;;  %v7083_v44 = vrot.slane %v7073_v5, %v18979_v60  ;;  %v7090_v20 = vrot.slane %v16368_v18, %v18979_v60 }
 0x961   :  { %v6366_v28 = vrot.slane %v6344_v35, %v18979_v60  ;;  %v6373_v63 = vrot.slane %v6345_v21, %v18979_v60  ;;  %v6969_v46 = vcombine.low %v6960_v61, %v6967_v30  ;;  %v20242_v7 = vrot.slane %v6327_v22, %v18979_v60 }
 0x962   :  { %v6375_v11 = vcombine.high %v6359_v9, %v6359_v9  ;;  %v7128_v54 = vrot.slane %v6359_v9, %v18979_v60  ;;  %v7105_v17 = vcombine.low %v7083_v44, %v7090_v20  ;;  %v6378_v8 = vcombine.high %v20197_v0, %v20197_v0 }
 0x963   :  { %v7075_v26 = vcombine.low %v6352_v12, %v6366_v28  ;;  %v16369_v3 = vcombine.high %v6352_v12, %v6366_v28  ;;  %v6377_v1 = vcombine.high %v6373_v63, %v6373_v63  ;;  %17421 = vmatmul.mubr.msk.f32.vlgmr.msra.gmra.mrb[64].mxu1 %vm163_vm2, %v19350_v2  ;;  %v6983_v42 = vrot.slane %v6969_v46, %v18979_v60 }
 0x964   :  { %v7135_v14 = vrot.slane %v7128_v54, %v18979_v60  ;;  %v7210_v33 = vcombine.low %v6373_v63, %v6375_v11  ;;  %18153 = vmatpush3.bf16.xpose.msk.msra.mxu1 %vm19015_vm3, %v20231_v53  ;;  %v7113_v13 = vrot.slane %v7105_v17, %v18979_v60  ;;  %v6385_v48 = vrot.slane %v20197_v0, %v18979_v60 }
 0x965   :  { %v7097_v6 = vrot.slane %v7075_v26, %v18979_v60  ;;  %v7104_v34 = vrot.slane %v16369_v3, %v18979_v60  ;;  %17427 = vmatprep.mubr.msk.f32.mxu1 %vm18726_vm1, %v21969_v62  ;;  %v20261_v27 = vcombine.low %v6976_v24, %v6983_v42  ;;  %v6392_v37 = vrot.slane %v6378_v8, %v18979_v60 }
 0x966   :  { %v7220_v45 = vrot.slane %v7210_v33, %v18979_v60  ;;  %v6427_v43 = vcombine.high %v20208_v38, %v20208_v38  ;;  %18158 = vmatprep.subr.bf16.mxu1 %v21970_v15  ;;  %v6393_v58 = vcombine.high %v6385_v48, %v6385_v48  ;;  %v6401_v32 = vrot.slane %v6385_v48, %v18979_v60 }
 0x967   :  { %v7106_v40 = vcombine.low %v7097_v6, %v7104_v34  ;;  %v6434_v0 = vrot.slane %v20208_v38, %v18979_v60  ;;  %v6394_v31 = vcombine.high %v6392_v37, %v6392_v37  ;;  %v6408_v39 = vrot.slane %v6392_v37, %v18979_v60 }
 0x968   :  { %v6441_v41 = vrot.slane %v6427_v43, %v18979_v60  ;;  %v6476_v36 = vcombine.high %v20227_v50, %v20227_v50  ;;  %v6415_v22 = vrot.slane %v6393_v58, %v18979_v60  ;;  %v6423_v51 = vcombine.high %v6401_v32, %v6401_v32 }
 0x969   :  { %v7120_v49 = vrot.slane %v7106_v40, %v18979_v60  ;;  %v7211_v61 = vcombine.low %v6377_v1, %v6401_v32  ;;  %v6422_v35 = vrot.slane %v6394_v31, %v18979_v60  ;;  %v6442_v52 = vcombine.high %v6434_v0, %v6434_v0 }
 0x96a   :  { %v6443_v5 = vcombine.high %v6441_v41, %v6441_v41  ;;  %v6450_v38 = vrot.slane %v6434_v0, %v18979_v60  ;;  %v6425_v21 = vcombine.high %v6415_v22, %v6415_v22  ;;  %v7212_v24 = vcombine.low %v6415_v22, %v6423_v51 }
 0x96b   :  { %v7121_v18 = vcombine.low %v7113_v13, %v7120_v49  ;;  %v7227_v30 = vrot.slane %v7211_v61, %v18979_v60  ;;  %17428 = vmatmul.mubr.msk.f32.vlgmr.msra.gmra.mrb[66].mxu1 %vm163_vm2, %v19396_v4  ;;  %v7265_v12 = vrot.slane %v6422_v35, %v18979_v60  ;;  %v16376_v9 = vcombine.high %v6408_v39, %v6422_v35 }
 0x96c   :  { %v6457_v44 = vrot.slane %v6441_v41, %v18979_v60  ;;  %v6464_v20 = vrot.slane %v6442_v52, %v18979_v60  ;;  %17441 = vmatprep.mubr.msk.f32.mxu1 %vm18726_vm1, %v21969_v62  ;;  %v7213_v63 = vcombine.low %v6425_v21, %v6408_v39  ;;  %v7234_v46 = vrot.slane %v7212_v24, %v18979_v60 }
 0x96d   :  { %v20287_v28 = vpack.c.bf16 %v7135_v14, %v7121_v18  ;;  %v7242_v11 = vcombine.low %v7220_v45, %v7227_v30  ;;  %v6998_v54 = vrot.slane %v20242_v7, %v18979_v60  ;;  %v7272_v17 = vrot.slane %v7265_v12, %v18979_v60 }
 0x96e   :  { %v6471_v26 = vrot.slane %v6443_v5, %v18979_v60  ;;  %v6473_v3 = vcombine.high %v6457_v44, %v6457_v44  ;;  %v7241_v1 = vrot.slane %v7213_v63, %v18979_v60  ;;  %v7357_v42 = vrot.slane %v16376_v9, %v18979_v60 }
 0x96f   :  { %v7348_v33 = vcombine.low %v6450_v38, %v6464_v20  ;;  %v16377_v8 = vcombine.high %v6450_v38, %v6464_v20  ;;  %18161 = vmatpush3.bf16.xpose.msk.msra.mxu1 %vm19015_vm3, %v20287_v28  ;;  %v7250_v14 = vrot.slane %v7242_v11, %v18979_v60  ;;  %v6483_v7 = vrot.slane %v20227_v50, %v18979_v60 }
 0x970   :  { %v7350_v13 = vcombine.low %v6457_v44, %v6471_v26  ;;  %v6475_v6 = vcombine.high %v6471_v26, %v6471_v26  ;;  %18166 = vmatprep.subr.bf16.mxu1 %v21970_v15  ;;  %v7243_v34 = vcombine.low %v7234_v46, %v7241_v1  ;;  %v6490_v45 = vrot.slane %v6476_v36, %v18979_v60 }
 0x971   :  { %v7364_v48 = vrot.slane %v7348_v33, %v18979_v60  ;;  %v7371_v37 = vrot.slane %v16377_v8, %v18979_v60  ;;  %v7402_v40 = vrot.slane %v6473_v3, %v18979_v60  ;;  %v6491_v58 = vcombine.high %v6483_v7, %v6483_v7 }
 0x972   :  { %v7378_v43 = vrot.slane %v7350_v13, %v18979_v60  ;;  %v6499_v32 = vrot.slane %v6483_v7, %v18979_v60  ;;  %v7257_v0 = vrot.slane %v7243_v34, %v18979_v60  ;;  %v6492_v50 = vcombine.high %v6490_v45, %v6490_v45 }
 0x973   :  { %v7379_v31 = vcombine.low %v7357_v42, %v7364_v48  ;;  %v6506_v39 = vrot.slane %v6490_v45, %v18979_v60  ;;  %v6513_v49 = vrot.slane %v6491_v58, %v18979_v60  ;;  %v20319_v12 = vpack.c.bf16 %v6998_v54, %v20261_v27 }
 0x974   :  { %v7380_v41 = vcombine.low %v7371_v37, %v7378_v43  ;;  %v6521_v22 = vcombine.high %v6499_v32, %v6499_v32  ;;  %v7484_v51 = vcombine.low %v6475_v6, %v6499_v32  ;;  %v7258_v61 = vcombine.low %v7250_v14, %v7257_v0 }
 0x975   :  { %v7387_v36 = vrot.slane %v7379_v31, %v18979_v60  ;;  %v6520_v35 = vrot.slane %v6492_v50, %v18979_v60  ;;  %v6522_v52 = vcombine.high %v6506_v39, %v6506_v39  ;;  %v6523_v38 = vcombine.high %v6513_v49, %v6513_v49  ;;  %18157 = vmatpush3.bf16.xpose.msk.msra.mxu0 %vm19015_vm3, %v20319_v12 }
 0x976   :  { %v7394_v5 = vrot.slane %v7380_v41, %v18979_v60  ;;  %v7485_v18 = vcombine.low %v6513_v49, %v6521_v22  ;;  %v7494_v21 = vrot.slane %v7484_v51, %v18979_v60  ;;  %17442 = vmatmul.mubr.msk.f32.vlgmr.msra.gmra.mrb[68].mxu1 %vm163_vm2, %v19304_v23  ;;  %v20321_v9 = vpack.c.bf16 %v7272_v17, %v7258_v61 }
 0x977   :  { %v6524_v24 = vcombine.high %v6520_v35, %v6520_v35  ;;  %v7487_v30 = vcombine.low %v6520_v35, %v6522_v52  ;;  %17455 = vmatprep.mubr.msk.f32.mxu1 %vm18726_vm1, %v21969_v62  ;;  %v7409_v20 = vrot.slane %v7402_v40, %v18979_v60  ;;  %v7486_v63 = vcombine.low %v6523_v38, %v6506_v39 }
 0x978   :  { %v7395_v44 = vcombine.low %v7387_v36, %v7394_v5  ;;  %v7501_v46 = vrot.slane %v7485_v18, %v18979_v60  ;;  %18162 = vmatprep.subr.bf16.mxu0 %v21970_v15 }
 0x979   :  { %v7515_v11 = vrot.slane %v7487_v30, %v18979_v60  ;;  %v7508_v27 = vrot.slane %v7486_v63, %v18979_v60  ;;  %v7539_v17 = vrot.slane %v6524_v24, %v18979_v60 }
 0x97a   :  { %v7516_v54 = vcombine.low %v7494_v21, %v7501_v46  ;;  %v20334_v26 = vpack.c.bf16 %v7409_v20, %v7395_v44 }
 0x97b   :  { %v7517_v3 = vcombine.low %v7508_v27, %v7515_v11  ;;  %v7546_v33 = vrot.slane %v7539_v17, %v18979_v60 }
 0x97c   :  { %v7524_v1 = vrot.slane %v7516_v54, %v18979_v60  ;;  %18169 = vmatpush3.bf16.xpose.msk.msra.mxu1 %vm19015_vm3, %v20334_v26  ;;  %17435 = vmatmul.mubr.msk.f32.vlgmr.msra.gmra.mrb[58].mxu0 %vm163_vm2, %v19441_v25 }
 0x97d   :  { %18174 = vmatprep.subr.bf16.mxu1 %v21970_v15  ;;  %v7531_v42 = vrot.slane %v7517_v3, %v18979_v60  ;;  %18165 = vmatpush3.bf16.xpose.msk.msra.mxu0 %vm19015_vm3, %v20321_v9 }
 0x97e   :  { %17448 = vmatprep.mubr.msk.f32.mxu0 %vm18726_vm1, %v21969_v62  ;;  %18170 = vmatprep.subr.bf16.mxu0 %v21970_v15 }
 0x97f   :  { %v7532_v8 = vcombine.low %v7524_v1, %v7531_v42 }
 0x981   :  { %v20351_v14 = vpack.c.bf16 %v7546_v33, %v7532_v8 }
 0x983   :  { %17456 = vmatmul.mubr.msk.f32.vlgmr.msra.gmra.mrb[70].mxu1 %vm163_vm2, %v19360_v10 }
 0x984   :  { %18177 = vmatpush3.bf16.msk.msra.mxu1 %vm19731_vm10, %v20179_v59  ;;  %17469 = vmatprep.mubr.msk.f32.mxu1 %vm18726_vm1, %v21969_v62 }
 0x985   :  { %18178 = vmatprep.subr.bf16.mxu1 %v21970_v15  ;;  %17449 = vmatmul.mubr.msk.f32.vlgmr.msra.gmra.mrb[60].mxu0 %vm163_vm2, %v19470_v29 }
 0x986   :  { %18173 = vmatpush3.bf16.xpose.msk.msra.mxu0 %vm19015_vm3, %v20351_v14  ;;  %17462 = vmatprep.mubr.msk.f32.mxu0 %vm18726_vm1, %v21969_v62 }
 0x987   :  { %18182 = vmatprep.subr.bf16.mxu0 %v21970_v15 }
 0x98d   :  { %17463 = vmatmul.mubr.msk.f32.vlgmr.msra.gmra.mrb[62].mxu0 %vm163_vm2, %v19497_v47 }
 0x98e   :  { %18185 = vmatpush3.bf16.msk.msra.mxu0 %vm19731_vm10, %v20231_v53  ;;  %17483 = vmatprep.mubr.msk.f32.mxu0 %vm18726_vm1, %v21969_v62 }
 0x98f   :  { %18190 = vmatprep.subr.bf16.mxu0 %v21970_v15 }
 0xa2c   :  { %v20377_v59 = vpop.f32.mrb[62].mxu1 }
 0xa2d   :  { %v17415_v13 = vpop.f32.mrb[63].mxu1  ;;  %v7621_v20 = vsel %vm2880_vm11, %v20377_v59, -inf }
 0xa36   :  { %v20379_v6 = vpop.f32.mrb[64].mxu1 }
 0xa37   :  { %v17422_v7 = vpop.f32.mrb[65].mxu1  ;;  %v7624_v54 = vsel %vm2880_vm11, %v20379_v6, -inf }
 0xa3e   :  { %v6932_v34 = vpop.f32.mrb[66].mxu1 }
 0xa3f   :  { %v17429_v48 = vpop.f32.mrb[67].mxu1  ;;  %v7627_v37 = vsel %vm2880_vm11, %v6932_v34, -inf }
 0xa40   :  { %7628 = vmax.xlane.f32.xlu0 %v7627_v37 }
 0xa49   :  { %v7206_v45 = vpop.f32.mrb[68].mxu1 }
 0xa4a   :  { %v17443_v43 = vpop.f32.mrb[69].mxu1  ;;  %v7633_v53 = vsel %vm2880_vm11, %v7206_v45, -inf }
 0xa4b   :  { %7634 = vmax.xlane.f32.xlu1 %v7633_v53 }
 0xa4f   :  { %v7069_v40 = vpop.f32.mrb[58].mxu0 }
 0xa50   :  { %v17436_v58 = vpop.f32.mrb[59].mxu0  ;;  %v7630_v63 = vsel %vm2880_vm11, %v7069_v40, -inf }
 0xa56   :  { %v7480_v32 = vpop.f32.mrb[70].mxu1 }
 0xa57   :  { %v17457_v0 = vpop.f32.mrb[71].mxu1  ;;  %v7639_v31 = vsel %vm2880_vm11, %v7480_v32, -inf }
 0xa58   :  { %7640 = vmax.xlane.f32.xlu0 %v7639_v31  ;;  %v20384_v50 = vpop.f32.mrb[60].mxu0 }
 0xa59   :  { %v17450_v39 = vpop.f32.mrb[61].mxu0  ;;  %v7636_v17 = vsel %vm2880_vm11, %v20384_v50, -inf }
 0xa60   :  { %v7617_v41 = vpop.f32.mrb[62].mxu0 }
 0xa61   :  { %v17464_v49 = vpop.f32.mrb[63].mxu0  ;;  %v7642_v11 = vsel %vm2880_vm11, %v7617_v41, -inf }
 0xacd   :  { %v7629_v22 = vpop.xlane.xlu0 %7628 }
 0xace   :  { %v7647_v51 = vsub.f32 %v6932_v34, %v7629_v22 }
 0xad0   :  { %v7657_v61 = vmul.f32 1.442695, %v7647_v51 }
 0xad2   :  { %18570 = vpow2.f32 %v7657_v61 }
 0xad8   :  { %v7635_v36 = vpop.xlane.xlu1 %7634 }
 0xad9   :  { %v7649_v35 = vsub.f32 %v7206_v45, %v7635_v36 }
 0xadb   :  { %v7661_v52 = vmul.f32 1.442695, %v7649_v35 }
 0xadc   :  { %v18571_v5 = vpop.eup %18570 }
 0xadd   :  { %18572 = vpow2.f32 %v7661_v52  ;;  %v7675_v38 = vsel %vm2880_vm11, %v18571_v5, 0.0 }
 0xade   :  { %7676 = vadd.xlane.f32.xlu1 %v7675_v38  ;;  %v21973_v38 = vld [vmem:[#allocation2_spill] sm:$0xff] }
 0xae5   :  { %v7641_v18 = vpop.xlane.xlu0 %7640 }
 0xae6   :  { %v7651_v21 = vsub.f32 %v7480_v32, %v7641_v18 }
 0xae7   :  { %v18573_v24 = vpop.eup %18572 }
 0xae8   :  { %v7665_v30 = vmul.f32 1.442695, %v7651_v21  ;;  %v7681_v44 = vsel %vm2880_vm11, %v18573_v24, 0.0  ;;  %v20453_v21 = vld [vmem:[%s21951_s1] sm:$0xff] }
 0xae9   :  { %7682 = vadd.xlane.f32.xlu0 %v7681_v44  ;;  %v20463_v44 = vld [vmem:[%s21951_s1 + $0x8] sm:$0xff] }
 0xaea   :  { %18574 = vpow2.f32 %v7665_v30 }
 0xaed   :  { %7622 = vmax.xlane.f32.xlu0 %v7621_v20 }
 0xaf1   :  { %7631 = vmax.xlane.f32.xlu0 %v7630_v63  ;;  %v20473_v63 = vld [vmem:[%s21951_s1 + $0x10] sm:$0xff] }
 0xaf4   :  { %v18575_v46 = vpop.eup %18574 }
 0xaf5   :  { %v7687_v27 = vsel %vm2880_vm11, %v18575_v46, 0.0  ;;  %7643 = vmax.xlane.f32.xlu0 %v7642_v11  ;;  %v20491_v11 = vld [vmem:[%s21951_s1 + $0x20] sm:$0xff] }
 0xaf6   :  { %7688 = vadd.xlane.f32.xlu1 %v7687_v27  ;;  %v20500_v27 = vld [vmem:[%s21951_s1 + $0x28] sm:$0xff] }
 0xafa   :  { %7625 = vmax.xlane.f32.xlu1 %v7624_v54  ;;  %v20509_v54 = vld [vmem:[%s21951_s1 + $0x30] sm:$0xff] }
 0xafe   :  { %7637 = vmax.xlane.f32.xlu1 %v7636_v17  ;;  %v20518_v17 = vld [vmem:[%s21951_s1 + $0x38] sm:$0xff] }
 0xb6b   :  { %v7677_v3 = vpop.xlane.xlu1 %7676 }
 0xb6c   :  { %18576 = vrcp.f32 %v7677_v3  ;;  %v20527_v3 = vld [vmem:[%s21951_s1 + $0x40] sm:$0xff] }
 0xb76   :  { %v18577_v1 = vpop.eup %18576  ;;  %v7683_v42 = vpop.xlane.xlu0 %7682 }
 0xb77   :  { %18578 = vrcp.f32 %v7683_v42  ;;  %v7698_v33 = vmul.f32 %v18577_v1, %v18571_v5 }
 0xb79   :  { %v7712_v8 = vsel %vm7709_vm15, %v7698_v33, 0.0 }
 0xb7a   :  { %v7623_v13 = vpop.xlane.xlu0 %7622  ;;  %16386 = vst.msk [vmem:[%s21952_s9 + $0x90] sm:$0x3f] %vm2880_vm11, %v7712_v8  ;;  %17484 = vmatmul.mubr.msk.f32.vlgmr.msra.gmra.mrb[34].mxu0 %vm4749_vm13, %v7712_v8 }
 0xb7b   :  { %v7645_v7 = vsub.f32 %v20377_v59, %v7623_v13  ;;  %18193 = vmatpush3.bf16.msk.msra.mxu0 %vm19731_vm10, %v20287_v28  ;;  %17497 = vmatprep.mubr.msk.f32.mxu0 %vm18726_vm1, %v21969_v62 }
 0xb7c   :  { %18198 = vmatprep.subr.bf16.mxu0 %v21970_v15 }
 0xb7d   :  { %v7653_v34 = vmul.f32 1.442695, %v7645_v7 }
 0xb7e   :  { %v7632_v48 = vpop.xlane.xlu0 %7631 }
 0xb7f   :  { %18580 = vpow2.f32 %v7653_v34  ;;  %v7648_v37 = vsub.f32 %v7069_v40, %v7632_v48 }
 0xb81   :  { %v18579_v45 = vpop.eup %18578  ;;  %v7659_v43 = vmul.f32 1.442695, %v7648_v37 }
 0xb82   :  { %v7644_v53 = vpop.xlane.xlu0 %7643  ;;  %v7702_v58 = vmul.f32 %v18579_v45, %v18573_v24 }
 0xb83   :  { %v7689_v32 = vpop.xlane.xlu1 %7688  ;;  %18582 = vpow2.f32 %v7659_v43  ;;  %v7652_v59 = vsub.f32 %v7617_v41, %v7644_v53 }
 0xb84   :  { %18584 = vrcp.f32 %v7689_v32  ;;  %v7714_v28 = vsel %vm7709_vm15, %v7702_v58, 0.0 }
 0xb85   :  { %v7667_v0 = vmul.f32 1.442695, %v7652_v59  ;;  %16388 = vst.msk [vmem:[%s21952_s9 + $0xa0] sm:$0x3f] %vm2880_vm11, %v7714_v28  ;;  %17498 = vmatmul.mubr.msk.f32.vlgmr.msra.gmra.mrb[36].mxu0 %vm4749_vm13, %v7714_v28 }
 0xb86   :  { %18201 = vmatpush3.bf16.msk.msra.mxu0 %vm19731_vm10, %v20334_v26  ;;  %17511 = vmatprep.mubr.msk.f32.mxu0 %vm18726_vm1, %v21969_v62 }
 0xb87   :  { %v7626_v40 = vpop.xlane.xlu1 %7625  ;;  %18586 = vpow2.f32 %v7667_v0  ;;  %17521 = vmatprep.subr.mxu0 %v21969_v62 }
 0xb88   :  { %v7646_v31 = vsub.f32 %v20379_v6, %v7626_v40 }
 0xb89   :  { %v20426_v39 = vpop.eup %18580 }
 0xb8a   :  { %v7655_v41 = vmul.f32 1.442695, %v7646_v31  ;;  %v7669_v49 = vsel %vm2880_vm11, %v20426_v39, 0.0 }
 0xb8b   :  { %v7638_v22 = vpop.xlane.xlu1 %7637  ;;  %7670 = vadd.xlane.f32.xlu1 %v7669_v49 }
 0xb8c   :  { %18588 = vpow2.f32 %v7655_v41  ;;  %v7650_v26 = vsub.f32 %v20384_v50, %v7638_v22 }
 0xb8d   :  { %v20431_v51 = vpop.eup %18582 }
 0xb8e   :  { %v18585_v61 = vpop.eup %18584  ;;  %v7663_v36 = vmul.f32 1.442695, %v7650_v26  ;;  %v7678_v35 = vsel %vm2880_vm11, %v20431_v51, 0.0 }
 0xb8f   :  { %v7706_v52 = vmul.f32 %v18585_v61, %v18575_v46  ;;  %7679 = vadd.xlane.f32.xlu1 %v7678_v35  ;;  %v20482_v46 = vld [vmem:[%s21951_s1 + $0x18] sm:$0xff] }
 0xb90   :  { %18590 = vpow2.f32 %v7663_v36 }
 0xb91   :  { %v20435_v6 = vpop.eup %18586  ;;  %v7716_v5 = vsel %vm7709_vm15, %v7706_v52, 0.0 }
 0xb92   :  { %16390 = vst.msk [vmem:[%s21952_s9 + $0xb0] sm:$0x3f] %vm2880_vm11, %v7716_v5  ;;  %17512 = vmatmul.mubr.msk.f32.vlgmr.msra.gmra.mrb[38].mxu0 %vm4749_vm13, %v7716_v5  ;;  %v7690_v50 = vsel %vm2880_vm11, %v20435_v6, 0.0 }
 0xb93   :  { %17522 = vmatpush3.msra.mxu0 %v21973_v38  ;;  %17523 = vmatprep.mubr.msk.f32.mxu0 %vm18726_vm1, %v21969_v62 }
 0xb94   :  { %7691 = vadd.xlane.f32.xlu1 %v7690_v50  ;;  %18222 = vmatprep.subr.bf16.mxu0 %v21970_v15 }
 0xb96   :  { %v18589_v18 = vpop.eup %18588  ;;  %17524 = vmatmul.mubr.msk.f32.vlgmr.msra.gmra.mrb[64].mxu0 %vm45_vm0, %v20453_v21 }
 0xb97   :  { %v7672_v24 = vsel %vm2880_vm11, %v18589_v18, 0.0  ;;  %17526 = vmatprep.mubr.msk.f32.mxu0 %vm18726_vm1, %v21969_v62 }
 0xb98   :  { %7673 = vadd.xlane.f32.xlu0 %v7672_v24 }
 0xb9a   :  { %v18591_v30 = vpop.eup %18590  ;;  %17527 = vmatmul.mubr.msk.f32.gmra.mrb[66].mxu0 %vm45_vm0, %v20463_v44 }
 0xb9b   :  { %v7684_v20 = vsel %vm2880_vm11, %v18591_v30, 0.0  ;;  %17529 = vmatprep.mubr.msk.f32.mxu0 %vm18726_vm1, %v21969_v62 }
 0xb9c   :  { %7685 = vadd.xlane.f32.xlu0 %v7684_v20 }
 0xb9e   :  { %17530 = vmatmul.mubr.msk.f32.gmra.mrb[68].mxu0 %vm45_vm0, %v20473_v63 }
 0xb9f   :  { %17532 = vmatprep.mubr.msk.f32.mxu0 %vm18726_vm1, %v21969_v62 }
 0xba2   :  { %17533 = vmatmul.mubr.msk.f32.gmra.mrb[70].mxu0 %vm45_vm0, %v20482_v46 }
 0xba3   :  { %17535 = vmatprep.mubr.msk.f32.mxu0 %vm18726_vm1, %v21969_v62 }
 0xba6   :  { %17536 = vmatmul.mubr.msk.f32.gmra.mrb[72].mxu0 %vm45_vm0, %v20491_v11 }
 0xba7   :  { %17538 = vmatprep.mubr.msk.f32.mxu0 %vm18726_vm1, %v21969_v62 }
 0xbaa   :  { %17539 = vmatmul.mubr.msk.f32.gmra.mrb[74].mxu0 %vm45_vm0, %v20500_v27 }
 0xbab   :  { %17541 = vmatprep.mubr.msk.f32.mxu0 %vm18726_vm1, %v21969_v62 }
 0xbae   :  { %17542 = vmatmul.mubr.msk.f32.gmra.mrb[76].mxu0 %vm45_vm0, %v20509_v54 }
 0xbaf   :  { %17544 = vmatprep.mubr.msk.f32.mxu0 %vm18726_vm1, %v21969_v62 }
 0xbb2   :  { %17545 = vmatmul.mubr.msk.f32.gmra.mrb[78].mxu0 %vm45_vm0, %v20518_v17 }
 0xbb3   :  { %17547 = vmatprep.mubr.msk.f32.mxu0 %vm18726_vm1, %v21969_v62 }
 0xbb6   :  { %17548 = vmatmul.mubr.msk.f32.gmra.mrb[80].mxu0 %vm45_vm0, %v20527_v3 }
 0xbb7   :  { %17582 = vmatprep.mubr.msk.f32.mxu0 %vm18726_vm1, %v21969_v62 }
 0xc18   :  { %v7671_v1 = vpop.xlane.xlu1 %7670 }
 0xc19   :  { %18592 = vrcp.f32 %v7671_v1 }
 0xc1c   :  { %v7680_v42 = vpop.xlane.xlu1 %7679 }
 0xc1d   :  { %18594 = vrcp.f32 %v7680_v42 }
 0xc21   :  { %v7692_v33 = vpop.xlane.xlu1 %7691 }
 0xc22   :  { %18596 = vrcp.f32 %v7692_v33 }
 0xc23   :  { %v18593_v8 = vpop.eup %18592 }
 0xc24   :  { %v7694_v13 = vmul.f32 %v18593_v8, %v20426_v39 }
 0xc25   :  { %v7674_v7 = vpop.xlane.xlu0 %7673 }
 0xc26   :  { %18598 = vrcp.f32 %v7674_v7  ;;  %v7710_v34 = vsel %vm7709_vm15, %v7694_v13, 0.0 }
 0xc27   :  { %v18595_v48 = vpop.eup %18594  ;;  %16384 = vst.msk [vmem:[%s21952_s9 + $0x80] sm:$0x3f] %vm2880_vm11, %v7710_v34  ;;  %17470 = vmatmul.mubr.msk.f32.vlgmr.msra.gmra.mrb[52].mxu1 %vm4749_vm13, %v7710_v34 }
 0xc28   :  { %18181 = vmatpush3.bf16.msk.msra.mxu1 %vm19731_vm10, %v20212_v57  ;;  %17476 = vmatprep.mubr.msk.f32.mxu1 %vm18726_vm1, %v21969_v62  ;;  %v7700_v37 = vmul.f32 %v18595_v48, %v20431_v51 }
 0xc29   :  { %v7686_v45 = vpop.xlane.xlu0 %7685  ;;  %18186 = vmatprep.subr.bf16.mxu1 %v21970_v15 }
 0xc2a   :  { %18600 = vrcp.f32 %v7686_v45  ;;  %v7713_v43 = vsel %vm7709_vm15, %v7700_v37, 0.0 }
 0xc2b   :  { %16387 = vst.msk [vmem:[%s21952_s9 + $0x98] sm:$0x3f] %vm2880_vm11, %v7713_v43 }
 0xc2c   :  { %v18597_v53 = vpop.eup %18596 }
 0xc2d   :  { %v7708_v57 = vmul.f32 %v18597_v53, %v20435_v6 }
 0xc2f   :  { %v7717_v58 = vsel %vm7709_vm15, %v7708_v57, 0.0 }
 0xc30   :  { %v18599_v32 = vpop.eup %18598  ;;  %16391 = vst.msk [vmem:[%s21952_s9 + $0xb8] sm:$0x3f] %vm2880_vm11, %v7717_v58 }
 0xc31   :  { %v7696_v59 = vmul.f32 %v18599_v32, %v18589_v18 }
 0xc33   :  { %v7711_v28 = vsel %vm7709_vm15, %v7696_v59, 0.0 }
 0xc34   :  { %v18601_v0 = vpop.eup %18600  ;;  %16385 = vst.msk [vmem:[%s21952_s9 + $0x88] sm:$0x3f] %vm2880_vm11, %v7711_v28  ;;  %17477 = vmatmul.mubr.msk.f32.vlgmr.msra.gmra.mrb[54].mxu1 %vm4749_vm13, %v7711_v28 }
 0xc35   :  { %18189 = vmatpush3.bf16.msk.msra.mxu1 %vm19731_vm10, %v20319_v12  ;;  %17490 = vmatprep.mubr.msk.f32.mxu1 %vm18726_vm1, %v21969_v62  ;;  %v7704_v40 = vmul.f32 %v18601_v0, %v18591_v30 }
 0xc36   :  { %18194 = vmatprep.subr.bf16.mxu1 %v21970_v15 }
 0xc37   :  { %v7715_v31 = vsel %vm7709_vm15, %v7704_v40, 0.0 }
 0xc38   :  { %17491 = vmatmul.mubr.msk.f32.vlgmr.msra.gmra.mrb[56].mxu1 %vm4749_vm13, %v7713_v43  ;;  %16389 = vst.msk [vmem:[%s21952_s9 + $0xa8] sm:$0x3f] %vm2880_vm11, %v7715_v31 }
 0xc39   :  { %18197 = vmatpush3.bf16.msk.msra.mxu1 %vm19731_vm10, %v20321_v9  ;;  %17504 = vmatprep.mubr.msk.f32.mxu1 %vm18726_vm1, %v21969_v62 }
 0xc3a   :  { %18202 = vmatprep.subr.bf16.mxu1 %v21970_v15 }
 0xc3c   :  { %17505 = vmatmul.mubr.msk.f32.vlgmr.msra.gmra.mrb[58].mxu1 %vm4749_vm13, %v7715_v31 }
 0xc3d   :  { %18205 = vmatpush3.bf16.msk.msra.mxu1 %vm19731_vm10, %v20351_v14  ;;  %17518 = vmatprep.mubr.msk.f32.mxu1 %vm18726_vm1, %v21969_v62 }
 0xc3e   :  { %18206 = vmatprep.subr.bf16.mxu1 %v21970_v15 }
 0xc40   :  { %17519 = vmatmul.mubr.msk.f32.vlgmr.msra.gmra.mrb[60].mxu1 %vm4749_vm13, %v7717_v58 }
 0xc41   :  { %17554 = vmatprep.mubr.msk.f32.mxu1 %vm18726_vm1, %v21969_v62 }
 0xc69   :  { %v8409_v12 = vpop.f32.mrb[64].mxu0 }
 0xc6a   :  { %v8462_v9 = vcombine.high %v8409_v12, %v8409_v12  ;;  %v8469_v39 = vrot.slane %v8409_v12, %v18979_v60  ;;  %v17525_v41 = vpop.f32.mrb[65].mxu0 }
 0xc6c   :  { %v8476_v49 = vrot.slane %v8462_v9, %v18979_v60  ;;  %v8477_v22 = vcombine.high %v8469_v39, %v8469_v39  ;;  %v8485_v51 = vrot.slane %v8469_v39, %v18979_v60 }
 0xc6d   :  { %v8414_v26 = vpop.f32.mrb[66].mxu0 }
 0xc6e   :  { %v8478_v14 = vcombine.high %v8476_v49, %v8476_v49  ;;  %v8499_v61 = vrot.slane %v8477_v22, %v18979_v60  ;;  %v8511_v36 = vcombine.high %v8414_v26, %v8414_v26  ;;  %v17528_v35 = vpop.f32.mrb[67].mxu0  ;;  %v8492_v52 = vrot.slane %v8476_v49, %v18979_v60 }
 0xc6f   :  { %v8518_v6 = vrot.slane %v8414_v26, %v18979_v60 }
 0xc70   :  { %v8506_v5 = vrot.slane %v8478_v14, %v18979_v60  ;;  %v8903_v50 = vcombine.low %v8485_v51, %v8499_v61  ;;  %v16417_v38 = vcombine.high %v8485_v51, %v8499_v61  ;;  %v8525_v18 = vrot.slane %v8511_v36, %v18979_v60 }
 0xc71   :  { %v8526_v24 = vcombine.high %v8518_v6, %v8518_v6  ;;  %v8534_v30 = vrot.slane %v8518_v6, %v18979_v60  ;;  %v8419_v20 = vpop.f32.mrb[68].mxu0 }
 0xc72   :  { %v8905_v1 = vcombine.low %v8492_v52, %v8506_v5  ;;  %v16418_v42 = vcombine.high %v8492_v52, %v8506_v5  ;;  %v8913_v33 = vrot.slane %v8903_v50, %v18979_v60  ;;  %v8920_v8 = vrot.slane %v16417_v38, %v18979_v60  ;;  %v17531_v13 = vpop.f32.mrb[69].mxu0 }
 0xc73   :  { %v8527_v7 = vcombine.high %v8525_v18, %v8525_v18  ;;  %v8541_v34 = vrot.slane %v8525_v18, %v18979_v60  ;;  %v8548_v48 = vrot.slane %v8526_v24, %v18979_v60  ;;  %v8556_v37 = vcombine.high %v8534_v30, %v8534_v30 }
 0xc74   :  { %v8927_v45 = vrot.slane %v8905_v1, %v18979_v60  ;;  %v8934_v43 = vrot.slane %v16418_v42, %v18979_v60  ;;  %v8935_v53 = vcombine.low %v8913_v33, %v8920_v8  ;;  %v8958_v57 = vrot.slane %v8534_v30, %v18979_v60 }
 0xc75   :  { %v8555_v58 = vrot.slane %v8527_v7, %v18979_v60  ;;  %v8557_v32 = vcombine.high %v8541_v34, %v8541_v34  ;;  %v8558_v59 = vcombine.high %v8548_v48, %v8548_v48  ;;  %v9040_v28 = vcombine.low %v8548_v48, %v8556_v37  ;;  %v8424_v0 = vpop.f32.mrb[70].mxu0 }
 0xc76   :  { %v8936_v40 = vcombine.low %v8927_v45, %v8934_v43  ;;  %v8560_v31 = vcombine.high %v8419_v20, %v8419_v20  ;;  %v17534_v12 = vpop.f32.mrb[71].mxu0  ;;  %v8943_v9 = vrot.slane %v8935_v53, %v18979_v60  ;;  %v8965_v39 = vrot.slane %v8958_v57, %v18979_v60 }
 0xc77   :  { %v9041_v41 = vcombine.low %v8558_v59, %v8541_v34  ;;  %v8559_v49 = vcombine.high %v8555_v58, %v8555_v58  ;;  %v8567_v26 = vrot.slane %v8419_v20, %v18979_v60  ;;  %v8609_v51 = vcombine.high %v8424_v0, %v8424_v0 }
 0xc78   :  { %v8950_v22 = vrot.slane %v8936_v40, %v18979_v60  ;;  %v8574_v14 = vrot.slane %v8560_v31, %v18979_v60  ;;  %v9042_v61 = vcombine.low %v8555_v58, %v8557_v32  ;;  %v9050_v36 = vrot.slane %v9040_v28, %v18979_v60 }
 0xc79   :  { %v9057_v35 = vrot.slane %v9041_v41, %v18979_v60  ;;  %v8616_v52 = vrot.slane %v8424_v0, %v18979_v60  ;;  %v8429_v6 = vpop.f32.mrb[72].mxu0  ;;  %v8575_v50 = vcombine.high %v8567_v26, %v8567_v26  ;;  %v8583_v18 = vrot.slane %v8567_v26, %v18979_v60 }
 0xc7a   :  { %v8951_v5 = vcombine.low %v8943_v9, %v8950_v22  ;;  %v8576_v38 = vcombine.high %v8574_v14, %v8574_v14  ;;  %v17537_v24 = vpop.f32.mrb[73].mxu0  ;;  %v8590_v20 = vrot.slane %v8574_v14, %v18979_v60  ;;  %v8623_v1 = vrot.slane %v8609_v51, %v18979_v60 }
 0xc7b   :  { %v9072_v30 = vcombine.low %v9050_v36, %v9057_v35  ;;  %v8624_v42 = vcombine.high %v8616_v52, %v8616_v52  ;;  %v8597_v8 = vrot.slane %v8575_v50, %v18979_v60  ;;  %v9043_v7 = vcombine.low %v8559_v49, %v8583_v18 }
 0xc7c   :  { %v20625_v33 = vpack.c.bf16 %v8965_v39, %v8951_v5  ;;  %v8604_v13 = vrot.slane %v8576_v38, %v18979_v60  ;;  %v9064_v34 = vrot.slane %v9042_v61, %v18979_v60  ;;  %v8625_v48 = vcombine.high %v8623_v1, %v8623_v1 }
 0xc7d   :  { %v8632_v37 = vrot.slane %v8616_v52, %v18979_v60  ;;  %v8639_v45 = vrot.slane %v8623_v1, %v18979_v60  ;;  %v8434_v43 = vpop.f32.mrb[74].mxu0  ;;  %v9071_v53 = vrot.slane %v9043_v7, %v18979_v60  ;;  %v9095_v57 = vrot.slane %v8597_v8, %v18979_v60 }
 0xc7e   :  { %v16425_v58 = vcombine.high %v8583_v18, %v8597_v8  ;;  %v9178_v32 = vcombine.low %v8590_v20, %v8604_v13  ;;  %v17540_v59 = vpop.f32.mrb[75].mxu0  ;;  %18209 = vmatpush3.bf16.xpose.msk.msra.mxu1 %vm19015_vm3, %v20625_v33  ;;  %v16426_v28 = vcombine.high %v8590_v20, %v8604_v13  ;;  %v8646_v0 = vrot.slane %v8624_v42, %v18979_v60 }
 0xc7f   :  { %v8653_v40 = vrot.slane %v8625_v48, %v18979_v60  ;;  %v8654_v31 = vcombine.high %v8632_v37, %v8632_v37  ;;  %18210 = vmatprep.subr.bf16.mxu1 %v21970_v15  ;;  %v9080_v12 = vrot.slane %v9072_v30, %v18979_v60  ;;  %v9073_v9 = vcombine.low %v9064_v34, %v9071_v53 }
 0xc80   :  { %v9187_v39 = vrot.slane %v16425_v58, %v18979_v60  ;;  %v9194_v41 = vrot.slane %v9178_v32, %v18979_v60  ;;  %v9102_v49 = vrot.slane %v9095_v57, %v18979_v60  ;;  %v8655_v22 = vcombine.high %v8639_v45, %v8639_v45 }
 0xc81   :  { %v8656_v26 = vcombine.high %v8646_v0, %v8646_v0  ;;  %v9180_v14 = vcombine.low %v8632_v37, %v8646_v0  ;;  %v20644_v51 = vpop.f32.mrb[76].mxu0  ;;  %v9087_v61 = vrot.slane %v9073_v9, %v18979_v60  ;;  %v9201_v36 = vrot.slane %v16426_v28, %v18979_v60 }
 0xc82   :  { %v9209_v35 = vcombine.low %v9187_v39, %v9194_v41  ;;  %v9232_v52 = vrot.slane %v8654_v31, %v18979_v60  ;;  %v17543_v5 = vpop.f32.mrb[77].mxu0  ;;  %v9315_v18 = vcombine.low %v8653_v40, %v8655_v22  ;;  %v8658_v24 = vcombine.high %v8429_v6, %v8429_v6 }
 0xc83   :  { %v9208_v50 = vrot.slane %v9180_v14, %v18979_v60  ;;  %v9314_v38 = vcombine.low %v8656_v26, %v8639_v45  ;;  %v9088_v30 = vcombine.low %v9080_v12, %v9087_v61  ;;  %v8657_v1 = vcombine.high %v8653_v40, %v8653_v40 }
 0xc84   :  { %v9217_v20 = vrot.slane %v9209_v35, %v18979_v60  ;;  %v8665_v42 = vrot.slane %v8429_v6, %v18979_v60  ;;  %v9331_v7 = vrot.slane %v9315_v18, %v18979_v60  ;;  %v8672_v34 = vrot.slane %v8658_v24, %v18979_v60 }
 0xc85   :  { %v9210_v8 = vcombine.low %v9201_v36, %v9208_v50  ;;  %v9324_v13 = vrot.slane %v9314_v38, %v18979_v60  ;;  %v20655_v48 = vpop.f32.mrb[78].mxu0  ;;  %17555 = vmatmul.mubr.msk.f32.vlgmr.msra.gmra.mrb[72].mxu1 %vm163_vm2, %v19293_v19  ;;  %v20659_v37 = vpack.c.bf16 %v9102_v49, %v9088_v30  ;;  %v8707_v57 = vcombine.high %v8434_v43, %v8434_v43 }
 0xc86   :  { %v8673_v45 = vcombine.high %v8665_v42, %v8665_v42  ;;  %v8681_v53 = vrot.slane %v8665_v42, %v18979_v60  ;;  %17561 = vmatprep.mubr.msk.f32.mxu1 %vm18726_vm1, %v21969_v62  ;;  %v17546_v6 = vpop.f32.mrb[79].mxu0  ;;  %v9239_v32 = vrot.slane %v9232_v52, %v18979_v60  ;;  %v8674_v28 = vcombine.high %v8672_v34, %v8672_v34 }
 0xc87   :  { %v9224_v58 = vrot.slane %v9210_v8, %v18979_v60  ;;  %v9346_v59 = vcombine.low %v9324_v13, %v9331_v7  ;;  %v8714_v12 = vrot.slane %v8434_v43, %v18979_v60  ;;  %18213 = vmatpush3.bf16.xpose.msk.msra.mxu1 %vm19015_vm3, %v20659_v37  ;;  %v8688_v39 = vrot.slane %v8672_v34, %v18979_v60 }
 0xc88   :  { %v8695_v0 = vrot.slane %v8673_v45, %v18979_v60  ;;  %v8703_v40 = vcombine.high %v8681_v53, %v8681_v53  ;;  %v9316_v31 = vcombine.low %v8657_v1, %v8681_v53  ;;  %v8702_v41 = vrot.slane %v8674_v28, %v18979_v60  ;;  %18214 = vmatprep.subr.bf16.mxu1 %v21970_v15 }
 0xc89   :  { %v9225_v9 = vcombine.low %v9217_v20, %v9224_v58  ;;  %v8721_v49 = vrot.slane %v8707_v57, %v18979_v60  ;;  %v20675_v22 = vpop.f32.mrb[80].mxu0  ;;  %v8722_v43 = vcombine.high %v8714_v12, %v8714_v12  ;;  %v8730_v24 = vrot.slane %v8714_v12, %v18979_v60 }
 0xc8a   :  { %v8705_v26 = vcombine.high %v8695_v0, %v8695_v0  ;;  %v9317_v14 = vcombine.low %v8695_v0, %v8703_v40  ;;  %v9338_v61 = vrot.slane %v9316_v31, %v18979_v60  ;;  %v17549_v36 = vpop.f32.mrb[81].mxu0  ;;  %v9451_v52 = vcombine.low %v8688_v39, %v8702_v41 }
 0xc8b   :  { %v20678_v35 = vpack.c.bf16 %v9239_v32, %v9225_v9  ;;  %v16433_v5 = vcombine.high %v8688_v39, %v8702_v41  ;;  %v8723_v50 = vcombine.high %v8721_v49, %v8721_v49  ;;  %v8737_v30 = vrot.slane %v8721_v49, %v18979_v60 }
 0xc8c   :  { %v9345_v38 = vrot.slane %v9317_v14, %v18979_v60  ;;  %v20682_v18 = vrot.slane %v8705_v26, %v18979_v60  ;;  %v9461_v20 = vrot.slane %v9451_v52, %v18979_v60  ;;  %v8744_v42 = vrot.slane %v8722_v43, %v18979_v60 }
 0xc8d   :  { %v9468_v1 = vrot.slane %v16433_v5, %v18979_v60  ;;  %v8751_v8 = vrot.slane %v8723_v50, %v18979_v60  ;;  %v9354_v13 = vrot.slane %v9346_v59, %v18979_v60  ;;  %v8753_v34 = vcombine.high %v8737_v30, %v8737_v30 }
 0xc8e   :  { %v9347_v7 = vcombine.low %v9338_v61, %v9345_v38  ;;  %v9506_v45 = vrot.slane %v8737_v30, %v18979_v60  ;;  %v9376_v53 = vrot.slane %v20682_v18, %v18979_v60  ;;  %v9453_v6 = vcombine.low %v8730_v24, %v8744_v42  ;;  %17562 = vmatmul.mubr.msk.f32.vlgmr.msra.gmra.mrb[74].mxu1 %vm163_vm2, %v19350_v2 }
 0xc8f   :  { %v9483_v57 = vcombine.low %v9461_v20, %v9468_v1  ;;  %v16434_v58 = vcombine.high %v8730_v24, %v8744_v42  ;;  %v9588_v28 = vcombine.low %v8751_v8, %v8753_v34  ;;  %v8755_v0 = vcombine.high %v8751_v8, %v8751_v8  ;;  %18217 = vmatpush3.bf16.xpose.msk.msra.mxu1 %vm19015_vm3, %v20678_v35 }
 0xc90   :  { %v9361_v32 = vrot.slane %v9347_v7, %v18979_v60  ;;  %v8756_v59 = vcombine.high %v20644_v51, %v20644_v51  ;;  %v9475_v40 = vrot.slane %v9453_v6, %v18979_v60  ;;  %v9513_v12 = vrot.slane %v9506_v45, %v18979_v60  ;;  %17568 = vmatprep.mubr.msk.f32.mxu1 %vm18726_vm1, %v21969_v62 }
 0xc91   :  { %v9482_v31 = vrot.slane %v16434_v58, %v18979_v60  ;;  %v8763_v9 = vrot.slane %v20644_v51, %v18979_v60  ;;  %v9491_v41 = vrot.slane %v9483_v57, %v18979_v60  ;;  %v8805_v26 = vcombine.high %v20655_v48, %v20655_v48  ;;  %18218 = vmatprep.subr.bf16.mxu1 %v21970_v15 }
 0xc92   :  { %v20709_v39 = vcombine.low %v9354_v13, %v9361_v32  ;;  %v8770_v49 = vrot.slane %v8756_v59, %v18979_v60  ;;  %v8812_v51 = vrot.slane %v20655_v48, %v18979_v60  ;;  %v9598_v5 = vrot.slane %v9588_v28, %v18979_v60 }
 0xc93   :  { %v9484_v14 = vcombine.low %v9475_v40, %v9482_v31  ;;  %v8771_v61 = vcombine.high %v8763_v9, %v8763_v9  ;;  %v8779_v43 = vrot.slane %v8763_v9, %v18979_v60  ;;  %v8819_v50 = vrot.slane %v8805_v26, %v18979_v60 }
 0xc94   :  { %v8772_v36 = vcombine.high %v8770_v49, %v8770_v49  ;;  %v8786_v52 = vrot.slane %v8770_v49, %v18979_v60  ;;  %v8820_v42 = vcombine.high %v8812_v51, %v8812_v51  ;;  %v8854_v48 = vcombine.high %v20675_v22, %v20675_v22 }
 0xc95   :  { %v9498_v38 = vrot.slane %v9484_v14, %v18979_v60  ;;  %v8793_v24 = vrot.slane %v8771_v61, %v18979_v60  ;;  %v8801_v30 = vcombine.high %v8779_v43, %v8779_v43  ;;  %v9589_v20 = vcombine.low %v8755_v0, %v8779_v43 }
 0xc96   :  { %v8800_v1 = vrot.slane %v8772_v36, %v18979_v60  ;;  %v8821_v8 = vcombine.high %v8819_v50, %v8819_v50  ;;  %17569 = vmatmul.mubr.msk.f32.vlgmr.msra.gmra.mrb[76].mxu1 %vm163_vm2, %v19396_v4  ;;  %v8835_v58 = vrot.slane %v8819_v50, %v18979_v60  ;;  %v8842_v32 = vrot.slane %v8820_v42, %v18979_v60 }
 0xc97   :  { %v9499_v13 = vcombine.low %v9491_v41, %v9498_v38  ;;  %v8803_v7 = vcombine.high %v8793_v24, %v8793_v24  ;;  %v9590_v34 = vcombine.low %v8793_v24, %v8801_v30  ;;  %v9605_v45 = vrot.slane %v9589_v20, %v18979_v60  ;;  %17575 = vmatprep.mubr.msk.f32.mxu1 %vm18726_vm1, %v21969_v62 }
 0xc98   :  { %v9643_v57 = vrot.slane %v8800_v1, %v18979_v60  ;;  %v16441_v6 = vcombine.high %v8786_v52, %v8800_v1  ;;  %v8828_v40 = vrot.slane %v8812_v51, %v18979_v60  ;;  %v8849_v41 = vrot.slane %v8821_v8, %v18979_v60 }
 0xc99   :  { %v20735_v28 = vpack.c.bf16 %v9513_v12, %v9499_v13  ;;  %v9591_v0 = vcombine.low %v8803_v7, %v8786_v52  ;;  %v9620_v59 = vcombine.low %v9598_v5, %v9605_v45  ;;  %v9612_v31 = vrot.slane %v9590_v34, %v18979_v60 }
 0xc9a   :  { %v9650_v9 = vrot.slane %v9643_v57, %v18979_v60  ;;  %v8851_v49 = vcombine.high %v8835_v58, %v8835_v58  ;;  %v9735_v14 = vrot.slane %v16441_v6, %v18979_v60  ;;  %v9726_v61 = vcombine.low %v8828_v40, %v8842_v32 }
 0xc9b   :  { %v9619_v26 = vrot.slane %v9591_v0, %v18979_v60  ;;  %v16442_v43 = vcombine.high %v8828_v40, %v8842_v32  ;;  %18225 = vmatpush3.bf16.xpose.msk.msra.mxu0 %vm19015_vm3, %v20735_v28  ;;  %v9628_v12 = vrot.slane %v9620_v59, %v18979_v60  ;;  %v9728_v51 = vcombine.low %v8835_v58, %v8849_v41 }
 0xc9c   :  { %v8853_v36 = vcombine.high %v8849_v41, %v8849_v41  ;;  %v8861_v52 = vrot.slane %v20675_v22, %v18979_v60  ;;  %18230 = vmatprep.subr.bf16.mxu0 %v21970_v15  ;;  %v9742_v50 = vrot.slane %v9726_v61, %v18979_v60  ;;  %v9780_v38 = vrot.slane %v8851_v49, %v18979_v60 }
 0xc9d   :  { %v9621_v5 = vcombine.low %v9612_v31, %v9619_v26  ;;  %v8868_v24 = vrot.slane %v8854_v48, %v18979_v60  ;;  %v9749_v30 = vrot.slane %v16442_v43, %v18979_v60  ;;  %v9756_v20 = vrot.slane %v9728_v51, %v18979_v60 }
 0xc9e   :  { %v8869_v1 = vcombine.high %v8861_v52, %v8861_v52  ;;  %v8877_v42 = vrot.slane %v8861_v52, %v18979_v60  ;;  %v9757_v13 = vcombine.low %v9735_v14, %v9742_v50  ;;  %v20769_v14 = vpack.c.bf16 %v9376_v53, %v20709_v39 }
 0xc9f   :  { %v9635_v8 = vrot.slane %v9621_v5, %v18979_v60  ;;  %v8870_v22 = vcombine.high %v8868_v24, %v8868_v24  ;;  %v8884_v7 = vrot.slane %v8868_v24, %v18979_v60  ;;  %v9758_v34 = vcombine.low %v9749_v30, %v9756_v20 }
 0xca0   :  { %v8891_v45 = vrot.slane %v8869_v1, %v18979_v60  ;;  %v8899_v57 = vcombine.high %v8877_v42, %v8877_v42  ;;  %v9862_v6 = vcombine.low %v8853_v36, %v8877_v42  ;;  %v9765_v48 = vrot.slane %v9757_v13, %v18979_v60  ;;  %18221 = vmatpush3.bf16.xpose.msk.msra.mxu1 %vm19015_vm3, %v20769_v14 }
 0xca1   :  { %v9636_v58 = vcombine.low %v9628_v12, %v9635_v8  ;;  %v8898_v32 = vrot.slane %v8870_v22, %v18979_v60  ;;  %v8900_v0 = vcombine.high %v8884_v7, %v8884_v7  ;;  %v9772_v59 = vrot.slane %v9758_v34, %v18979_v60  ;;  %18226 = vmatprep.subr.bf16.mxu1 %v21970_v15 }
 0xca2   :  { %v8901_v40 = vcombine.high %v8891_v45, %v8891_v45  ;;  %v9863_v31 = vcombine.low %v8891_v45, %v8899_v57  ;;  %v9872_v41 = vrot.slane %v9862_v6, %v18979_v60  ;;  %17583 = vmatmul.mubr.msk.f32.vlgmr.msra.gmra.mrb[82].mxu0 %vm163_vm2, %v19304_v23  ;;  %v9787_v12 = vrot.slane %v9780_v38, %v18979_v60 }
 0xca3   :  { %v8902_v49 = vcombine.high %v8898_v32, %v8898_v32  ;;  %v9865_v26 = vcombine.low %v8898_v32, %v8900_v0  ;;  %v20771_v61 = vpack.c.bf16 %v9650_v9, %v9636_v58  ;;  %17596 = vmatprep.mubr.msk.f32.mxu0 %vm18726_vm1, %v21969_v62  ;;  %v9773_v43 = vcombine.low %v9765_v48, %v9772_v59 }
 0xca4   :  { %v9864_v51 = vcombine.low %v8901_v40, %v8884_v7  ;;  %v9879_v36 = vrot.slane %v9863_v31, %v18979_v60 }
 0xca5   :  { %v9893_v52 = vrot.slane %v9865_v26, %v18979_v60  ;;  %v9917_v39 = vrot.slane %v8902_v49, %v18979_v60  ;;  %v20783_v9 = vpack.c.bf16 %v9787_v12, %v9773_v43 }
 0xca6   :  { %v9886_v18 = vrot.slane %v9864_v51, %v18979_v60  ;;  %v9894_v53 = vcombine.low %v9872_v41, %v9879_v36 }
 0xca7   :  { %18233 = vmatpush3.bf16.xpose.msk.msra.mxu0 %vm19015_vm3, %v20783_v9  ;;  %v9924_v24 = vrot.slane %v9917_v39, %v18979_v60  ;;  %17576 = vmatmul.mubr.msk.f32.vlgmr.msra.gmra.mrb[78].mxu1 %vm163_vm2, %v19441_v25 }
 0xca8   :  { %v9895_v5 = vcombine.low %v9886_v18, %v9893_v52  ;;  %18246 = vmatprep.subr.bf16.mxu0 %v21970_v15  ;;  %v9902_v50 = vrot.slane %v9894_v53, %v18979_v60  ;;  %18229 = vmatpush3.bf16.xpose.msk.msra.mxu1 %vm19015_vm3, %v20771_v61 }
 0xca9   :  { %17589 = vmatprep.mubr.msk.f32.mxu1 %vm18726_vm1, %v21969_v62  ;;  %18234 = vmatprep.subr.bf16.mxu1 %v21970_v15 }
 0xcaa   :  { %v9909_v38 = vrot.slane %v9895_v5, %v18979_v60 }
 0xcac   :  { %v9910_v30 = vcombine.low %v9902_v50, %v9909_v38 }
 0xcae   :  { %v20801_v20 = vpack.c.bf16 %v9924_v24, %v9910_v30  ;;  %17597 = vmatmul.mubr.msk.f32.vlgmr.msra.gmra.mrb[84].mxu0 %vm163_vm2, %v19360_v10 }
 0xcaf   :  { %18249 = vmatpush3.bf16.msk.msra.mxu0 %vm19731_vm10, %v20678_v35  ;;  %17624 = vmatprep.mubr.msk.f32.mxu0 %vm18726_vm1, %v21969_v62 }
 0xcb0   :  { %18254 = vmatprep.subr.bf16.mxu0 %v21970_v15  ;;  %17590 = vmatmul.mubr.msk.f32.vlgmr.msra.gmra.mrb[80].mxu1 %vm163_vm2, %v19470_v29 }
 0xcb1   :  { %18237 = vmatpush3.bf16.xpose.msk.msra.mxu1 %vm19015_vm3, %v20801_v20  ;;  %17603 = vmatprep.mubr.msk.f32.mxu1 %vm18726_vm1, %v21969_v62 }
 0xcb2   :  { %18238 = vmatprep.subr.bf16.mxu1 %v21970_v15 }
 0xcb8   :  { %17604 = vmatmul.mubr.msk.f32.vlgmr.msra.gmra.mrb[82].mxu1 %vm163_vm2, %v19497_v47 }
 0xcb9   :  { %18241 = vmatpush3.bf16.msk.msra.mxu1 %vm19731_vm10, %v20625_v33  ;;  %17610 = vmatprep.mubr.msk.f32.mxu1 %vm18726_vm1, %v21969_v62 }
 0xcba   :  { %18242 = vmatprep.subr.bf16.mxu1 %v21970_v15 }
 0xd58   :  { %v20827_v35 = vpop.f32.mrb[72].mxu1 }
 0xd59   :  { %v17556_v1 = vpop.f32.mrb[73].mxu1  ;;  %v9999_v38 = vsel %vm2880_vm11, %v20827_v35, -inf }
 0xd61   :  { %v20829_v42 = vpop.f32.mrb[74].mxu1 }
 0xd62   :  { %v17563_v8 = vpop.f32.mrb[75].mxu1 }
 0xd69   :  { %v9310_v13 = vpop.f32.mrb[76].mxu1 }
 0xd6a   :  { %v17570_v22 = vpop.f32.mrb[77].mxu1  ;;  %v10005_v7 = vsel %vm2880_vm11, %v9310_v13, -inf }
 0xd6b   :  { %10006 = vmax.xlane.f32.xlu0 %v10005_v7 }
 0xd75   :  { %v9584_v34 = vpop.f32.mrb[82].mxu0 }
 0xd76   :  { %v17584_v45 = vpop.f32.mrb[83].mxu0  ;;  %v10011_v33 = vsel %vm2880_vm11, %v9584_v34, -inf }
 0xd77   :  { %10012 = vmax.xlane.f32.xlu1 %v10011_v33 }
 0xd7a   :  { %v9447_v57 = vpop.f32.mrb[78].mxu1 }
 0xd7b   :  { %v17577_v6 = vpop.f32.mrb[79].mxu1  ;;  %v10008_v24 = vsel %vm2880_vm11, %v9447_v57, -inf }
 0xd81   :  { %v9858_v58 = vpop.f32.mrb[84].mxu0 }
 0xd82   :  { %v17598_v48 = vpop.f32.mrb[85].mxu0  ;;  %v10017_v32 = vsel %vm2880_vm11, %v9858_v58, -inf }
 0xd83   :  { %10018 = vmax.xlane.f32.xlu0 %v10017_v32  ;;  %v20834_v0 = vpop.f32.mrb[80].mxu1 }
 0xd84   :  { %v17591_v59 = vpop.f32.mrb[81].mxu1  ;;  %v10014_v22 = vsel %vm2880_vm11, %v20834_v0, -inf }
 0xd8b   :  { %v9995_v40 = vpop.f32.mrb[82].mxu1 }
 0xd8c   :  { %v17605_v31 = vpop.f32.mrb[83].mxu1  ;;  %v10020_v1 = vsel %vm2880_vm11, %v9995_v40, -inf }
 0xdf8   :  { %v10007_v41 = vpop.xlane.xlu0 %10006 }
 0xdf9   :  { %v10025_v49 = vsub.f32 %v9310_v13, %v10007_v41  ;;  %v10002_v13 = vsel %vm2880_vm11, %v20829_v42, -inf }
 0xdfb   :  { %v10035_v26 = vmul.f32 1.442695, %v10025_v49 }
 0xdfd   :  { %18602 = vpow2.f32 %v10035_v26 }
 0xe04   :  { %v10013_v43 = vpop.xlane.xlu1 %10012 }
 0xe05   :  { %v10027_v12 = vsub.f32 %v9584_v34, %v10013_v43 }
 0xe07   :  { %v10039_v51 = vmul.f32 1.442695, %v10027_v12  ;;  %v18603_v36 = vpop.eup %18602 }
 0xe08   :  { %v10053_v52 = vsel %vm2880_vm11, %v18603_v36, 0.0 }
 0xe09   :  { %18604 = vpow2.f32 %v10039_v51  ;;  %10054 = vadd.xlane.f32.xlu1 %v10053_v52 }
 0xe10   :  { %v10019_v18 = vpop.xlane.xlu0 %10018 }
 0xe11   :  { %v10029_v53 = vsub.f32 %v9858_v58, %v10019_v18 }
 0xe13   :  { %v18605_v39 = vpop.eup %18604  ;;  %v10043_v5 = vmul.f32 1.442695, %v10029_v53 }
 0xe14   :  { %v10059_v50 = vsel %vm2880_vm11, %v18605_v39, 0.0 }
 0xe15   :  { %10060 = vadd.xlane.f32.xlu0 %v10059_v50  ;;  %18606 = vpow2.f32 %v10043_v5 }
 0xe19   :  { %10000 = vmax.xlane.f32.xlu0 %v9999_v38 }
 0xe1d   :  { %10009 = vmax.xlane.f32.xlu0 %v10008_v24 }
 0xe1f   :  { %v18607_v30 = vpop.eup %18606 }
 0xe20   :  { %v10065_v8 = vsel %vm2880_vm11, %v18607_v30, 0.0 }
 0xe21   :  { %10021 = vmax.xlane.f32.xlu0 %v10020_v1  ;;  %10066 = vadd.xlane.f32.xlu1 %v10065_v8  ;;  %v21974_v8 = vld [vmem:[#allocation3_spill] sm:$0xff] }
 0xe25   :  { %10003 = vmax.xlane.f32.xlu1 %v10002_v13 }
 0xe29   :  { %10015 = vmax.xlane.f32.xlu1 %v10014_v22 }
 0xe96   :  { %v10055_v7 = vpop.xlane.xlu1 %10054 }
 0xe97   :  { %18608 = vrcp.f32 %v10055_v7 }
 0xea1   :  { %v18609_v34 = vpop.eup %18608 }
 0xea2   :  { %v10061_v45 = vpop.xlane.xlu0 %10060  ;;  %v10076_v33 = vmul.f32 %v18609_v34, %v18603_v36 }
 0xea3   :  { %18610 = vrcp.f32 %v10061_v45 }
 0xea4   :  { %v10090_v6 = vsel %vm10087_vm4, %v10076_v33, 0.0 }
 0xea5   :  { %16451 = vst.msk [vmem:[%s21952_s9 + $0xd0] sm:$0x3f] %vm2880_vm11, %v10090_v6  ;;  %17625 = vmatmul.mubr.msk.f32.vlgmr.msra.gmra.mrb[34].mxu0 %vm4749_vm13, %v10090_v6 }
 0xea6   :  { %v10001_v58 = vpop.xlane.xlu0 %10000  ;;  %18257 = vmatpush3.bf16.msk.msra.mxu0 %vm19731_vm10, %v20735_v28  ;;  %17638 = vmatprep.mubr.msk.f32.mxu0 %vm18726_vm1, %v21969_v62 }
 0xea7   :  { %v10023_v48 = vsub.f32 %v20827_v35, %v10001_v58  ;;  %18262 = vmatprep.subr.bf16.mxu0 %v21970_v15 }
 0xea9   :  { %v10031_v32 = vmul.f32 1.442695, %v10023_v48 }
 0xeaa   :  { %v10010_v59 = vpop.xlane.xlu0 %10009 }
 0xeab   :  { %18612 = vpow2.f32 %v10031_v32  ;;  %v10026_v31 = vsub.f32 %v9447_v57, %v10010_v59 }
 0xead   :  { %v18611_v41 = vpop.eup %18610  ;;  %v10037_v49 = vmul.f32 1.442695, %v10026_v31 }
 0xeae   :  { %v10022_v26 = vpop.xlane.xlu0 %10021  ;;  %v10080_v43 = vmul.f32 %v18611_v41, %v18605_v39  ;;  %v10067_v12 = vpop.xlane.xlu1 %10066 }
 0xeaf   :  { %18614 = vpow2.f32 %v10037_v49  ;;  %v10030_v35 = vsub.f32 %v9995_v40, %v10022_v26 }
 0xeb0   :  { %18616 = vrcp.f32 %v10067_v12  ;;  %v10092_v28 = vsel %vm10087_vm4, %v10080_v43, 0.0 }
 0xeb1   :  { %v10045_v51 = vmul.f32 1.442695, %v10030_v35  ;;  %16453 = vst.msk [vmem:[%s21952_s9 + $0xe0] sm:$0x3f] %vm2880_vm11, %v10092_v28  ;;  %17639 = vmatmul.mubr.msk.f32.vlgmr.msra.gmra.mrb[36].mxu0 %vm4749_vm13, %v10092_v28 }
 0xeb2   :  { %18265 = vmatpush3.bf16.msk.msra.mxu0 %vm19731_vm10, %v20783_v9  ;;  %17652 = vmatprep.mubr.msk.f32.mxu0 %vm18726_vm1, %v21969_v62  ;;  %v10004_v57 = vpop.xlane.xlu1 %10003 }
 0xeb3   :  { %18618 = vpow2.f32 %v10045_v51  ;;  %17662 = vmatprep.subr.mxu0 %v21969_v62  ;;  %v10024_v40 = vsub.f32 %v20829_v42, %v10004_v57 }
 0xeb5   :  { %v18613_v36 = vpop.eup %18612  ;;  %v10033_v52 = vmul.f32 1.442695, %v10024_v40 }
 0xeb6   :  { %v10047_v18 = vsel %vm2880_vm11, %v18613_v36, 0.0  ;;  %v10016_v53 = vpop.xlane.xlu1 %10015 }
 0xeb7   :  { %10048 = vadd.xlane.f32.xlu1 %v10047_v18  ;;  %18620 = vpow2.f32 %v10033_v52  ;;  %v10028_v39 = vsub.f32 %v20834_v0, %v10016_v53 }
 0xeb9   :  { %v18615_v5 = vpop.eup %18614  ;;  %v10041_v50 = vmul.f32 1.442695, %v10028_v39 }
 0xeba   :  { %v18617_v9 = vpop.eup %18616  ;;  %v10056_v38 = vsel %vm2880_vm11, %v18615_v5, 0.0 }
 0xebb   :  { %v10084_v24 = vmul.f32 %v18617_v9, %v18607_v30  ;;  %10057 = vadd.xlane.f32.xlu1 %v10056_v38  ;;  %18622 = vpow2.f32 %v10041_v50 }
 0xebd   :  { %v18619_v1 = vpop.eup %18618  ;;  %v10094_v42 = vsel %vm10087_vm4, %v10084_v24, 0.0 }
 0xebe   :  { %16455 = vst.msk [vmem:[%s21952_s9 + $0xf0] sm:$0x3f] %vm2880_vm11, %v10094_v42  ;;  %17653 = vmatmul.mubr.msk.f32.vlgmr.msra.gmra.mrb[38].mxu0 %vm4749_vm13, %v10094_v42  ;;  %v10068_v0 = vsel %vm2880_vm11, %v18619_v1, 0.0 }
 0xebf   :  { %17663 = vmatpush3.msra.mxu0 %v21974_v8  ;;  %17664 = vmatprep.mubr.msk.f32.mxu0 %vm18726_vm1, %v21969_v62 }
 0xec0   :  { %10069 = vadd.xlane.f32.xlu1 %v10068_v0  ;;  %18282 = vmatprep.subr.bf16.mxu0 %v21970_v15 }
 0xec1   :  { %v18621_v30 = vpop.eup %18620 }
 0xec2   :  { %17665 = vmatmul.mubr.msk.f32.vlgmr.msra.gmra.mrb[86].mxu0 %vm45_vm0, %v20453_v21  ;;  %v10050_v13 = vsel %vm2880_vm11, %v18621_v30, 0.0 }
 0xec3   :  { %17667 = vmatprep.mubr.msk.f32.mxu0 %vm18726_vm1, %v21969_v62  ;;  %10051 = vadd.xlane.f32.xlu0 %v10050_v13 }
 0xec5   :  { %v18623_v22 = vpop.eup %18622 }
 0xec6   :  { %17668 = vmatmul.mubr.msk.f32.gmra.mrb[88].mxu0 %vm45_vm0, %v20463_v44  ;;  %v10062_v7 = vsel %vm2880_vm11, %v18623_v22, 0.0 }
 0xec7   :  { %17670 = vmatprep.mubr.msk.f32.mxu0 %vm18726_vm1, %v21969_v62  ;;  %10063 = vadd.xlane.f32.xlu0 %v10062_v7 }
 0xeca   :  { %17671 = vmatmul.mubr.msk.f32.gmra.mrb[90].mxu0 %vm45_vm0, %v20473_v63 }
 0xecb   :  { %17673 = vmatprep.mubr.msk.f32.mxu0 %vm18726_vm1, %v21969_v62 }
 0xece   :  { %17674 = vmatmul.mubr.msk.f32.gmra.mrb[92].mxu0 %vm45_vm0, %v20482_v46 }
 0xecf   :  { %17676 = vmatprep.mubr.msk.f32.mxu0 %vm18726_vm1, %v21969_v62 }
 0xed2   :  { %17677 = vmatmul.mubr.msk.f32.gmra.mrb[94].mxu0 %vm45_vm0, %v20491_v11 }
 0xed3   :  { %17679 = vmatprep.mubr.msk.f32.mxu0 %vm18726_vm1, %v21969_v62 }
 0xed6   :  { %17680 = vmatmul.mubr.msk.f32.gmra.mrb[96].mxu0 %vm45_vm0, %v20500_v27 }
 0xed7   :  { %17682 = vmatprep.mubr.msk.f32.mxu0 %vm18726_vm1, %v21969_v62 }
 0xeda   :  { %17683 = vmatmul.mubr.msk.f32.gmra.mrb[98].mxu0 %vm45_vm0, %v20509_v54 }
 0xedb   :  { %17685 = vmatprep.mubr.msk.f32.mxu0 %vm18726_vm1, %v21969_v62 }
 0xede   :  { %17686 = vmatmul.mubr.msk.f32.gmra.mrb[100].mxu0 %vm45_vm0, %v20518_v17 }
 0xedf   :  { %17688 = vmatprep.mubr.msk.f32.mxu0 %vm18726_vm1, %v21969_v62 }
 0xee2   :  { %17689 = vmatmul.mubr.msk.f32.gmra.mrb[102].mxu0 %vm45_vm0, %v20527_v3 }
 0xee3   :  { %17716 = vmatprep.mubr.msk.f32.mxu0 %vm18726_vm1, %v21969_v62 }
 0xf44   :  { %v10049_v21 = vpop.xlane.xlu1 %10048 }
 0xf45   :  { %18624 = vrcp.f32 %v10049_v21 }
 0xf48   :  { %v10058_v44 = vpop.xlane.xlu1 %10057 }
 0xf49   :  { %18626 = vrcp.f32 %v10058_v44 }
 0xf4d   :  { %v10070_v63 = vpop.xlane.xlu1 %10069 }
 0xf4e   :  { %18628 = vrcp.f32 %v10070_v63 }
 0xf4f   :  { %v18625_v46 = vpop.eup %18624 }
 0xf50   :  { %v10072_v11 = vmul.f32 %v18625_v46, %v18613_v36  ;;  %v10052_v27 = vpop.xlane.xlu0 %10051 }
 0xf51   :  { %18630 = vrcp.f32 %v10052_v27 }
 0xf52   :  { %v10088_v54 = vsel %vm10087_vm4, %v10072_v11, 0.0 }
 0xf53   :  { %v18627_v17 = vpop.eup %18626  ;;  %16449 = vst.msk [vmem:[%s21952_s9 + $0xc0] sm:$0x3f] %vm2880_vm11, %v10088_v54  ;;  %17611 = vmatmul.mubr.msk.f32.vlgmr.msra.gmra.mrb[52].mxu1 %vm4749_vm13, %v10088_v54 }
 0xf54   :  { %18245 = vmatpush3.bf16.msk.msra.mxu1 %vm19731_vm10, %v20659_v37  ;;  %17617 = vmatprep.mubr.msk.f32.mxu1 %vm18726_vm1, %v21969_v62  ;;  %v10078_v3 = vmul.f32 %v18627_v17, %v18615_v5  ;;  %v10064_v34 = vpop.xlane.xlu0 %10063 }
 0xf55   :  { %18250 = vmatprep.subr.bf16.mxu1 %v21970_v15  ;;  %18632 = vrcp.f32 %v10064_v34 }
 0xf56   :  { %v10091_v45 = vsel %vm10087_vm4, %v10078_v3, 0.0 }
 0xf57   :  { %16452 = vst.msk [vmem:[%s21952_s9 + $0xd8] sm:$0x3f] %vm2880_vm11, %v10091_v45 }
 0xf58   :  { %v18629_v33 = vpop.eup %18628 }
 0xf59   :  { %v10086_v6 = vmul.f32 %v18629_v33, %v18619_v1 }
 0xf5b   :  { %v10095_v37 = vsel %vm10087_vm4, %v10086_v6, 0.0  ;;  %v18631_v58 = vpop.eup %18630 }
 0xf5c   :  { %16456 = vst.msk [vmem:[%s21952_s9 + $0xf8] sm:$0x3f] %vm2880_vm11, %v10095_v37  ;;  %v10074_v48 = vmul.f32 %v18631_v58, %v18621_v30 }
 0xf5e   :  { %v10089_v32 = vsel %vm10087_vm4, %v10074_v48, 0.0 }
 0xf5f   :  { %v18633_v59 = vpop.eup %18632  ;;  %16450 = vst.msk [vmem:[%s21952_s9 + $0xc8] sm:$0x3f] %vm2880_vm11, %v10089_v32  ;;  %17618 = vmatmul.mubr.msk.f32.vlgmr.msra.gmra.mrb[54].mxu1 %vm4749_vm13, %v10089_v32 }
 0xf60   :  { %18253 = vmatpush3.bf16.msk.msra.mxu1 %vm19731_vm10, %v20769_v14  ;;  %17631 = vmatprep.mubr.msk.f32.mxu1 %vm18726_vm1, %v21969_v62  ;;  %v10082_v31 = vmul.f32 %v18633_v59, %v18623_v22 }
 0xf61   :  { %18258 = vmatprep.subr.bf16.mxu1 %v21970_v15 }
 0xf62   :  { %v10093_v41 = vsel %vm10087_vm4, %v10082_v31, 0.0 }
 0xf63   :  { %17632 = vmatmul.mubr.msk.f32.vlgmr.msra.gmra.mrb[56].mxu1 %vm4749_vm13, %v10091_v45  ;;  %16454 = vst.msk [vmem:[%s21952_s9 + $0xe8] sm:$0x3f] %vm2880_vm11, %v10093_v41 }
 0xf64   :  { %18261 = vmatpush3.bf16.msk.msra.mxu1 %vm19731_vm10, %v20771_v61  ;;  %17645 = vmatprep.mubr.msk.f32.mxu1 %vm18726_vm1, %v21969_v62 }
 0xf65   :  { %18266 = vmatprep.subr.bf16.mxu1 %v21970_v15 }
 0xf67   :  { %17646 = vmatmul.mubr.msk.f32.vlgmr.msra.gmra.mrb[58].mxu1 %vm4749_vm13, %v10093_v41 }
 0xf68   :  { %18269 = vmatpush3.bf16.msk.msra.mxu1 %vm19731_vm10, %v20801_v20  ;;  %17659 = vmatprep.mubr.msk.f32.mxu1 %vm18726_vm1, %v21969_v62 }
 0xf69   :  { %18270 = vmatprep.subr.bf16.mxu1 %v21970_v15 }
 0xf6b   :  { %17660 = vmatmul.mubr.msk.f32.vlgmr.msra.gmra.mrb[60].mxu1 %vm4749_vm13, %v10095_v37 }
 0xf6c   :  { %17695 = vmatprep.mubr.msk.f32.mxu1 %vm18726_vm1, %v21969_v62 }
 0xf95   :  { %v10787_v14 = vpop.f32.mrb[86].mxu0 }
 0xf96   :  { %v10840_v61 = vcombine.high %v10787_v14, %v10787_v14  ;;  %v10847_v49 = vrot.slane %v10787_v14, %v18979_v60  ;;  %v17666_v26 = vpop.f32.mrb[87].mxu0 }
 0xf98   :  { %v10854_v43 = vrot.slane %v10840_v61, %v18979_v60  ;;  %v10855_v12 = vcombine.high %v10847_v49, %v10847_v49  ;;  %v10863_v28 = vrot.slane %v10847_v49, %v18979_v60 }
 0xf99   :  { %v10792_v35 = vpop.f32.mrb[88].mxu0 }
 0xf9a   :  { %v10856_v20 = vcombine.high %v10854_v43, %v10854_v43  ;;  %v10877_v51 = vrot.slane %v10855_v12, %v18979_v60  ;;  %v10889_v57 = vcombine.high %v10792_v35, %v10792_v35  ;;  %v17669_v40 = vpop.f32.mrb[89].mxu0  ;;  %v10870_v36 = vrot.slane %v10854_v43, %v18979_v60 }
 0xf9b   :  { %v10896_v52 = vrot.slane %v10792_v35, %v18979_v60 }
 0xf9c   :  { %v10884_v18 = vrot.slane %v10856_v20, %v18979_v60  ;;  %v11281_v53 = vcombine.low %v10863_v28, %v10877_v51  ;;  %v16482_v39 = vcombine.high %v10863_v28, %v10877_v51  ;;  %v10903_v5 = vrot.slane %v10889_v57, %v18979_v60 }
 0xf9d   :  { %v10904_v9 = vcombine.high %v10896_v52, %v10896_v52  ;;  %v10912_v50 = vrot.slane %v10896_v52, %v18979_v60  ;;  %v10797_v38 = vpop.f32.mrb[90].mxu0 }
 0xf9e   :  { %v11283_v24 = vcombine.low %v10870_v36, %v10884_v18  ;;  %v16483_v1 = vcombine.high %v10870_v36, %v10884_v18  ;;  %v11291_v42 = vrot.slane %v11281_v53, %v18979_v60  ;;  %v11298_v0 = vrot.slane %v16482_v39, %v18979_v60  ;;  %v17672_v8 = vpop.f32.mrb[91].mxu0 }
 0xf9f   :  { %v10905_v30 = vcombine.high %v10903_v5, %v10903_v5  ;;  %v10919_v13 = vrot.slane %v10903_v5, %v18979_v60  ;;  %v10926_v22 = vrot.slane %v10904_v9, %v18979_v60  ;;  %v10934_v7 = vcombine.high %v10912_v50, %v10912_v50 }
 0xfa0   :  { %v11305_v21 = vrot.slane %v11283_v24, %v18979_v60  ;;  %v11312_v44 = vrot.slane %v16483_v1, %v18979_v60  ;;  %v11313_v63 = vcombine.low %v11291_v42, %v11298_v0  ;;  %v11336_v46 = vrot.slane %v10912_v50, %v18979_v60 }
 0xfa1   :  { %v10933_v11 = vrot.slane %v10905_v30, %v18979_v60  ;;  %v10935_v27 = vcombine.high %v10919_v13, %v10919_v13  ;;  %v10936_v54 = vcombine.high %v10926_v22, %v10926_v22  ;;  %v11418_v17 = vcombine.low %v10926_v22, %v10934_v7  ;;  %v10802_v3 = vpop.f32.mrb[92].mxu0 }
 0xfa2   :  { %v11314_v34 = vcombine.low %v11305_v21, %v11312_v44  ;;  %v11321_v45 = vrot.slane %v11313_v63, %v18979_v60  ;;  %v10938_v33 = vcombine.high %v10797_v38, %v10797_v38  ;;  %v17675_v6 = vpop.f32.mrb[93].mxu0  ;;  %v10945_v31 = vrot.slane %v10797_v38, %v18979_v60 }
 0xfa3   :  { %v11419_v37 = vcombine.low %v10936_v54, %v10919_v13  ;;  %v11420_v58 = vcombine.low %v10933_v11, %v10935_v27  ;;  %v11428_v48 = vrot.slane %v11418_v17, %v18979_v60  ;;  %v10937_v32 = vcombine.high %v10933_v11, %v10933_v11 }
 0xfa4   :  { %v11328_v59 = vrot.slane %v11314_v34, %v18979_v60  ;;  %v10952_v41 = vrot.slane %v10938_v33, %v18979_v60  ;;  %v10987_v14 = vcombine.high %v10802_v3, %v10802_v3  ;;  %v11343_v61 = vrot.slane %v11336_v46, %v18979_v60 }
 0xfa5   :  { %v11435_v49 = vrot.slane %v11419_v37, %v18979_v60  ;;  %v11442_v26 = vrot.slane %v11420_v58, %v18979_v60  ;;  %v10994_v43 = vrot.slane %v10802_v3, %v18979_v60  ;;  %v10807_v12 = vpop.f32.mrb[94].mxu0  ;;  %v10953_v20 = vcombine.high %v10945_v31, %v10945_v31 }
 0xfa6   :  { %v11329_v35 = vcombine.low %v11321_v45, %v11328_v59  ;;  %v10954_v28 = vcombine.high %v10952_v41, %v10952_v41  ;;  %v10961_v51 = vrot.slane %v10945_v31, %v18979_v60  ;;  %v17678_v57 = vpop.f32.mrb[95].mxu0  ;;  %v10968_v36 = vrot.slane %v10952_v41, %v18979_v60 }
 0xfa7   :  { %v11450_v40 = vcombine.low %v11428_v48, %v11435_v49  ;;  %v11001_v52 = vrot.slane %v10987_v14, %v18979_v60  ;;  %v11002_v18 = vcombine.high %v10994_v43, %v10994_v43  ;;  %v10975_v39 = vrot.slane %v10953_v20, %v18979_v60 }
 0xfa8   :  { %v21019_v53 = vpack.c.bf16 %v11343_v61, %v11329_v35  ;;  %v10982_v5 = vrot.slane %v10954_v28, %v18979_v60  ;;  %v11421_v9 = vcombine.low %v10937_v32, %v10961_v51  ;;  %v11010_v38 = vrot.slane %v10994_v43, %v18979_v60 }
 0xfa9   :  { %v11003_v50 = vcombine.high %v11001_v52, %v11001_v52  ;;  %v11017_v24 = vrot.slane %v11001_v52, %v18979_v60  ;;  %v10812_v1 = vpop.f32.mrb[96].mxu0  ;;  %v11473_v0 = vrot.slane %v10975_v39, %v18979_v60  ;;  %v16490_v8 = vcombine.high %v10961_v51, %v10975_v39 }
 0xfaa   :  { %v11449_v42 = vrot.slane %v11421_v9, %v18979_v60  ;;  %v11556_v30 = vcombine.low %v10968_v36, %v10982_v5  ;;  %18273 = vmatpush3.bf16.xpose.msk.msra.mxu1 %vm19015_vm3, %v21019_v53  ;;  %v17681_v13 = vpop.f32.mrb[97].mxu0  ;;  %v11458_v22 = vrot.slane %v11450_v40, %v18979_v60  ;;  %v16491_v7 = vcombine.high %v10968_v36, %v10982_v5 }
 0xfab   :  { %v11024_v21 = vrot.slane %v11002_v18, %v18979_v60  ;;  %v11032_v44 = vcombine.high %v11010_v38, %v11010_v38  ;;  %18274 = vmatprep.subr.bf16.mxu1 %v21970_v15  ;;  %v11565_v46 = vrot.slane %v16490_v8, %v18979_v60  ;;  %v11031_v27 = vrot.slane %v11003_v50, %v18979_v60 }
 0xfac   :  { %v11451_v63 = vcombine.low %v11442_v26, %v11449_v42  ;;  %v11572_v11 = vrot.slane %v11556_v30, %v18979_v60  ;;  %v11579_v54 = vrot.slane %v16491_v7, %v18979_v60  ;;  %v11033_v17 = vcombine.high %v11017_v24, %v11017_v24 }
 0xfad   :  { %v11034_v3 = vcombine.high %v11024_v21, %v11024_v21  ;;  %v11558_v34 = vcombine.low %v11010_v38, %v11024_v21  ;;  %v21037_v45 = vpop.f32.mrb[98].mxu0  ;;  %v11480_v6 = vrot.slane %v11473_v0, %v18979_v60  ;;  %v11610_v58 = vrot.slane %v11032_v44, %v18979_v60 }
 0xfae   :  { %v11465_v33 = vrot.slane %v11451_v63, %v18979_v60  ;;  %v11587_v37 = vcombine.low %v11565_v46, %v11572_v11  ;;  %v17684_v48 = vpop.f32.mrb[99].mxu0  ;;  %v11693_v31 = vcombine.low %v11031_v27, %v11033_v17  ;;  %v11036_v41 = vcombine.high %v10807_v12, %v10807_v12 }
 0xfaf   :  { %v11586_v32 = vrot.slane %v11558_v34, %v18979_v60  ;;  %v11692_v59 = vcombine.low %v11034_v3, %v11017_v24  ;;  %v11035_v49 = vcombine.high %v11031_v27, %v11031_v27  ;;  %v11043_v26 = vrot.slane %v10807_v12, %v18979_v60 }
 0xfb0   :  { %v11466_v14 = vcombine.low %v11458_v22, %v11465_v33  ;;  %v11595_v61 = vrot.slane %v11587_v37, %v18979_v60  ;;  %v11709_v20 = vrot.slane %v11693_v31, %v18979_v60  ;;  %v11050_v28 = vrot.slane %v11036_v41, %v18979_v60 }
 0xfb1   :  { %v11588_v43 = vcombine.low %v11579_v54, %v11586_v32  ;;  %v11702_v35 = vrot.slane %v11692_v59, %v18979_v60  ;;  %17696 = vmatmul.mubr.msk.f32.vlgmr.msra.gmra.mrb[84].mxu1 %vm163_vm2, %v19293_v19  ;;  %v21050_v51 = vpop.f32.mrb[100].mxu0  ;;  %v11051_v40 = vcombine.high %v11043_v26, %v11043_v26  ;;  %v11059_v36 = vrot.slane %v11043_v26, %v18979_v60 }
 0xfb2   :  { %v21052_v57 = vpack.c.bf16 %v11480_v6, %v11466_v14  ;;  %v11085_v52 = vcombine.high %v10812_v1, %v10812_v1  ;;  %v17687_v18 = vpop.f32.mrb[101].mxu0  ;;  %17702 = vmatprep.mubr.msk.f32.mxu1 %vm18726_vm1, %v21969_v62  ;;  %v11052_v5 = vcombine.high %v11050_v28, %v11050_v28  ;;  %v11066_v9 = vrot.slane %v11050_v28, %v18979_v60 }
 0xfb3   :  { %v11602_v12 = vrot.slane %v11588_v43, %v18979_v60  ;;  %v11724_v39 = vcombine.low %v11702_v35, %v11709_v20  ;;  %v11073_v50 = vrot.slane %v11051_v40, %v18979_v60  ;;  %v11081_v38 = vcombine.high %v11059_v36, %v11059_v36 }
 0xfb4   :  { %v11694_v24 = vcombine.low %v11035_v49, %v11059_v36  ;;  %v11092_v42 = vrot.slane %v10812_v1, %v18979_v60  ;;  %18277 = vmatpush3.bf16.xpose.msk.msra.mxu1 %vm19015_vm3, %v21052_v57  ;;  %v11617_v8 = vrot.slane %v11610_v58, %v18979_v60  ;;  %v11080_v30 = vrot.slane %v11052_v5, %v18979_v60 }
 0xfb5   :  { %v11603_v0 = vcombine.low %v11595_v61, %v11602_v12  ;;  %v11099_v13 = vrot.slane %v11085_v52, %v18979_v60  ;;  %v21067_v22 = vpop.f32.mrb[102].mxu0  ;;  %18278 = vmatprep.subr.bf16.mxu1 %v21970_v15  ;;  %v11083_v7 = vcombine.high %v11073_v50, %v11073_v50  ;;  %v11695_v21 = vcombine.low %v11073_v50, %v11081_v38 }
 0xfb6   :  { %v11716_v44 = vrot.slane %v11694_v24, %v18979_v60  ;;  %v11100_v1 = vcombine.high %v11092_v42, %v11092_v42  ;;  %v17690_v63 = vpop.f32.mrb[103].mxu0  ;;  %v11829_v11 = vcombine.low %v11066_v9, %v11080_v30  ;;  %v16498_v27 = vcombine.high %v11066_v9, %v11080_v30 }
 0xfb7   :  { %v21071_v46 = vpack.c.bf16 %v11617_v8, %v11603_v0  ;;  %v11101_v54 = vcombine.high %v11099_v13, %v11099_v13  ;;  %v11732_v17 = vrot.slane %v11724_v39, %v18979_v60  ;;  %v11723_v3 = vrot.slane %v11695_v21, %v18979_v60 }
 0xfb8   :  { %v11108_v34 = vrot.slane %v11092_v42, %v18979_v60  ;;  %v11115_v33 = vrot.slane %v11099_v13, %v18979_v60  ;;  %v11839_v6 = vrot.slane %v11829_v11, %v18979_v60  ;;  %v11846_v37 = vrot.slane %v16498_v27, %v18979_v60 }
 0xfb9   :  { %v11122_v58 = vrot.slane %v11100_v1, %v18979_v60  ;;  %v11129_v48 = vrot.slane %v11101_v54, %v18979_v60  ;;  %v11725_v32 = vcombine.low %v11716_v44, %v11723_v3  ;;  %v21082_v59 = vrot.slane %v11083_v7, %v18979_v60 }
 0xfba   :  { %v11131_v31 = vcombine.high %v11115_v33, %v11115_v33  ;;  %v11884_v41 = vrot.slane %v11115_v33, %v18979_v60  ;;  %v11861_v14 = vcombine.low %v11839_v6, %v11846_v37  ;;  %v11134_v28 = vcombine.high %v21037_v45, %v21037_v45 }
 0xfbb   :  { %v11831_v61 = vcombine.low %v11108_v34, %v11122_v58  ;;  %v16499_v49 = vcombine.high %v11108_v34, %v11122_v58  ;;  %v11133_v26 = vcombine.high %v11129_v48, %v11129_v48  ;;  %17703 = vmatmul.mubr.msk.f32.vlgmr.msra.gmra.mrb[86].mxu1 %vm163_vm2, %v19350_v2  ;;  %v11739_v43 = vrot.slane %v11725_v32, %v18979_v60 }
 0xfbc   :  { %v11891_v35 = vrot.slane %v11884_v41, %v18979_v60  ;;  %v11966_v20 = vcombine.low %v11129_v48, %v11131_v31  ;;  %18281 = vmatpush3.bf16.xpose.msk.msra.mxu1 %vm19015_vm3, %v21071_v46  ;;  %v11869_v40 = vrot.slane %v11861_v14, %v18979_v60  ;;  %v11141_v18 = vrot.slane %v21037_v45, %v18979_v60 }
 0xfbd   :  { %v11853_v36 = vrot.slane %v11831_v61, %v18979_v60  ;;  %v11860_v52 = vrot.slane %v16499_v49, %v18979_v60  ;;  %17709 = vmatprep.mubr.msk.f32.mxu1 %vm18726_vm1, %v21969_v62  ;;  %v21101_v12 = vcombine.low %v11732_v17, %v11739_v43  ;;  %v11148_v39 = vrot.slane %v11134_v28, %v18979_v60 }
 0xfbe   :  { %v11976_v5 = vrot.slane %v11966_v20, %v18979_v60  ;;  %v11183_v9 = vcombine.high %v21050_v51, %v21050_v51  ;;  %18286 = vmatprep.subr.bf16.mxu1 %v21970_v15  ;;  %v11149_v38 = vcombine.high %v11141_v18, %v11141_v18  ;;  %v11157_v24 = vrot.slane %v11141_v18, %v18979_v60 }
 0xfbf   :  { %v11862_v50 = vcombine.low %v11853_v36, %v11860_v52  ;;  %v11190_v45 = vrot.slane %v21050_v51, %v18979_v60  ;;  %v11150_v42 = vcombine.high %v11148_v39, %v11148_v39  ;;  %v11164_v0 = vrot.slane %v11148_v39, %v18979_v60 }
 0xfc0   :  { %v11197_v8 = vrot.slane %v11183_v9, %v18979_v60  ;;  %v11232_v30 = vcombine.high %v21067_v22, %v21067_v22  ;;  %v11171_v7 = vrot.slane %v11149_v38, %v18979_v60  ;;  %v11179_v21 = vcombine.high %v11157_v24, %v11157_v24 }
 0xfc1   :  { %v11876_v13 = vrot.slane %v11862_v50, %v18979_v60  ;;  %v11967_v44 = vcombine.low %v11133_v26, %v11157_v24  ;;  %v11178_v1 = vrot.slane %v11150_v42, %v18979_v60  ;;  %v11198_v63 = vcombine.high %v11190_v45, %v11190_v45 }
 0xfc2   :  { %v11199_v11 = vcombine.high %v11197_v8, %v11197_v8  ;;  %v11206_v51 = vrot.slane %v11190_v45, %v18979_v60  ;;  %v11181_v54 = vcombine.high %v11171_v7, %v11171_v7  ;;  %v11968_v17 = vcombine.low %v11171_v7, %v11179_v21 }
 0xfc3   :  { %v11877_v27 = vcombine.low %v11869_v40, %v11876_v13  ;;  %v11983_v3 = vrot.slane %v11967_v44, %v18979_v60  ;;  %17710 = vmatmul.mubr.msk.f32.vlgmr.msra.gmra.mrb[88].mxu1 %vm163_vm2, %v19396_v4  ;;  %v12021_v34 = vrot.slane %v11178_v1, %v18979_v60  ;;  %v16506_v33 = vcombine.high %v11164_v0, %v11178_v1 }
 0xfc4   :  { %v11213_v6 = vrot.slane %v11197_v8, %v18979_v60  ;;  %v11220_v37 = vrot.slane %v11198_v63, %v18979_v60  ;;  %17723 = vmatprep.mubr.msk.f32.mxu1 %vm18726_vm1, %v21969_v62  ;;  %v11969_v48 = vcombine.low %v11181_v54, %v11164_v0  ;;  %v11990_v32 = vrot.slane %v11968_v17, %v18979_v60 }
 0xfc5   :  { %v21127_v58 = vpack.c.bf16 %v11891_v35, %v11877_v27  ;;  %v11998_v31 = vcombine.low %v11976_v5, %v11983_v3  ;;  %v11754_v41 = vrot.slane %v21082_v59, %v18979_v60  ;;  %v12028_v14 = vrot.slane %v12021_v34, %v18979_v60 }
 0xfc6   :  { %v11227_v61 = vrot.slane %v11199_v11, %v18979_v60  ;;  %v11229_v49 = vcombine.high %v11213_v6, %v11213_v6  ;;  %v11997_v26 = vrot.slane %v11969_v48, %v18979_v60  ;;  %v12113_v43 = vrot.slane %v16506_v33, %v18979_v60 }
 0xfc7   :  { %v12104_v20 = vcombine.low %v11206_v51, %v11220_v37  ;;  %v16507_v28 = vcombine.high %v11206_v51, %v11220_v37  ;;  %18289 = vmatpush3.bf16.xpose.msk.msra.mxu1 %vm19015_vm3, %v21127_v58  ;;  %v12006_v35 = vrot.slane %v11998_v31, %v18979_v60  ;;  %v11239_v59 = vrot.slane %v21067_v22, %v18979_v60 }
 0xfc8   :  { %v12106_v40 = vcombine.low %v11213_v6, %v11227_v61  ;;  %v11231_v36 = vcombine.high %v11227_v61, %v11227_v61  ;;  %18294 = vmatprep.subr.bf16.mxu1 %v21970_v15  ;;  %v11999_v52 = vcombine.low %v11990_v32, %v11997_v26  ;;  %v11246_v5 = vrot.slane %v11232_v30, %v18979_v60 }
 0xfc9   :  { %v12120_v18 = vrot.slane %v12104_v20, %v18979_v60  ;;  %v12127_v39 = vrot.slane %v16507_v28, %v18979_v60  ;;  %v12158_v50 = vrot.slane %v11229_v49, %v18979_v60  ;;  %v11247_v38 = vcombine.high %v11239_v59, %v11239_v59 }
 0xfca   :  { %v12134_v9 = vrot.slane %v12106_v40, %v18979_v60  ;;  %v11255_v24 = vrot.slane %v11239_v59, %v18979_v60  ;;  %v12013_v45 = vrot.slane %v11999_v52, %v18979_v60  ;;  %v11248_v22 = vcombine.high %v11246_v5, %v11246_v5 }
 0xfcb   :  { %v12135_v42 = vcombine.low %v12113_v43, %v12120_v18  ;;  %v11262_v0 = vrot.slane %v11246_v5, %v18979_v60  ;;  %v11269_v13 = vrot.slane %v11247_v38, %v18979_v60  ;;  %v21159_v34 = vpack.c.bf16 %v11754_v41, %v21101_v12 }
 0xfcc   :  { %v12136_v8 = vcombine.low %v12127_v39, %v12134_v9  ;;  %v11277_v7 = vcombine.high %v11255_v24, %v11255_v24  ;;  %v12240_v21 = vcombine.low %v11231_v36, %v11255_v24  ;;  %v12014_v44 = vcombine.low %v12006_v35, %v12013_v45 }
 0xfcd   :  { %v12143_v30 = vrot.slane %v12135_v42, %v18979_v60  ;;  %v11276_v1 = vrot.slane %v11248_v22, %v18979_v60  ;;  %v11278_v63 = vcombine.high %v11262_v0, %v11262_v0  ;;  %v11279_v51 = vcombine.high %v11269_v13, %v11269_v13  ;;  %18285 = vmatpush3.bf16.xpose.msk.msra.mxu0 %vm19015_vm3, %v21159_v34 }
 0xfce   :  { %v12150_v11 = vrot.slane %v12136_v8, %v18979_v60  ;;  %v12241_v27 = vcombine.low %v11269_v13, %v11277_v7  ;;  %v12250_v54 = vrot.slane %v12240_v21, %v18979_v60  ;;  %17724 = vmatmul.mubr.msk.f32.vlgmr.msra.gmra.mrb[90].mxu1 %vm163_vm2, %v19304_v23  ;;  %v21161_v33 = vpack.c.bf16 %v12028_v14, %v12014_v44 }
 0xfcf   :  { %v11280_v17 = vcombine.high %v11276_v1, %v11276_v1  ;;  %v12243_v3 = vcombine.low %v11276_v1, %v11278_v63  ;;  %17737 = vmatprep.mubr.msk.f32.mxu1 %vm18726_vm1, %v21969_v62  ;;  %v12165_v37 = vrot.slane %v12158_v50, %v18979_v60  ;;  %v12242_v48 = vcombine.low %v11279_v51, %v11262_v0 }
 0xfd0   :  { %v12151_v6 = vcombine.low %v12143_v30, %v12150_v11  ;;  %v12257_v32 = vrot.slane %v12241_v27, %v18979_v60  ;;  %18290 = vmatprep.subr.bf16.mxu0 %v21970_v15 }
 0xfd1   :  { %v12271_v31 = vrot.slane %v12243_v3, %v18979_v60  ;;  %v12264_v12 = vrot.slane %v12242_v48, %v18979_v60  ;;  %v12295_v14 = vrot.slane %v11280_v17, %v18979_v60 }
 0xfd2   :  { %v12272_v41 = vcombine.low %v12250_v54, %v12257_v32  ;;  %v21174_v61 = vpack.c.bf16 %v12165_v37, %v12151_v6 }
 0xfd3   :  { %v12273_v49 = vcombine.low %v12264_v12, %v12271_v31  ;;  %v12302_v20 = vrot.slane %v12295_v14, %v18979_v60 }
 0xfd4   :  { %v12280_v26 = vrot.slane %v12272_v41, %v18979_v60  ;;  %18297 = vmatpush3.bf16.xpose.msk.msra.mxu1 %vm19015_vm3, %v21174_v61  ;;  %17717 = vmatmul.mubr.msk.f32.vlgmr.msra.gmra.mrb[104].mxu0 %vm163_vm2, %v19441_v25 }
 0xfd5   :  { %18302 = vmatprep.subr.bf16.mxu1 %v21970_v15  ;;  %v12287_v43 = vrot.slane %v12273_v49, %v18979_v60  ;;  %18293 = vmatpush3.bf16.xpose.msk.msra.mxu0 %vm19015_vm3, %v21161_v33 }
 0xfd6   :  { %17730 = vmatprep.mubr.msk.f32.mxu0 %vm18726_vm1, %v21969_v62  ;;  %18298 = vmatprep.subr.bf16.mxu0 %v21970_v15 }
 0xfd7   :  { %v12288_v28 = vcombine.low %v12280_v26, %v12287_v43 }
 0xfd9   :  { %v21191_v35 = vpack.c.bf16 %v12302_v20, %v12288_v28 }
 0xfdb   :  { %17738 = vmatmul.mubr.msk.f32.vlgmr.msra.gmra.mrb[92].mxu1 %vm163_vm2, %v19360_v10 }
 0xfdc   :  { %18305 = vmatpush3.bf16.msk.msra.mxu1 %vm19731_vm10, %v21019_v53  ;;  %17751 = vmatprep.mubr.msk.f32.mxu1 %vm18726_vm1, %v21969_v62 }
 0xfdd   :  { %18306 = vmatprep.subr.bf16.mxu1 %v21970_v15  ;;  %17731 = vmatmul.mubr.msk.f32.vlgmr.msra.gmra.mrb[106].mxu0 %vm163_vm2, %v19470_v29 }
 0xfde   :  { %18301 = vmatpush3.bf16.xpose.msk.msra.mxu0 %vm19015_vm3, %v21191_v35  ;;  %17744 = vmatprep.mubr.msk.f32.mxu0 %vm18726_vm1, %v21969_v62 }
 0xfdf   :  { %18310 = vmatprep.subr.bf16.mxu0 %v21970_v15 }
 0xfe5   :  { %17745 = vmatmul.mubr.msk.f32.vlgmr.msra.gmra.mrb[108].mxu0 %vm163_vm2, %v19497_v47 }
 0xfe6   :  { %18313 = vmatpush3.bf16.msk.msra.mxu0 %vm19731_vm10, %v21071_v46  ;;  %17765 = vmatprep.mubr.msk.f32.mxu0 %vm18726_vm1, %v21969_v62 }
 0xfe7   :  { %18318 = vmatprep.subr.bf16.mxu0 %v21970_v15 }
0x1084   :  { %v21217_v53 = vpop.f32.mrb[84].mxu1 }
0x1085   :  { %v17697_v40 = vpop.f32.mrb[85].mxu1  ;;  %v12377_v37 = vsel %vm2880_vm11, %v21217_v53, -inf }
0x108e   :  { %v21219_v36 = vpop.f32.mrb[86].mxu1 }
0x108f   :  { %v17704_v59 = vpop.f32.mrb[87].mxu1  ;;  %v12380_v41 = vsel %vm2880_vm11, %v21219_v36, -inf }
0x1096   :  { %v11688_v52 = vpop.f32.mrb[88].mxu1 }
0x1097   :  { %v17711_v18 = vpop.f32.mrb[89].mxu1  ;;  %v12383_v39 = vsel %vm2880_vm11, %v11688_v52, -inf }
0x1098   :  { %12384 = vmax.xlane.f32.xlu0 %v12383_v39 }
0x10a1   :  { %v11962_v5 = vpop.f32.mrb[90].mxu1 }
0x10a2   :  { %v17725_v9 = vpop.f32.mrb[91].mxu1  ;;  %v12389_v46 = vsel %vm2880_vm11, %v11962_v5, -inf }
0x10a3   :  { %12390 = vmax.xlane.f32.xlu1 %v12389_v46 }
0x10a7   :  { %v11825_v50 = vpop.f32.mrb[104].mxu0 }
0x10a8   :  { %v17718_v38 = vpop.f32.mrb[105].mxu0  ;;  %v12386_v48 = vsel %vm2880_vm11, %v11825_v50, -inf }
0x10ae   :  { %v12236_v24 = vpop.f32.mrb[92].mxu1 }
0x10af   :  { %v17739_v45 = vpop.f32.mrb[93].mxu1  ;;  %v12395_v42 = vsel %vm2880_vm11, %v12236_v24, -inf }
0x10b0   :  { %12396 = vmax.xlane.f32.xlu0 %v12395_v42  ;;  %v21224_v22 = vpop.f32.mrb[106].mxu0 }
0x10b1   :  { %v17732_v0 = vpop.f32.mrb[107].mxu0  ;;  %v12392_v14 = vsel %vm2880_vm11, %v21224_v22, -inf }
0x10b8   :  { %v12373_v8 = vpop.f32.mrb[108].mxu0 }
0x10b9   :  { %v17746_v13 = vpop.f32.mrb[109].mxu0  ;;  %v12398_v31 = vsel %vm2880_vm11, %v12373_v8, -inf }
0x1125   :  { %v12385_v7 = vpop.xlane.xlu0 %12384 }
0x1126   :  { %v12403_v21 = vsub.f32 %v11688_v52, %v12385_v7 }
0x1128   :  { %v12413_v44 = vmul.f32 1.442695, %v12403_v21 }
0x112a   :  { %18634 = vpow2.f32 %v12413_v44 }
0x1130   :  { %v12391_v30 = vpop.xlane.xlu1 %12390 }
0x1131   :  { %v12405_v1 = vsub.f32 %v11962_v5, %v12391_v30 }
0x1133   :  { %v12417_v63 = vmul.f32 1.442695, %v12405_v1 }
0x1134   :  { %v18635_v11 = vpop.eup %18634 }
0x1135   :  { %18636 = vpow2.f32 %v12417_v63  ;;  %v12431_v51 = vsel %vm2880_vm11, %v18635_v11, 0.0 }
0x1136   :  { %12432 = vadd.xlane.f32.xlu1 %v12431_v51  ;;  %v21975_v51 = vld [vmem:[#allocation4_spill] sm:$0xff] }
0x113d   :  { %v12397_v27 = vpop.xlane.xlu0 %12396 }
0x113e   :  { %v12407_v54 = vsub.f32 %v12236_v24, %v12397_v27 }
0x113f   :  { %v18637_v17 = vpop.eup %18636 }
0x1140   :  { %v12421_v3 = vmul.f32 1.442695, %v12407_v54  ;;  %v12437_v6 = vsel %vm2880_vm11, %v18637_v17, 0.0  ;;  %v18716_v54 = vld [vmem:[%s21951_s1] sm:$0xff] }
0x1141   :  { %12438 = vadd.xlane.f32.xlu0 %v12437_v6  ;;  %v18717_v6 = vld [vmem:[%s21951_s1 + $0x8] sm:$0xff] }
0x1142   :  { %18638 = vpow2.f32 %v12421_v3 }
0x1145   :  { %12378 = vmax.xlane.f32.xlu0 %v12377_v37 }
0x1149   :  { %12387 = vmax.xlane.f32.xlu0 %v12386_v48  ;;  %v18718_v48 = vld [vmem:[%s21951_s1 + $0x10] sm:$0xff] }
0x114c   :  { %v18639_v32 = vpop.eup %18638 }
0x114d   :  { %v12443_v12 = vsel %vm2880_vm11, %v18639_v32, 0.0  ;;  %12399 = vmax.xlane.f32.xlu0 %v12398_v31  ;;  %v18720_v31 = vld [vmem:[%s21951_s1 + $0x20] sm:$0xff] }
0x114e   :  { %12444 = vadd.xlane.f32.xlu1 %v12443_v12  ;;  %v18721_v12 = vld [vmem:[%s21951_s1 + $0x28] sm:$0xff] }
0x1152   :  { %12381 = vmax.xlane.f32.xlu1 %v12380_v41  ;;  %v18722_v41 = vld [vmem:[%s21951_s1 + $0x30] sm:$0xff] }
0x1156   :  { %12393 = vmax.xlane.f32.xlu1 %v12392_v14  ;;  %v18723_v14 = vld [vmem:[%s21951_s1 + $0x38] sm:$0xff] }
0x11c3   :  { %v12433_v49 = vpop.xlane.xlu1 %12432 }
0x11c4   :  { %18640 = vrcp.f32 %v12433_v49  ;;  %v18724_v49 = vld [vmem:[%s21951_s1 + $0x40] sm:$0xff] }
0x11ce   :  { %v18641_v26 = vpop.eup %18640  ;;  %v12439_v43 = vpop.xlane.xlu0 %12438 }
0x11cf   :  { %18642 = vrcp.f32 %v12439_v43  ;;  %v12454_v20 = vmul.f32 %v18641_v26, %v18635_v11 }
0x11d1   :  { %v12468_v28 = vsel %vm12465_vm5, %v12454_v20, 0.0 }
0x11d2   :  { %v12379_v40 = vpop.xlane.xlu0 %12378  ;;  %16516 = vst.msk [vmem:[%s21952_s9 + $0x110] sm:$0x3f] %vm2880_vm11, %v12468_v28  ;;  %17766 = vmatmul.mubr.msk.f32.vlgmr.msra.gmra.mrb[34].mxu0 %vm4749_vm13, %v12468_v28 }
0x11d3   :  { %v12401_v59 = vsub.f32 %v21217_v53, %v12379_v40  ;;  %18321 = vmatpush3.bf16.msk.msra.mxu0 %vm19731_vm10, %v21127_v58  ;;  %17779 = vmatprep.mubr.msk.f32.mxu0 %vm18726_vm1, %v21969_v62 }
0x11d4   :  { %18326 = vmatprep.subr.bf16.mxu0 %v21970_v15 }
0x11d5   :  { %v12409_v52 = vmul.f32 1.442695, %v12401_v59 }
0x11d6   :  { %v12388_v18 = vpop.xlane.xlu0 %12387 }
0x11d7   :  { %18644 = vpow2.f32 %v12409_v52  ;;  %v12404_v39 = vsub.f32 %v11825_v50, %v12388_v18 }
0x11d9   :  { %v18643_v5 = vpop.eup %18642  ;;  %v12415_v9 = vmul.f32 1.442695, %v12404_v39 }
0x11da   :  { %v12400_v46 = vpop.xlane.xlu0 %12399  ;;  %v12458_v38 = vmul.f32 %v18643_v5, %v18637_v17 }
0x11db   :  { %v12445_v24 = vpop.xlane.xlu1 %12444  ;;  %18646 = vpow2.f32 %v12415_v9  ;;  %v12408_v53 = vsub.f32 %v12373_v8, %v12400_v46 }
0x11dc   :  { %18648 = vrcp.f32 %v12445_v24  ;;  %v12470_v58 = vsel %vm12465_vm5, %v12458_v38, 0.0 }
0x11dd   :  { %v12423_v45 = vmul.f32 1.442695, %v12408_v53  ;;  %16518 = vst.msk [vmem:[%s21952_s9 + $0x120] sm:$0x3f] %vm2880_vm11, %v12470_v58  ;;  %17780 = vmatmul.mubr.msk.f32.vlgmr.msra.gmra.mrb[36].mxu0 %vm4749_vm13, %v12470_v58 }
0x11de   :  { %18329 = vmatpush3.bf16.msk.msra.mxu0 %vm19731_vm10, %v21174_v61  ;;  %17793 = vmatprep.mubr.msk.f32.mxu0 %vm18726_vm1, %v21969_v62 }
0x11df   :  { %v12382_v50 = vpop.xlane.xlu1 %12381  ;;  %18650 = vpow2.f32 %v12423_v45  ;;  %17803 = vmatprep.subr.mxu0 %v21969_v62 }
0x11e0   :  { %v12402_v42 = vsub.f32 %v21219_v36, %v12382_v50 }
0x11e1   :  { %v21266_v0 = vpop.eup %18644 }
0x11e2   :  { %v12411_v8 = vmul.f32 1.442695, %v12402_v42  ;;  %v12425_v13 = vsel %vm2880_vm11, %v21266_v0, 0.0 }
0x11e3   :  { %v12394_v7 = vpop.xlane.xlu1 %12393  ;;  %12426 = vadd.xlane.f32.xlu1 %v12425_v13 }
0x11e4   :  { %18652 = vpow2.f32 %v12411_v8  ;;  %v12406_v61 = vsub.f32 %v21224_v22, %v12394_v7 }
0x11e5   :  { %v21271_v21 = vpop.eup %18646 }
0x11e6   :  { %v18649_v44 = vpop.eup %18648  ;;  %v12419_v30 = vmul.f32 1.442695, %v12406_v61  ;;  %v12434_v1 = vsel %vm2880_vm11, %v21271_v21, 0.0 }
0x11e7   :  { %v12462_v63 = vmul.f32 %v18649_v44, %v18639_v32  ;;  %12435 = vadd.xlane.f32.xlu1 %v12434_v1  ;;  %v18719_v32 = vld [vmem:[%s21951_s1 + $0x18] sm:$0xff] }
0x11e8   :  { %18654 = vpow2.f32 %v12419_v30 }
0x11e9   :  { %v21275_v36 = vpop.eup %18650  ;;  %v12472_v11 = vsel %vm12465_vm5, %v12462_v63, 0.0 }
0x11ea   :  { %16520 = vst.msk [vmem:[%s21952_s9 + $0x130] sm:$0x3f] %vm2880_vm11, %v12472_v11  ;;  %17794 = vmatmul.mubr.msk.f32.vlgmr.msra.gmra.mrb[38].mxu0 %vm4749_vm13, %v12472_v11  ;;  %v12446_v22 = vsel %vm2880_vm11, %v21275_v36, 0.0 }
0x11eb   :  { %17804 = vmatpush3.msra.mxu0 %v21975_v51  ;;  %17805 = vmatprep.mubr.msk.f32.mxu0 %vm18726_vm1, %v21969_v62 }
0x11ec   :  { %12447 = vadd.xlane.f32.xlu1 %v12446_v22  ;;  %18350 = vmatprep.subr.bf16.mxu0 %v21970_v15 }
0x11ee   :  { %v18653_v27 = vpop.eup %18652  ;;  %17806 = vmatmul.mubr.msk.f32.vlgmr.msra.gmra.mrb[110].mxu0 %vm45_vm0, %v18716_v54 }
0x11ef   :  { %v12428_v17 = vsel %vm2880_vm11, %v18653_v27, 0.0  ;;  %17808 = vmatprep.mubr.msk.f32.mxu0 %vm18726_vm1, %v21969_v62 }
0x11f0   :  { %12429 = vadd.xlane.f32.xlu0 %v12428_v17 }
0x11f2   :  { %v18655_v3 = vpop.eup %18654  ;;  %17809 = vmatmul.mubr.msk.f32.gmra.mrb[112].mxu0 %vm45_vm0, %v18717_v6 }
0x11f3   :  { %v12440_v37 = vsel %vm2880_vm11, %v18655_v3, 0.0  ;;  %17811 = vmatprep.mubr.msk.f32.mxu0 %vm18726_vm1, %v21969_v62 }
0x11f4   :  { %12441 = vadd.xlane.f32.xlu0 %v12440_v37 }
0x11f6   :  { %17812 = vmatmul.mubr.msk.f32.gmra.mrb[114].mxu0 %vm45_vm0, %v18718_v48 }
0x11f7   :  { %17814 = vmatprep.mubr.msk.f32.mxu0 %vm18726_vm1, %v21969_v62 }
0x11fa   :  { %17815 = vmatmul.mubr.msk.f32.gmra.mrb[116].mxu0 %vm45_vm0, %v18719_v32 }
0x11fb   :  { %17817 = vmatprep.mubr.msk.f32.mxu0 %vm18726_vm1, %v21969_v62 }
0x11fe   :  { %17818 = vmatmul.mubr.msk.f32.gmra.mrb[118].mxu0 %vm45_vm0, %v18720_v31 }
0x11ff   :  { %17820 = vmatprep.mubr.msk.f32.mxu0 %vm18726_vm1, %v21969_v62 }
0x1202   :  { %17821 = vmatmul.mubr.msk.f32.gmra.mrb[120].mxu0 %vm45_vm0, %v18721_v12 }
0x1203   :  { %17823 = vmatprep.mubr.msk.f32.mxu0 %vm18726_vm1, %v21969_v62 }
0x1206   :  { %17824 = vmatmul.mubr.msk.f32.gmra.mrb[122].mxu0 %vm45_vm0, %v18722_v41 }
0x1207   :  { %17826 = vmatprep.mubr.msk.f32.mxu0 %vm18726_vm1, %v21969_v62 }
0x120a   :  { %17827 = vmatmul.mubr.msk.f32.gmra.mrb[124].mxu0 %vm45_vm0, %v18723_v14 }
0x120b   :  { %17829 = vmatprep.mubr.msk.f32.mxu0 %vm18726_vm1, %v21969_v62 }
0x120e   :  { %17830 = vmatmul.mubr.msk.f32.gmra.mrb[126].mxu0 %vm45_vm0, %v18724_v49 }
0x120f   :  { %17864 = vmatprep.mubr.msk.f32.mxu0 %vm18726_vm1, %v21969_v62 }
0x1270   :  { %v12427_v26 = vpop.xlane.xlu1 %12426 }
0x1271   :  { %18656 = vrcp.f32 %v12427_v26 }
0x1274   :  { %v12436_v43 = vpop.xlane.xlu1 %12435 }
0x1275   :  { %18658 = vrcp.f32 %v12436_v43 }
0x1279   :  { %v12448_v20 = vpop.xlane.xlu1 %12447 }
0x127a   :  { %18660 = vrcp.f32 %v12448_v20 }
0x127b   :  { %v18657_v28 = vpop.eup %18656 }
0x127c   :  { %v12450_v40 = vmul.f32 %v18657_v28, %v21266_v0 }
0x127d   :  { %v12430_v59 = vpop.xlane.xlu0 %12429 }
0x127e   :  { %18662 = vrcp.f32 %v12430_v59  ;;  %v12466_v52 = vsel %vm12465_vm5, %v12450_v40, 0.0 }
0x127f   :  { %v18659_v18 = vpop.eup %18658  ;;  %16514 = vst.msk [vmem:[%s21952_s9 + $0x100] sm:$0x3f] %vm2880_vm11, %v12466_v52  ;;  %17752 = vmatmul.mubr.msk.f32.vlgmr.msra.gmra.mrb[52].mxu1 %vm4749_vm13, %v12466_v52 }
0x1280   :  { %18309 = vmatpush3.bf16.msk.msra.mxu1 %vm19731_vm10, %v21052_v57  ;;  %17758 = vmatprep.mubr.msk.f32.mxu1 %vm18726_vm1, %v21969_v62  ;;  %v12456_v39 = vmul.f32 %v18659_v18, %v21271_v21 }
0x1281   :  { %v12442_v5 = vpop.xlane.xlu0 %12441  ;;  %18314 = vmatprep.subr.bf16.mxu1 %v21970_v15 }
0x1282   :  { %18664 = vrcp.f32 %v12442_v5  ;;  %v12469_v9 = vsel %vm12465_vm5, %v12456_v39, 0.0 }
0x1283   :  { %16517 = vst.msk [vmem:[%s21952_s9 + $0x118] sm:$0x3f] %vm2880_vm11, %v12469_v9 }
0x1284   :  { %v18661_v46 = vpop.eup %18660 }
0x1285   :  { %v12464_v57 = vmul.f32 %v18661_v46, %v21275_v36 }
0x1287   :  { %v12473_v38 = vsel %vm12465_vm5, %v12464_v57, 0.0 }
0x1288   :  { %v18663_v24 = vpop.eup %18662  ;;  %16521 = vst.msk [vmem:[%s21952_s9 + $0x138] sm:$0x3f] %vm2880_vm11, %v12473_v38 }
0x1289   :  { %v12452_v53 = vmul.f32 %v18663_v24, %v18653_v27 }
0x128b   :  { %v12467_v58 = vsel %vm12465_vm5, %v12452_v53, 0.0 }
0x128c   :  { %v18665_v45 = vpop.eup %18664  ;;  %16515 = vst.msk [vmem:[%s21952_s9 + $0x108] sm:$0x3f] %vm2880_vm11, %v12467_v58  ;;  %17759 = vmatmul.mubr.msk.f32.vlgmr.msra.gmra.mrb[54].mxu1 %vm4749_vm13, %v12467_v58 }
0x128d   :  { %18317 = vmatpush3.bf16.msk.msra.mxu1 %vm19731_vm10, %v21159_v34  ;;  %17772 = vmatprep.mubr.msk.f32.mxu1 %vm18726_vm1, %v21969_v62  ;;  %v12460_v50 = vmul.f32 %v18665_v45, %v18655_v3 }
0x128e   :  { %18322 = vmatprep.subr.bf16.mxu1 %v21970_v15 }
0x128f   :  { %v12471_v42 = vsel %vm12465_vm5, %v12460_v50, 0.0 }
0x1290   :  { %17773 = vmatmul.mubr.msk.f32.vlgmr.msra.gmra.mrb[56].mxu1 %vm4749_vm13, %v12469_v9  ;;  %16519 = vst.msk [vmem:[%s21952_s9 + $0x128] sm:$0x3f] %vm2880_vm11, %v12471_v42 }
0x1291   :  { %18325 = vmatpush3.bf16.msk.msra.mxu1 %vm19731_vm10, %v21161_v33  ;;  %17786 = vmatprep.mubr.msk.f32.mxu1 %vm18726_vm1, %v21969_v62 }
0x1292   :  { %18330 = vmatprep.subr.bf16.mxu1 %v21970_v15 }
0x1294   :  { %17787 = vmatmul.mubr.msk.f32.vlgmr.msra.gmra.mrb[58].mxu1 %vm4749_vm13, %v12471_v42 }
0x1295   :  { %18333 = vmatpush3.bf16.msk.msra.mxu1 %vm19731_vm10, %v21191_v35  ;;  %17800 = vmatprep.mubr.msk.f32.mxu1 %vm18726_vm1, %v21969_v62 }
0x1296   :  { %18334 = vmatprep.subr.bf16.mxu1 %v21970_v15 }
0x1298   :  { %17801 = vmatmul.mubr.msk.f32.vlgmr.msra.gmra.mrb[60].mxu1 %vm4749_vm13, %v12473_v38 }
0x1299   :  { %17836 = vmatprep.mubr.msk.f32.mxu1 %vm18726_vm1, %v21969_v62 }
0x12c1   :  { %v13165_v34 = vpop.f32.mrb[110].mxu0 }
0x12c2   :  { %v13218_v33 = vcombine.high %v13165_v34, %v13165_v34  ;;  %v13225_v0 = vrot.slane %v13165_v34, %v18979_v60  ;;  %v17807_v8 = vpop.f32.mrb[111].mxu0 }
0x12c4   :  { %v13232_v13 = vrot.slane %v13218_v33, %v18979_v60  ;;  %v13233_v7 = vcombine.high %v13225_v0, %v13225_v0  ;;  %v13241_v21 = vrot.slane %v13225_v0, %v18979_v60 }
0x12c5   :  { %v13170_v61 = vpop.f32.mrb[112].mxu0 }
0x12c6   :  { %v13234_v35 = vcombine.high %v13232_v13, %v13232_v13  ;;  %v13255_v44 = vrot.slane %v13233_v7, %v18979_v60  ;;  %v13267_v30 = vcombine.high %v13170_v61, %v13170_v61  ;;  %v17810_v1 = vpop.f32.mrb[113].mxu0  ;;  %v13248_v63 = vrot.slane %v13232_v13, %v18979_v60 }
0x12c7   :  { %v13274_v36 = vrot.slane %v13170_v61, %v18979_v60 }
0x12c8   :  { %v13262_v11 = vrot.slane %v13234_v35, %v18979_v60  ;;  %v13659_v22 = vcombine.low %v13241_v21, %v13255_v44  ;;  %v16547_v51 = vcombine.high %v13241_v21, %v13255_v44  ;;  %v13281_v27 = vrot.slane %v13267_v30, %v18979_v60 }
0x12c9   :  { %v13282_v54 = vcombine.high %v13274_v36, %v13274_v36  ;;  %v13290_v17 = vrot.slane %v13274_v36, %v18979_v60  ;;  %v13175_v3 = vpop.f32.mrb[114].mxu0 }
0x12ca   :  { %v13661_v6 = vcombine.low %v13248_v63, %v13262_v11  ;;  %v16548_v37 = vcombine.high %v13248_v63, %v13262_v11  ;;  %v13669_v48 = vrot.slane %v13659_v22, %v18979_v60  ;;  %v13676_v32 = vrot.slane %v16547_v51, %v18979_v60  ;;  %v17813_v31 = vpop.f32.mrb[115].mxu0 }
0x12cb   :  { %v13283_v12 = vcombine.high %v13281_v27, %v13281_v27  ;;  %v13297_v41 = vrot.slane %v13281_v27, %v18979_v60  ;;  %v13304_v14 = vrot.slane %v13282_v54, %v18979_v60  ;;  %v13312_v49 = vcombine.high %v13290_v17, %v13290_v17 }
0x12cc   :  { %v13683_v26 = vrot.slane %v13661_v6, %v18979_v60  ;;  %v13690_v43 = vrot.slane %v16548_v37, %v18979_v60  ;;  %v13691_v20 = vcombine.low %v13669_v48, %v13676_v32  ;;  %v13714_v28 = vrot.slane %v13290_v17, %v18979_v60 }
0x12cd   :  { %v13311_v40 = vrot.slane %v13283_v12, %v18979_v60  ;;  %v13313_v59 = vcombine.high %v13297_v41, %v13297_v41  ;;  %v13314_v52 = vcombine.high %v13304_v14, %v13304_v14  ;;  %v13796_v18 = vcombine.low %v13304_v14, %v13312_v49  ;;  %v13180_v39 = vpop.f32.mrb[116].mxu0 }
0x12ce   :  { %v13692_v5 = vcombine.low %v13683_v26, %v13690_v43  ;;  %v13699_v9 = vrot.slane %v13691_v20, %v18979_v60  ;;  %v13316_v46 = vcombine.high %v13175_v3, %v13175_v3  ;;  %v17816_v57 = vpop.f32.mrb[117].mxu0  ;;  %v13323_v50 = vrot.slane %v13175_v3, %v18979_v60 }
0x12cf   :  { %v13797_v38 = vcombine.low %v13314_v52, %v13297_v41  ;;  %v13798_v24 = vcombine.low %v13311_v40, %v13313_v59  ;;  %v13806_v53 = vrot.slane %v13796_v18, %v18979_v60  ;;  %v13315_v58 = vcombine.high %v13311_v40, %v13311_v40 }
0x12d0   :  { %v13706_v45 = vrot.slane %v13692_v5, %v18979_v60  ;;  %v13330_v42 = vrot.slane %v13316_v46, %v18979_v60  ;;  %v13365_v34 = vcombine.high %v13180_v39, %v13180_v39  ;;  %v13721_v33 = vrot.slane %v13714_v28, %v18979_v60 }
0x12d1   :  { %v13813_v0 = vrot.slane %v13797_v38, %v18979_v60  ;;  %v13820_v8 = vrot.slane %v13798_v24, %v18979_v60  ;;  %v13372_v13 = vrot.slane %v13180_v39, %v18979_v60  ;;  %v13185_v7 = vpop.f32.mrb[118].mxu0  ;;  %v13331_v35 = vcombine.high %v13323_v50, %v13323_v50 }
0x12d2   :  { %v13707_v61 = vcombine.low %v13699_v9, %v13706_v45  ;;  %v13332_v21 = vcombine.high %v13330_v42, %v13330_v42  ;;  %v13339_v44 = vrot.slane %v13323_v50, %v18979_v60  ;;  %v17819_v30 = vpop.f32.mrb[119].mxu0  ;;  %v13346_v63 = vrot.slane %v13330_v42, %v18979_v60 }
0x12d3   :  { %v13828_v1 = vcombine.low %v13806_v53, %v13813_v0  ;;  %v13379_v36 = vrot.slane %v13365_v34, %v18979_v60  ;;  %v13380_v11 = vcombine.high %v13372_v13, %v13372_v13  ;;  %v13353_v51 = vrot.slane %v13331_v35, %v18979_v60 }
0x12d4   :  { %v21439_v22 = vpack.c.bf16 %v13721_v33, %v13707_v61  ;;  %v13360_v27 = vrot.slane %v13332_v21, %v18979_v60  ;;  %v13799_v54 = vcombine.low %v13315_v58, %v13339_v44  ;;  %v13388_v6 = vrot.slane %v13372_v13, %v18979_v60 }
0x12d5   :  { %v13836_v17 = vrot.slane %v13828_v1, %v18979_v60  ;;  %v13381_v3 = vcombine.high %v13379_v36, %v13379_v36  ;;  %v13395_v37 = vrot.slane %v13379_v36, %v18979_v60  ;;  %v13190_v48 = vpop.f32.mrb[120].mxu0  ;;  %v13851_v31 = vrot.slane %v13353_v51, %v18979_v60 }
0x12d6   :  { %v13827_v32 = vrot.slane %v13799_v54, %v18979_v60  ;;  %v16555_v12 = vcombine.high %v13339_v44, %v13353_v51  ;;  %v13934_v41 = vcombine.low %v13346_v63, %v13360_v27  ;;  %18337 = vmatpush3.bf16.xpose.msk.msra.mxu1 %vm19015_vm3, %v21439_v22  ;;  %v17822_v14 = vpop.f32.mrb[121].mxu0  ;;  %v16556_v49 = vcombine.high %v13346_v63, %v13360_v27 }
0x12d7   :  { %v13402_v26 = vrot.slane %v13380_v11, %v18979_v60  ;;  %v13409_v43 = vrot.slane %v13381_v3, %v18979_v60  ;;  %v13410_v20 = vcombine.high %v13388_v6, %v13388_v6  ;;  %18338 = vmatprep.subr.bf16.mxu1 %v21970_v15  ;;  %v13858_v40 = vrot.slane %v13851_v31, %v18979_v60 }
0x12d8   :  { %v13829_v28 = vcombine.low %v13820_v8, %v13827_v32  ;;  %v13943_v59 = vrot.slane %v16555_v12, %v18979_v60  ;;  %v13950_v52 = vrot.slane %v13934_v41, %v18979_v60  ;;  %v13957_v18 = vrot.slane %v16556_v49, %v18979_v60 }
0x12d9   :  { %v13411_v39 = vcombine.high %v13395_v37, %v13395_v37  ;;  %v13412_v5 = vcombine.high %v13402_v26, %v13402_v26  ;;  %v13936_v9 = vcombine.low %v13388_v6, %v13402_v26  ;;  %v21458_v46 = vpop.f32.mrb[122].mxu0  ;;  %v13988_v24 = vrot.slane %v13410_v20, %v18979_v60 }
0x12da   :  { %v13843_v57 = vrot.slane %v13829_v28, %v18979_v60  ;;  %v13965_v38 = vcombine.low %v13943_v59, %v13950_v52  ;;  %v13413_v53 = vcombine.high %v13409_v43, %v13409_v43  ;;  %v17825_v58 = vpop.f32.mrb[123].mxu0  ;;  %v13414_v34 = vcombine.high %v13185_v7, %v13185_v7 }
0x12db   :  { %v13964_v45 = vrot.slane %v13936_v9, %v18979_v60  ;;  %v14070_v50 = vcombine.low %v13412_v5, %v13395_v37  ;;  %v14071_v42 = vcombine.low %v13409_v43, %v13411_v39  ;;  %v13995_v8 = vrot.slane %v13988_v24, %v18979_v60 }
0x12dc   :  { %v13844_v33 = vcombine.low %v13836_v17, %v13843_v57  ;;  %v13973_v0 = vrot.slane %v13965_v38, %v18979_v60  ;;  %v13421_v13 = vrot.slane %v13185_v7, %v18979_v60  ;;  %v13428_v44 = vrot.slane %v13414_v34, %v18979_v60 }
0x12dd   :  { %v13966_v61 = vcombine.low %v13957_v18, %v13964_v45  ;;  %v14080_v35 = vrot.slane %v14070_v50, %v18979_v60  ;;  %v14087_v21 = vrot.slane %v14071_v42, %v18979_v60  ;;  %v21469_v30 = vpop.f32.mrb[124].mxu0  ;;  %17837 = vmatmul.mubr.msk.f32.vlgmr.msra.gmra.mrb[94].mxu1 %vm163_vm2, %v19293_v19  ;;  %v13463_v11 = vcombine.high %v13190_v48, %v13190_v48 }
0x12de   :  { %v21473_v1 = vpack.c.bf16 %v13858_v40, %v13844_v33  ;;  %v13429_v63 = vcombine.high %v13421_v13, %v13421_v13  ;;  %v13437_v36 = vrot.slane %v13421_v13, %v18979_v60  ;;  %17843 = vmatprep.mubr.msk.f32.mxu1 %vm18726_vm1, %v21969_v62  ;;  %v17828_v7 = vpop.f32.mrb[125].mxu0  ;;  %v13430_v54 = vcombine.high %v13428_v44, %v13428_v44 }
0x12df   :  { %v13980_v51 = vrot.slane %v13966_v61, %v18979_v60  ;;  %v14102_v27 = vcombine.low %v14080_v35, %v14087_v21  ;;  %v13444_v17 = vrot.slane %v13428_v44, %v18979_v60  ;;  %v13470_v32 = vrot.slane %v13190_v48, %v18979_v60 }
0x12e0   :  { %v13451_v3 = vrot.slane %v13429_v63, %v18979_v60  ;;  %v13459_v6 = vcombine.high %v13437_v36, %v13437_v36  ;;  %v14072_v37 = vcombine.low %v13413_v53, %v13437_v36  ;;  %18341 = vmatpush3.bf16.xpose.msk.msra.mxu1 %vm19015_vm3, %v21473_v1  ;;  %v13458_v41 = vrot.slane %v13430_v54, %v18979_v60 }
0x12e1   :  { %v13981_v31 = vcombine.low %v13973_v0, %v13980_v51  ;;  %v14110_v12 = vrot.slane %v14102_v27, %v18979_v60  ;;  %v13477_v14 = vrot.slane %v13463_v11, %v18979_v60  ;;  %18342 = vmatprep.subr.bf16.mxu1 %v21970_v15  ;;  %v21489_v49 = vpop.f32.mrb[126].mxu0  ;;  %v13478_v48 = vcombine.high %v13470_v32, %v13470_v32 }
0x12e2   :  { %v13461_v26 = vcombine.high %v13451_v3, %v13451_v3  ;;  %v14073_v43 = vcombine.low %v13451_v3, %v13459_v6  ;;  %v14094_v20 = vrot.slane %v14072_v37, %v18979_v60  ;;  %v17831_v28 = vpop.f32.mrb[127].mxu0  ;;  %v14207_v59 = vcombine.low %v13444_v17, %v13458_v41 }
0x12e3   :  { %v21492_v40 = vpack.c.bf16 %v13995_v8, %v13981_v31  ;;  %v16563_v52 = vcombine.high %v13444_v17, %v13458_v41  ;;  %v13479_v18 = vcombine.high %v13477_v14, %v13477_v14  ;;  %v13486_v9 = vrot.slane %v13470_v32, %v18979_v60 }
0x12e4   :  { %v14101_v39 = vrot.slane %v14073_v43, %v18979_v60  ;;  %v21496_v5 = vrot.slane %v13461_v26, %v18979_v60  ;;  %v13493_v57 = vrot.slane %v13477_v14, %v18979_v60  ;;  %v14217_v38 = vrot.slane %v14207_v59, %v18979_v60 }
0x12e5   :  { %v14224_v24 = vrot.slane %v16563_v52, %v18979_v60  ;;  %v13500_v53 = vrot.slane %v13478_v48, %v18979_v60  ;;  %v13507_v58 = vrot.slane %v13479_v18, %v18979_v60  ;;  %v13512_v44 = vcombine.high %v21458_v46, %v21458_v46 }
0x12e6   :  { %v14103_v45 = vcombine.low %v14094_v20, %v14101_v39  ;;  %v14132_v50 = vrot.slane %v21496_v5, %v18979_v60  ;;  %v13509_v42 = vcombine.high %v13493_v57, %v13493_v57  ;;  %v14262_v34 = vrot.slane %v13493_v57, %v18979_v60 }
0x12e7   :  { %v14239_v33 = vcombine.low %v14217_v38, %v14224_v24  ;;  %v14209_v0 = vcombine.low %v13486_v9, %v13500_v53  ;;  %v16564_v8 = vcombine.high %v13486_v9, %v13500_v53  ;;  %v13511_v13 = vcombine.high %v13507_v58, %v13507_v58  ;;  %17844 = vmatmul.mubr.msk.f32.vlgmr.msra.gmra.mrb[96].mxu1 %vm163_vm2, %v19350_v2 }
0x12e8   :  { %v14117_v61 = vrot.slane %v14103_v45, %v18979_v60  ;;  %v14269_v35 = vrot.slane %v14262_v34, %v18979_v60  ;;  %v14344_v21 = vcombine.low %v13507_v58, %v13509_v42  ;;  %18345 = vmatpush3.bf16.xpose.msk.msra.mxu1 %vm19015_vm3, %v21492_v40  ;;  %v13519_v7 = vrot.slane %v21458_v46, %v18979_v60 }
0x12e9   :  { %v14247_v63 = vrot.slane %v14239_v33, %v18979_v60  ;;  %v14231_v36 = vrot.slane %v14209_v0, %v18979_v60  ;;  %v14238_v11 = vrot.slane %v16564_v8, %v18979_v60  ;;  %17850 = vmatprep.mubr.msk.f32.mxu1 %vm18726_vm1, %v21969_v62  ;;  %v13526_v27 = vrot.slane %v13512_v44, %v18979_v60 }
0x12ea   :  { %v21523_v51 = vcombine.low %v14110_v12, %v14117_v61  ;;  %v14354_v54 = vrot.slane %v14344_v21, %v18979_v60  ;;  %v13561_v17 = vcombine.high %v21469_v30, %v21469_v30  ;;  %18346 = vmatprep.subr.bf16.mxu1 %v21970_v15  ;;  %v13527_v6 = vcombine.high %v13519_v7, %v13519_v7 }
0x12eb   :  { %v14240_v3 = vcombine.low %v14231_v36, %v14238_v11  ;;  %v13535_v37 = vrot.slane %v13519_v7, %v18979_v60  ;;  %v13568_v46 = vrot.slane %v21469_v30, %v18979_v60  ;;  %v13528_v32 = vcombine.high %v13526_v27, %v13526_v27 }
0x12ec   :  { %v13542_v31 = vrot.slane %v13526_v27, %v18979_v60  ;;  %v13575_v12 = vrot.slane %v13561_v17, %v18979_v60  ;;  %v13610_v41 = vcombine.high %v21489_v49, %v21489_v49  ;;  %v13549_v26 = vrot.slane %v13527_v6, %v18979_v60 }
0x12ed   :  { %v14254_v14 = vrot.slane %v14240_v3, %v18979_v60  ;;  %v13557_v43 = vcombine.high %v13535_v37, %v13535_v37  ;;  %v14345_v20 = vcombine.low %v13511_v13, %v13535_v37  ;;  %v13556_v48 = vrot.slane %v13528_v32, %v18979_v60 }
0x12ee   :  { %v13576_v28 = vcombine.high %v13568_v46, %v13568_v46  ;;  %v13577_v59 = vcombine.high %v13575_v12, %v13575_v12  ;;  %v13584_v30 = vrot.slane %v13568_v46, %v18979_v60  ;;  %v13559_v18 = vcombine.high %v13549_v26, %v13549_v26 }
0x12ef   :  { %v14255_v52 = vcombine.low %v14247_v63, %v14254_v14  ;;  %v14346_v39 = vcombine.low %v13549_v26, %v13557_v43  ;;  %v14361_v9 = vrot.slane %v14345_v20, %v18979_v60  ;;  %17851 = vmatmul.mubr.msk.f32.vlgmr.msra.gmra.mrb[98].mxu1 %vm163_vm2, %v19396_v4  ;;  %v14399_v57 = vrot.slane %v13556_v48, %v18979_v60 }
0x12f0   :  { %v16571_v38 = vcombine.high %v13542_v31, %v13556_v48  ;;  %v13591_v24 = vrot.slane %v13575_v12, %v18979_v60  ;;  %v13598_v53 = vrot.slane %v13576_v28, %v18979_v60  ;;  %17857 = vmatprep.mubr.msk.f32.mxu1 %vm18726_vm1, %v21969_v62  ;;  %v14347_v45 = vcombine.low %v13559_v18, %v13542_v31 }
0x12f1   :  { %v21549_v58 = vpack.c.bf16 %v14269_v35, %v14255_v52  ;;  %v14368_v42 = vrot.slane %v14346_v39, %v18979_v60  ;;  %v14376_v34 = vcombine.low %v14354_v54, %v14361_v9  ;;  %v14406_v33 = vrot.slane %v14399_v57, %v18979_v60 }
0x12f2   :  { %v14491_v0 = vrot.slane %v16571_v38, %v18979_v60  ;;  %v13605_v8 = vrot.slane %v13577_v59, %v18979_v60  ;;  %v13607_v13 = vcombine.high %v13591_v24, %v13591_v24  ;;  %v14375_v61 = vrot.slane %v14347_v45, %v18979_v60 }
0x12f3   :  { %v14384_v21 = vrot.slane %v14376_v34, %v18979_v60  ;;  %v14482_v44 = vcombine.low %v13584_v30, %v13598_v53  ;;  %v16572_v63 = vcombine.high %v13584_v30, %v13598_v53  ;;  %18353 = vmatpush3.bf16.xpose.msk.msra.mxu0 %vm19015_vm3, %v21549_v58  ;;  %v13617_v7 = vrot.slane %v21489_v49, %v18979_v60 }
0x12f4   :  { %v14484_v35 = vcombine.low %v13591_v24, %v13605_v8  ;;  %v14536_v36 = vrot.slane %v13607_v13, %v18979_v60  ;;  %v13609_v11 = vcombine.high %v13605_v8, %v13605_v8  ;;  %18358 = vmatprep.subr.bf16.mxu0 %v21970_v15  ;;  %v14377_v27 = vcombine.low %v14368_v42, %v14375_v61 }
0x12f5   :  { %v14498_v54 = vrot.slane %v14482_v44, %v18979_v60  ;;  %v14505_v17 = vrot.slane %v16572_v63, %v18979_v60  ;;  %v13624_v3 = vrot.slane %v13610_v41, %v18979_v60  ;;  %v13625_v46 = vcombine.high %v13617_v7, %v13617_v7 }
0x12f6   :  { %v14512_v6 = vrot.slane %v14484_v35, %v18979_v60  ;;  %v14543_v37 = vrot.slane %v14536_v36, %v18979_v60  ;;  %v13633_v32 = vrot.slane %v13617_v7, %v18979_v60  ;;  %v14391_v31 = vrot.slane %v14377_v27, %v18979_v60 }
0x12f7   :  { %v14513_v12 = vcombine.low %v14491_v0, %v14498_v54  ;;  %v13626_v49 = vcombine.high %v13624_v3, %v13624_v3  ;;  %v13640_v14 = vrot.slane %v13624_v3, %v18979_v60  ;;  %v13647_v43 = vrot.slane %v13625_v46, %v18979_v60 }
0x12f8   :  { %v14514_v26 = vcombine.low %v14505_v17, %v14512_v6  ;;  %v13655_v20 = vcombine.high %v13633_v32, %v13633_v32  ;;  %v14618_v48 = vcombine.low %v13609_v11, %v13633_v32  ;;  %v14392_v28 = vcombine.low %v14384_v21, %v14391_v31 }
0x12f9   :  { %v14521_v41 = vrot.slane %v14513_v12, %v18979_v60  ;;  %v13654_v59 = vrot.slane %v13626_v49, %v18979_v60  ;;  %v13656_v30 = vcombine.high %v13640_v14, %v13640_v14  ;;  %v13657_v18 = vcombine.high %v13647_v43, %v13647_v43 }
0x12fa   :  { %v14528_v52 = vrot.slane %v14514_v26, %v18979_v60  ;;  %v14619_v39 = vcombine.low %v13647_v43, %v13655_v20  ;;  %v14628_v9 = vrot.slane %v14618_v48, %v18979_v60  ;;  %17865 = vmatmul.mubr.msk.f32.vlgmr.msra.gmra.mrb[128].mxu0 %vm163_vm2, %v19304_v23  ;;  %v21583_v24 = vpack.c.bf16 %v14132_v50, %v21523_v51 }
0x12fb   :  { %v13658_v57 = vcombine.high %v13654_v59, %v13654_v59  ;;  %v14621_v38 = vcombine.low %v13654_v59, %v13656_v30  ;;  %v21585_v53 = vpack.c.bf16 %v14406_v33, %v14392_v28  ;;  %17878 = vmatprep.mubr.msk.f32.mxu0 %vm18726_vm1, %v21969_v62  ;;  %v14620_v42 = vcombine.low %v13657_v18, %v13640_v14 }
0x12fc   :  { %v14529_v45 = vcombine.low %v14521_v41, %v14528_v52  ;;  %v14635_v34 = vrot.slane %v14619_v39, %v18979_v60  ;;  %18349 = vmatpush3.bf16.xpose.msk.msra.mxu1 %vm19015_vm3, %v21583_v24 }
0x12fd   :  { %v14649_v0 = vrot.slane %v14621_v38, %v18979_v60  ;;  %v14642_v8 = vrot.slane %v14620_v42, %v18979_v60  ;;  %v14673_v50 = vrot.slane %v13658_v57, %v18979_v60  ;;  %18354 = vmatprep.subr.bf16.mxu1 %v21970_v15 }
0x12fe   :  { %v14650_v5 = vcombine.low %v14628_v9, %v14635_v34  ;;  %v21596_v51 = vpack.c.bf16 %v14543_v37, %v14529_v45 }
0x12ff   :  { %v14651_v33 = vcombine.low %v14642_v8, %v14649_v0  ;;  %v14680_v21 = vrot.slane %v14673_v50, %v18979_v60 }
0x1300   :  { %v14658_v13 = vrot.slane %v14650_v5, %v18979_v60  ;;  %18361 = vmatpush3.bf16.xpose.msk.msra.mxu0 %vm19015_vm3, %v21596_v51 }
0x1301   :  { %18374 = vmatprep.subr.bf16.mxu0 %v21970_v15  ;;  %v14665_v61 = vrot.slane %v14651_v33, %v18979_v60 }
0x1303   :  { %v14666_v44 = vcombine.low %v14658_v13, %v14665_v61  ;;  %17858 = vmatmul.mubr.msk.f32.vlgmr.msra.gmra.mrb[100].mxu1 %vm163_vm2, %v19441_v25 }
0x1304   :  { %18357 = vmatpush3.bf16.xpose.msk.msra.mxu1 %vm19015_vm3, %v21585_v53  ;;  %17871 = vmatprep.mubr.msk.f32.mxu1 %vm18726_vm1, %v21969_v62 }
0x1305   :  { %18362 = vmatprep.subr.bf16.mxu1 %v21970_v15  ;;  %v21614_v63 = vpack.c.bf16 %v14680_v21, %v14666_v44 }
0x1307   :  { %17879 = vmatmul.mubr.msk.f32.vlgmr.msra.gmra.mrb[130].mxu0 %vm163_vm2, %v19360_v10 }
0x1308   :  { %18377 = vmatpush3.bf16.msk.msra.mxu0 %vm19731_vm10, %v21492_v40  ;;  %17906 = vmatprep.mubr.msk.f32.mxu0 %vm18726_vm1, %v21969_v62 }
0x1309   :  { %18382 = vmatprep.subr.bf16.mxu0 %v21970_v15 }
0x130b   :  { %17872 = vmatmul.mubr.msk.f32.vlgmr.msra.gmra.mrb[102].mxu1 %vm163_vm2, %v19470_v29 }
0x130c   :  { %18365 = vmatpush3.bf16.xpose.msk.msra.mxu1 %vm19015_vm3, %v21614_v63  ;;  %17885 = vmatprep.mubr.msk.f32.mxu1 %vm18726_vm1, %v21969_v62  ;;  %vm14843_vm3 = vcmp.gt.s32.totalorder %v18975_v55, 5 }
0x130d   :  { %18366 = vmatprep.subr.bf16.mxu1 %v21970_v15 }
0x1313   :  { %17886 = vmatmul.mubr.msk.f32.vlgmr.msra.gmra.mrb[104].mxu1 %vm163_vm2, %v19497_v47 }
0x1314   :  { %18369 = vmatpush3.bf16.msk.msra.mxu1 %vm19731_vm10, %v21439_v22  ;;  %17892 = vmatprep.mubr.msk.f32.mxu1 %vm18726_vm1, %v21969_v62 }
0x1315   :  { %18370 = vmatprep.subr.bf16.mxu1 %v21970_v15 }
0x13b0   :  { %v13792_v60 = vpop.f32.mrb[94].mxu1 }
0x13b1   :  { %v17838_v16 = vpop.f32.mrb[95].mxu1  ;;  %v14755_v40 = vsel %vm2880_vm11, %v13792_v60, -inf }
0x13b2   :  { %14756 = vmax.xlane.f32.xlu0 %v14755_v40 }
0x13ba   :  { %v13929_v35 = vpop.f32.mrb[96].mxu1 }
0x13bb   :  { %v17845_v36 = vpop.f32.mrb[97].mxu1  ;;  %v14758_v11 = vsel %vm2880_vm11, %v13929_v35, -inf }
0x13bc   :  { %14759 = vmax.xlane.f32.xlu1 %v14758_v11 }
0x13c2   :  { %v14066_v7 = vpop.f32.mrb[98].mxu1 }
0x13c3   :  { %v17852_v27 = vpop.f32.mrb[99].mxu1  ;;  %v14761_v54 = vsel %vm2880_vm11, %v14066_v7, -inf }
0x13c4   :  { %14762 = vmax.xlane.f32.xlu0 %v14761_v54 }
0x13cd   :  { %v14340_v22 = vpop.f32.mrb[128].mxu0 }
0x13ce   :  { %v17866_v17 = vpop.f32.mrb[129].mxu0  ;;  %v14767_v3 = vsel %vm2880_vm11, %v14340_v22, -inf }
0x13cf   :  { %14768 = vmax.xlane.f32.xlu0 %v14767_v3 }
0x13d6   :  { %v14203_v6 = vpop.f32.mrb[100].mxu1 }
0x13d7   :  { %v17859_v37 = vpop.f32.mrb[101].mxu1  ;;  %v14764_v46 = vsel %vm2880_vm11, %v14203_v6, -inf }
0x13d8   :  { %14765 = vmax.xlane.f32.xlu1 %v14764_v46 }
0x13da   :  { %v14614_v32 = vpop.f32.mrb[130].mxu0 }
0x13db   :  { %v17880_v31 = vpop.f32.mrb[131].mxu0  ;;  %v14773_v12 = vsel %vm2880_vm11, %v14614_v32, -inf }
0x13dc   :  { %14774 = vmax.xlane.f32.xlu0 %v14773_v12 }
0x13de   :  { %v14477_v49 = vpop.f32.mrb[102].mxu1 }
0x13df   :  { %v17873_v14 = vpop.f32.mrb[103].mxu1  ;;  %v14770_v26 = vsel %vm2880_vm11, %v14477_v49, -inf }
0x13e0   :  { %14771 = vmax.xlane.f32.xlu1 %v14770_v26 }
0x13e6   :  { %v14751_v43 = vpop.f32.mrb[104].mxu1 }
0x13e7   :  { %v17887_v20 = vpop.f32.mrb[105].mxu1  ;;  %v14776_v48 = vsel %vm2880_vm11, %v14751_v43, -inf }
0x13e8   :  { %14777 = vmax.xlane.f32.xlu1 %v14776_v48 }
0x143f   :  { %v14757_v28 = vpop.xlane.xlu0 %14756 }
0x1440   :  { %v14779_v41 = vsub.f32 %v13792_v60, %v14757_v28 }
0x1442   :  { %v14787_v59 = vmul.f32 1.442695, %v14779_v41 }
0x1444   :  { %18666 = vpow2.f32 %v14787_v59 }
0x1449   :  { %v14760_v30 = vpop.xlane.xlu1 %14759 }
0x144a   :  { %v14780_v52 = vsub.f32 %v13929_v35, %v14760_v30 }
0x144c   :  { %v14789_v18 = vmul.f32 1.442695, %v14780_v52 }
0x144e   :  { %v18667_v39 = vpop.eup %18666  ;;  %18668 = vpow2.f32 %v14789_v18 }
0x144f   :  { %v14803_v9 = vsel %vm2880_vm11, %v18667_v39, 0.0 }
0x1450   :  { %14804 = vadd.xlane.f32.xlu0 %v14803_v9 }
0x1451   :  { %v14763_v57 = vpop.xlane.xlu0 %14762 }
0x1452   :  { %v14781_v38 = vsub.f32 %v14066_v7, %v14763_v57 }
0x1454   :  { %v14791_v45 = vmul.f32 1.442695, %v14781_v38  ;;  %v15622_v38 = vcombine.high %v19293_v19, %v19293_v19 }
0x1456   :  { %18670 = vpow2.f32 %v14791_v45 }
0x1458   :  { %v18669_v42 = vpop.eup %18668 }
0x1459   :  { %v14806_v34 = vsel %vm2880_vm11, %v18669_v42, 0.0 }
0x145a   :  { %14807 = vadd.xlane.f32.xlu1 %v14806_v34  ;;  %v15754_v34 = vld [vmem:[%s21953_s6] sm:$0xff] }
0x145c   :  { %v14769_v0 = vpop.xlane.xlu0 %14768 }
0x145d   :  { %v14783_v8 = vsub.f32 %v14340_v22, %v14769_v0 }
0x145f   :  { %v14795_v5 = vmul.f32 1.442695, %v14783_v8 }
0x1460   :  { %v21650_v50 = vpop.eup %18670 }
0x1461   :  { %18672 = vpow2.f32 %v14795_v5  ;;  %v14809_v33 = vsel %vm2880_vm11, %v21650_v50, 0.0 }
0x1462   :  { %14810 = vadd.xlane.f32.xlu0 %v14809_v33 }
0x1465   :  { %v14766_v13 = vpop.xlane.xlu1 %14765 }
0x1466   :  { %v14782_v61 = vsub.f32 %v14203_v6, %v14766_v13 }
0x1468   :  { %v14793_v21 = vmul.f32 1.442695, %v14782_v61 }
0x1469   :  { %v14775_v44 = vpop.xlane.xlu0 %14774 }
0x146a   :  { %v14785_v60 = vsub.f32 %v14614_v32, %v14775_v44  ;;  %18674 = vpow2.f32 %v14793_v21  ;;  %v15638_v44 = vcombine.high %v19350_v2, %v19350_v2 }
0x146b   :  { %v21654_v16 = vpop.eup %18672 }
0x146c   :  { %v14799_v40 = vmul.f32 1.442695, %v14785_v60  ;;  %v14815_v35 = vsel %vm2880_vm11, %v21654_v16, 0.0 }
0x146d   :  { %14816 = vadd.xlane.f32.xlu0 %v14815_v35  ;;  %v14772_v36 = vpop.xlane.xlu1 %14771 }
0x146e   :  { %18676 = vpow2.f32 %v14799_v40  ;;  %v14784_v11 = vsub.f32 %v14477_v49, %v14772_v36 }
0x1470   :  { %v14797_v7 = vmul.f32 1.442695, %v14784_v11 }
0x1472   :  { %18678 = vpow2.f32 %v14797_v7 }
0x1474   :  { %v21658_v27 = vpop.eup %18674 }
0x1475   :  { %v14778_v54 = vpop.xlane.xlu1 %14777  ;;  %v14812_v22 = vsel %vm2880_vm11, %v21658_v27, 0.0 }
0x1476   :  { %v14786_v17 = vsub.f32 %v14751_v43, %v14778_v54  ;;  %14813 = vadd.xlane.f32.xlu1 %v14812_v22 }
0x1478   :  { %v21662_v3 = vpop.eup %18676  ;;  %v14801_v6 = vmul.f32 1.442695, %v14786_v17  ;;  %v15654_v17 = vcombine.high %v19396_v4, %v19396_v4 }
0x1479   :  { %v14821_v37 = vsel %vm2880_vm11, %v21662_v3, 0.0 }
0x147a   :  { %14822 = vadd.xlane.f32.xlu0 %v14821_v37  ;;  %18680 = vpow2.f32 %v14801_v6 }
0x147c   :  { %v21666_v46 = vpop.eup %18678 }
0x147d   :  { %v14818_v32 = vsel %vm2880_vm11, %v21666_v46, 0.0 }
0x147e   :  { %14819 = vadd.xlane.f32.xlu1 %v14818_v32 }
0x1484   :  { %v21670_v31 = vpop.eup %18680 }
0x1485   :  { %v14824_v12 = vsel %vm2880_vm11, %v21670_v31, 0.0 }
0x1486   :  { %14825 = vadd.xlane.f32.xlu1 %v14824_v12 }
0x14dd   :  { %v14805_v49 = vpop.xlane.xlu0 %14804 }
0x14de   :  { %18682 = vrcp.f32 %v14805_v49  ;;  %v15686_v49 = vcombine.high %v19304_v23, %v19304_v23 }
0x14e7   :  { %v14808_v14 = vpop.xlane.xlu1 %14807 }
0x14e8   :  { %v18683_v26 = vpop.eup %18682  ;;  %18684 = vrcp.f32 %v14808_v14 }
0x14e9   :  { %v14828_v43 = vmul.f32 %v18683_v26, %v18667_v39 }
0x14eb   :  { %v14844_v20 = vsel %vm14843_vm3, %v14828_v43, 0.0 }
0x14ec   :  { %16579 = vst.msk [vmem:[%s21952_s9 + $0x140] sm:$0x3f] %vm2880_vm11, %v14844_v20  ;;  %17893 = vmatmul.mubr.msk.f32.vlgmr.msra.gmra.mrb[52].mxu1 %vm4749_vm13, %v14844_v20  ;;  %v15756_v20 = vld [vmem:[%s21953_s6 + $0x10] sm:$0xff] }
0x14ed   :  { %18373 = vmatpush3.bf16.msk.msra.mxu1 %vm19731_vm10, %v21473_v1  ;;  %17899 = vmatprep.mubr.msk.f32.mxu1 %vm18726_vm1, %v21969_v62  ;;  %v18730_v1 = vmov 1983009808  }
0x14ee   :  { %18378 = vmatprep.subr.bf16.mxu1 %v21970_v15  ;;  %v15496_v30 = vunpack.c.l.s4 %v18730_v1 }
0x14ef   :  { %v14811_v48 = vpop.xlane.xlu0 %14810 }
0x14f0   :  { %18686 = vrcp.f32 %v14811_v48  ;;  %v15497_v39 = vunpack.c.0.s8 %v15496_v30  ;;  %v15757_v48 = vld [vmem:[%s21953_s6 + $0x18] sm:$0xff] }
0x14f2   :  { %v18685_v28 = vpop.eup %18684 }
0x14f3   :  { %v14830_v41 = vmul.f32 %v18685_v28, %v18669_v42 }
0x14f5   :  { %v14845_v59 = vsel %vm14843_vm3, %v14830_v41, 0.0 }
0x14f6   :  { %16580 = vst.msk [vmem:[%s21952_s9 + $0x148] sm:$0x3f] %vm2880_vm11, %v14845_v59  ;;  %17900 = vmatmul.mubr.msk.f32.vlgmr.msra.gmra.mrb[54].mxu1 %vm4749_vm13, %v14845_v59  ;;  %v15702_v59 = vcombine.high %v19470_v29, %v19470_v29 }
0x14f7   :  { %18381 = vmatpush3.bf16.msk.msra.mxu1 %vm19731_vm10, %v21583_v24  ;;  %17913 = vmatprep.mubr.msk.f32.mxu1 %vm18726_vm1, %v21969_v62  ;;  %v21710_v24 = vsub.s32 %v15497_v39, %v18975_v55 }
0x14f8   :  { %18386 = vmatprep.subr.bf16.mxu1 %v21970_v15 }
0x14f9   :  { %v15629_v45 = vrot.slane %v19293_v19, %v21710_v24  ;;  %v15636_v5 = vrot.slane %v15622_v38, %v21710_v24  ;;  %v15645_v33 = vrot.slane %v19350_v2, %v21710_v24  ;;  %v15661_v60 = vrot.slane %v19396_v4, %v21710_v24 }
0x14fa   :  { %v18687_v52 = vpop.eup %18686  ;;  %v14817_v18 = vpop.xlane.xlu0 %14816  ;;  %v21752_v36 = vrot.slane %v19441_v25, %v21710_v24  ;;  %v15652_v54 = vrot.slane %v15638_v44, %v21710_v24  ;;  %v15693_v14 = vrot.slane %v19304_v23, %v21710_v24  ;;  %v15709_v26 = vrot.slane %v19470_v29, %v21710_v24 }
0x14fb   :  { %18688 = vrcp.f32 %v14817_v18  ;;  %v14832_v9 = vmul.f32 %v18687_v52, %v21650_v50  ;;  %v15637_v50 = vcombine.high %v15629_v45, %v15629_v45  ;;  %v15759_v35 = vcombine.low %v15636_v5, %v15645_v33 }
0x14fc   :  { %v15653_v7 = vcombine.high %v15645_v33, %v15645_v33  ;;  %v15669_v22 = vcombine.high %v15661_v60, %v15661_v60  ;;  %v15685_v32 = vcombine.high %v21752_v36, %v21752_v36  ;;  %v15668_v41 = vrot.slane %v15654_v17, %v21710_v24 }
0x14fd   :  { %v14846_v57 = vsel %vm14843_vm3, %v14832_v9, 0.0  ;;  %v15758_v40 = vcombine.low %v15629_v45, %v15637_v50  ;;  %v15773_v6 = vrot.slane %v15759_v35, %v21710_v24  ;;  %v15725_v1 = vrot.slane %v19360_v10, %v21710_v24 }
0x14fe   :  { %16581 = vst.msk [vmem:[%s21952_s9 + $0x150] sm:$0x3f] %vm2880_vm11, %v14846_v57  ;;  %17907 = vmatmul.mubr.msk.f32.vlgmr.msra.gmra.mrb[34].mxu0 %vm4749_vm13, %v14846_v57  ;;  %v15775_v28 = vcombine.low %v15653_v7, %v15652_v54  ;;  %v15776_v18 = vcombine.low %v15661_v60, %v15669_v22  ;;  %v15700_v57 = vrot.slane %v15686_v49, %v21710_v24 }
0x14ff   :  { %18385 = vmatpush3.bf16.msk.msra.mxu0 %vm19731_vm10, %v21549_v58  ;;  %17920 = vmatprep.mubr.msk.f32.mxu0 %vm18726_vm1, %v21969_v62  ;;  %v15755_v58 = vld [vmem:[%s21953_s6 + $0x8] sm:$0xff]  ;;  %v15701_v38 = vcombine.high %v15693_v14, %v15693_v14  ;;  %v15717_v45 = vcombine.high %v15709_v26, %v15709_v26  ;;  %v15792_v5 = vcombine.low %v15668_v41, %v21752_v36  ;;  %v15752_v41 = vld [vmem:[%s21954_s5 + $0x10] sm:$0xff] }
0x1500   :  { %18390 = vmatprep.subr.bf16.mxu0 %v21970_v15  ;;  %v18398_v61 = vpack.c.bf16 %v15755_v58, %v15754_v34  ;;  %v18402_v34 = vpack.c.bf16 %v15757_v48, %v15756_v20  ;;  %v15734_v58 = vcombine.high %v19497_v47, %v19497_v47  ;;  %v15718_v50 = vcombine.high %v19360_v10, %v19360_v10  ;;  %v15750_v20 = vld [vmem:[%s21954_s5] sm:$0xff]  ;;  %v15751_v48 = vld [vmem:[%s21954_s5 + $0x8] sm:$0xff] }
0x1501   :  { %v15809_v60 = vcombine.low %v15693_v14, %v15701_v38  ;;  %v15800_v54 = vrot.slane %v15792_v5, %v21710_v24 }
0x1502   :  { %v15732_v7 = vrot.slane %v15718_v50, %v21710_v24 }
0x1503   :  { %v14814_v42 = vpop.xlane.xlu1 %14813  ;;  %v15817_v22 = vrot.slane %v15809_v60, %v21710_v24 }
0x1504   :  { %18690 = vrcp.f32 %v14814_v42 }
0x1505   :  { %v18689_v0 = vpop.eup %18688 }
0x1506   :  { %v14836_v8 = vmul.f32 %v18689_v0, %v21654_v16  ;;  %v15670_v16 = vcombine.high %v19441_v25, %v19441_v25  ;;  %v15741_v0 = vrot.slane %v19497_v47, %v21710_v24 }
0x1507   :  { %v14823_v13 = vpop.xlane.xlu0 %14822 }
0x1508   :  { %18692 = vrcp.f32 %v14823_v13  ;;  %v14848_v21 = vsel %vm14843_vm3, %v14836_v8, 0.0  ;;  %v15684_v37 = vrot.slane %v15670_v16, %v21710_v24  ;;  %v15716_v8 = vrot.slane %v15702_v59, %v21710_v24  ;;  %v15753_v59 = vld [vmem:[%s21954_s5 + $0x18] sm:$0xff] }
0x1509   :  { %16583 = vst.msk [vmem:[%s21952_s9 + $0x160] sm:$0x3f] %vm2880_vm11, %v14848_v21  ;;  %17921 = vmatmul.mubr.msk.f32.vlgmr.msra.gmra.mrb[36].mxu0 %vm4749_vm13, %v14848_v21  ;;  %v15790_v13 = vrot.slane %v15776_v18, %v21710_v24  ;;  %v15810_v21 = vcombine.low %v15700_v57, %v15709_v26  ;;  %v15748_v16 = vrot.slane %v15734_v58, %v21710_v24 }
0x150a   :  { %18393 = vmatpush3.bf16.msk.msra.mxu0 %vm19731_vm10, %v21596_v51  ;;  %17934 = vmatprep.mubr.msk.f32.mxu0 %vm18726_vm1, %v21969_v62  ;;  %v15766_v51 = vrot.slane %v15758_v40, %v21710_v24  ;;  %v15793_v39 = vcombine.low %v15685_v32, %v15684_v37  ;;  %v15749_v40 = vcombine.high %v15741_v0, %v15741_v0 }
0x150b   :  { %18399 = vmatprep.subr.bf16.mxu0 %v18398_v61  ;;  %v14820_v11 = vpop.xlane.xlu1 %14819  ;;  %v15826_v36 = vcombine.low %v15717_v45, %v15716_v8  ;;  %v15824_v17 = vrot.slane %v15810_v21, %v21710_v24 }
0x150c   :  { %18694 = vrcp.f32 %v14820_v11  ;;  %v15774_v52 = vcombine.low %v15766_v51, %v15773_v6  ;;  %v15807_v35 = vrot.slane %v15793_v39, %v21710_v24  ;;  %v15844_v51 = vcombine.low %v15749_v40, %v15748_v16 }
0x150d   :  { %v15834_v37 = vrot.slane %v15826_v36, %v21710_v24  ;;  %v15825_v56 = vcombine.low %v15817_v22, %v15824_v17 }
0x150e   :  { %v18691_v12 = vpop.eup %18690  ;;  %v15808_v6 = vcombine.low %v15800_v54, %v15807_v35 }
0x150f   :  { %v14834_v43 = vmul.f32 %v18691_v12, %v21658_v27  ;;  %v15843_v12 = vcombine.low %v15732_v7, %v15741_v0 }
0x1511   :  { %v14847_v27 = vsel %vm14843_vm3, %v14834_v43, 0.0  ;;  %v15851_v43 = vrot.slane %v15843_v12, %v21710_v24 }
0x1512   :  { %v18693_v30 = vpop.eup %18692  ;;  %16582 = vst.msk [vmem:[%s21952_s9 + $0x158] sm:$0x3f] %vm2880_vm11, %v14847_v27  ;;  %17914 = vmatmul.mubr.msk.f32.vlgmr.msra.gmra.mrb[56].mxu1 %vm4749_vm13, %v14847_v27 }
0x1513   :  { %v14840_v9 = vmul.f32 %v18693_v30, %v21662_v3  ;;  %18389 = vmatpush3.bf16.msk.msra.mxu1 %vm19731_vm10, %v21585_v53  ;;  %v14826_v42 = vpop.xlane.xlu1 %14825  ;;  %17927 = vmatprep.mubr.msk.f32.mxu1 %vm18726_vm1, %v21969_v62  ;;  %v15733_v53 = vcombine.high %v15725_v1, %v15725_v1 }
0x1514   :  { %18696 = vrcp.f32 %v14826_v42  ;;  %18394 = vmatprep.subr.bf16.mxu1 %v21970_v15  ;;  %v15783_v15 = vrot.slane %v15775_v28, %v21710_v24  ;;  %v18406_v28 = vpack.c.bf16 %v15751_v48, %v15750_v20 }
0x1515   :  { %v14850_v3 = vsel %vm14843_vm3, %v14840_v9, 0.0  ;;  %v15827_v11 = vcombine.low %v15725_v1, %v15733_v53  ;;  %v18410_v1 = vpack.c.bf16 %v15753_v59, %v15752_v41 }
0x1516   :  { %16585 = vst.msk [vmem:[%s21952_s9 + $0x170] sm:$0x3f] %vm2880_vm11, %v14850_v3  ;;  %17935 = vmatmul.mubr.msk.f32.vlgmr.msra.gmra.mrb[38].mxu0 %vm4749_vm13, %v14850_v3  ;;  %v18695_v33 = vpop.eup %18694 }
0x1517   :  { %18401 = vmatpush3.bf16.msra.mxu0 %v18398_v61  ;;  %17952 = vmatprep.mubr.msk.f32.mxu0 %vm163_vm2, %v15774_v52  ;;  %v14838_v44 = vmul.f32 %v18695_v33, %v21666_v46  ;;  %v15791_v46 = vcombine.low %v15783_v15, %v15790_v13  ;;  %v15841_v32 = vrot.slane %v15827_v11, %v21710_v24 }
0x1518   :  { %18403 = vmatprep.subr.bf16.mxu0 %v18402_v34 }
0x1519   :  { %v14849_v61 = vsel %vm14843_vm3, %v14838_v44, 0.0  ;;  %v15842_v14 = vcombine.low %v15834_v37, %v15841_v32 }
0x151a   :  { %16584 = vst.msk [vmem:[%s21952_s9 + $0x168] sm:$0x3f] %vm2880_vm11, %v14849_v61  ;;  %17928 = vmatmul.mubr.msk.f32.vlgmr.msra.gmra.mrb[58].mxu1 %vm4749_vm13, %v14849_v61 }
0x151b   :  { %18405 = vmatpush3.bf16.msra.mxu0 %v18402_v34  ;;  %18397 = vmatpush3.bf16.msk.msra.mxu1 %vm19731_vm10, %v21614_v63 }
0x151c   :  { %17941 = vmatprep.mubr.msk.f32.mxu1 %vm18726_vm1, %v21969_v62  ;;  %v15858_v62 = vrot.slane %v15844_v51, %v21710_v24  ;;  %18407 = vmatprep.subr.bf16.mxu0 %v18406_v28  ;;  %vm15477_vm1 = vcmp.eq.s32.totalorder %v18975_v55, 0 }
0x151e   :  { %17953 = vmatmul.mubr.msk.f32.vlgmr.msra.gmra.mrb[132].mxu0 %vm163_vm2, %v15791_v46  ;;  %v18697_v49 = vpop.eup %18696 }
0x151f   :  { %17955 = vmatprep.mubr.msk.f32.mxu0 %vm163_vm2, %v15808_v6  ;;  %v14842_v63 = vmul.f32 %v18697_v49, %v21670_v31  ;;  %v15859_v31 = vcombine.low %v15851_v43, %v15858_v62  ;;  %18409 = vmatpush3.bf16.msra.mxu0 %v18406_v28 }
0x1520   :  { %18411 = vmatprep.subr.bf16.mxu0 %v18410_v1 }
0x1521   :  { %v14851_v26 = vsel %vm14843_vm3, %v14842_v63, 0.0 }
0x1522   :  { %17956 = vmatmul.mubr.msk.f32.gmra.mrb[134].mxu0 %vm163_vm2, %v15825_v56  ;;  %16586 = vst.msk [vmem:[%s21952_s9 + $0x178] sm:$0x3f] %vm2880_vm11, %v14851_v26  ;;  %17942 = vmatmul.mubr.msk.f32.vlgmr.msra.gmra.mrb[60].mxu1 %vm4749_vm13, %v14851_v26 }
0x1523   :  { %17958 = vmatprep.mubr.msk.f32.mxu0 %vm163_vm2, %v15842_v14  ;;  %18413 = vmatpush3.bf16.msra.mxu0 %v18410_v1 }
0x1526   :  { %17959 = vmatmul.mubr.msk.f32.gmra.mrb[136].mxu0 %vm163_vm2, %v15859_v31 }
0x15bf   :  { %v14933_v30 = vpop.f32.mrb[52].mxu1 }
0x15c0   :  { %v15478_v27 = vsel %vm15477_vm1, %v19293_v19, %v14933_v30  ;;  %v17894_v52 = vpop.f32.mrb[53].mxu1 }
0x15c1   :  { %v15501_v18 = vrot.slane %v15478_v27, %v21710_v24  ;;  %v15494_v39 = vcombine.high %v15478_v27, %v15478_v27 }
0x15c3   :  { %v15509_v9 = vcombine.high %v15501_v18, %v15501_v18  ;;  %v15508_v42 = vrot.slane %v15494_v39, %v21710_v24 }
0x15c5   :  { %v15967_v34 = vcombine.low %v15501_v18, %v15509_v9 }
0x15c7   :  { %v15975_v19 = vrot.slane %v15967_v34, %v21710_v24 }
0x15c9   :  { %v15009_v57 = vpop.f32.mrb[54].mxu1 }
0x15ca   :  { %v15479_v38 = vsel %vm15477_vm1, %v19350_v2, %v15009_v57  ;;  %v17901_v45 = vpop.f32.mrb[55].mxu1 }
0x15cb   :  { %v15517_v58 = vrot.slane %v15479_v38, %v21710_v24  ;;  %v15510_v0 = vcombine.high %v15479_v38, %v15479_v38 }
0x15cd   :  { %v15968_v3 = vcombine.low %v15508_v42, %v15517_v58  ;;  %v15524_v53 = vrot.slane %v15510_v0, %v21710_v24  ;;  %v15525_v5 = vcombine.high %v15517_v58, %v15517_v58 }
0x15cf   :  { %v15982_v8 = vrot.slane %v15968_v3, %v21710_v24  ;;  %v15984_v21 = vcombine.low %v15525_v5, %v15524_v53 }
0x15d1   :  { %v15085_v50 = vpop.f32.mrb[34].mxu0  ;;  %v15983_v33 = vcombine.low %v15975_v19, %v15982_v8  ;;  %v15992_v16 = vrot.slane %v15984_v21, %v21710_v24  ;;  %v16615_v21 = vld [vmem:[%s21955_s7] ss:$0 sm:$0xff] }
0x15d2   :  { %v15480_v2 = vsel %vm15477_vm1, %v19396_v4, %v15085_v50  ;;  %v17908_v15 = vpop.f32.mrb[35].mxu0 }
0x15d3   :  { %v15533_v13 = vrot.slane %v15480_v2, %v21710_v24  ;;  %17969 = vmatprep.mubr.msk.f32.mxu0 %vm163_vm2, %v15983_v33  ;;  %v15526_v61 = vcombine.high %v15480_v2, %v15480_v2 }
0x15d5   :  { %v15541_v44 = vcombine.high %v15533_v13, %v15533_v13  ;;  %v15540_v22 = vrot.slane %v15526_v61, %v21710_v24 }
0x15d7   :  { %v15985_v60 = vcombine.low %v15533_v13, %v15541_v44 }
0x15d9   :  { %v15999_v40 = vrot.slane %v15985_v60, %v21710_v24 }
0x15db   :  { %v16000_v35 = vcombine.low %v15992_v16, %v15999_v40 }
0x15dc   :  { %v15237_v36 = vpop.f32.mrb[36].mxu0 }
0x15dd   :  { %v17922_v11 = vpop.f32.mrb[37].mxu0  ;;  %17970 = vmatmul.mubr.msk.f32.vlgmr.msra.gmra.mrb[132].mxu0 %vm163_vm2, %v16000_v35  ;;  %v15482_v4 = vsel %vm15477_vm1, %v19304_v23, %v15237_v36 }
0x15de   :  { %v15565_v17 = vrot.slane %v15482_v4, %v21710_v24  ;;  %v15558_v63 = vcombine.high %v15482_v4, %v15482_v4 }
0x15e0   :  { %v15573_v62 = vcombine.high %v15565_v17, %v15565_v17  ;;  %v15572_v48 = vrot.slane %v15558_v63, %v21710_v24 }
0x15e5   :  { %v15161_v7 = vpop.f32.mrb[56].mxu1 }
0x15e6   :  { %v15481_v46 = vsel %vm15477_vm1, %v19441_v25, %v15161_v7  ;;  %v17915_v54 = vpop.f32.mrb[57].mxu1 }
0x15e7   :  { %v15542_v51 = vcombine.high %v15481_v46, %v15481_v46  ;;  %v15549_v6 = vrot.slane %v15481_v46, %v21710_v24 }
0x15e9   :  { %v15389_v37 = vpop.f32.mrb[38].mxu0  ;;  %v15556_v32 = vrot.slane %v15542_v51, %v21710_v24  ;;  %v15557_v12 = vcombine.high %v15549_v6, %v15549_v6  ;;  %v16001_v49 = vcombine.low %v15540_v22, %v15549_v6 }
0x15ea   :  { %v15484_v23 = vsel %vm15477_vm1, %v19360_v10, %v15389_v37  ;;  %v17936_v56 = vpop.f32.mrb[39].mxu0  ;;  %v16018_v10 = vcombine.low %v15565_v17, %v15573_v62 }
0x15eb   :  { %v15597_v25 = vrot.slane %v15484_v23, %v21710_v24  ;;  %v16002_v14 = vcombine.low %v15557_v12, %v15556_v32  ;;  %v16009_v26 = vrot.slane %v16001_v49, %v21710_v24  ;;  %v15590_v57 = vcombine.high %v15484_v23, %v15484_v23 }
0x15ec   :  { %v16026_v9 = vrot.slane %v16018_v10, %v21710_v24 }
0x15ed   :  { %v16016_v43 = vrot.slane %v16002_v14, %v21710_v24  ;;  %v15605_v31 = vcombine.high %v15597_v25, %v15597_v25  ;;  %v15313_v20 = vpop.f32.mrb[58].mxu1  ;;  %v15604_v19 = vrot.slane %v15590_v57, %v21710_v24 }
0x15ee   :  { %v15483_v28 = vsel %vm15477_vm1, %v19470_v29, %v15313_v20  ;;  %v17929_v41 = vpop.f32.mrb[59].mxu1 }
0x15ef   :  { %v15574_v59 = vcombine.high %v15483_v28, %v15483_v28  ;;  %v15581_v1 = vrot.slane %v15483_v28, %v21710_v24  ;;  %v16017_v30 = vcombine.low %v16009_v26, %v16016_v43  ;;  %v16036_v27 = vcombine.low %v15597_v25, %v15605_v31 }
0x15f1   :  { %v15588_v52 = vrot.slane %v15574_v59, %v21710_v24  ;;  %v15589_v18 = vcombine.high %v15581_v1, %v15581_v1  ;;  %v16019_v39 = vcombine.low %v15572_v48, %v15581_v1  ;;  %17972 = vmatprep.mubr.msk.f32.mxu0 %vm163_vm2, %v16017_v30  ;;  %v16050_v29 = vrot.slane %v16036_v27, %v21710_v24 }
0x15f3   :  { %v16033_v38 = vrot.slane %v16019_v39, %v21710_v24  ;;  %v16035_v45 = vcombine.low %v15589_v18, %v15588_v52 }
0x15f5   :  { %v16043_v42 = vrot.slane %v16035_v45, %v21710_v24  ;;  %v15465_v34 = vpop.f32.mrb[60].mxu1  ;;  %v16034_v58 = vcombine.low %v16026_v9, %v16033_v38 }
0x15f6   :  { %v15485_v0 = vsel %vm15477_vm1, %v19497_v47, %v15465_v34  ;;  %v17943_v3 = vpop.f32.mrb[61].mxu1 }
0x15f7   :  { %v15606_v8 = vcombine.high %v15485_v0, %v15485_v0  ;;  %v15613_v53 = vrot.slane %v15485_v0, %v21710_v24  ;;  %17973 = vmatmul.mubr.msk.f32.gmra.mrb[134].mxu0 %vm163_vm2, %v16034_v58  ;;  %v16051_v5 = vcombine.low %v16043_v42, %v16050_v29 }
0x15f9   :  { %v15620_v50 = vrot.slane %v15606_v8, %v21710_v24  ;;  %v15621_v33 = vcombine.high %v15613_v53, %v15613_v53  ;;  %v16052_v2 = vcombine.low %v15604_v19, %v15613_v53  ;;  %17975 = vmatprep.mubr.msk.f32.mxu0 %vm163_vm2, %v16051_v5 }
0x15fb   :  { %v16053_v15 = vcombine.low %v15621_v33, %v15620_v50  ;;  %v16060_v13 = vrot.slane %v16052_v2, %v21710_v24 }
0x15fd   :  { %v16067_v55 = vrot.slane %v16053_v15, %v21710_v24 }
0x15ff   :  { %v16068_v47 = vcombine.low %v16060_v13, %v16067_v55 }
0x1601   :  { %17976 = vmatmul.mubr.msk.f32.gmra.mrb[136].mxu0 %vm163_vm2, %v16068_v47 }
0x16b0   :  { %v17971_v44 = vpop.f32.mrb[132].mxu0 }
0x16b1   :  { %v16184_v60 = vadd.f32 %v17971_v44, %v16615_v21  ;;  %v16147_v16 = vpop.f32.mrb[133].mxu0 }
0x16b2   :  { %v16183_v40 = vadd.f32 %v16615_v21, %v16147_v16 }
0x16b3   :  { %v16190_v35 = vmax.f32 %v16184_v60, 0.0 }
0x16b4   :  { %v16189_v36 = vmax.f32 %v16183_v40, 0.0 }
0x16b5   :  { %16196 = vst.msk [vmem:[%s21956_s8 + $0x8] sm:$0xff] %vm45_vm0, %v16190_v35 }
0x16b6   :  { %16195 = vst.msk [vmem:[%s21956_s8] sm:$0xff] %vm45_vm0, %v16189_v36 }
0x16ca   :  { %v17974_v24 = vpop.f32.mrb[134].mxu0 }
0x16cb   :  { %v16186_v11 = vadd.f32 %v17974_v24, %v16615_v21  ;;  %v16157_v61 = vpop.f32.mrb[135].mxu0 }
0x16cc   :  { %v16185_v4 = vadd.f32 %v16615_v21, %v16157_v61 }
0x16cd   :  { %v16192_v7 = vmax.f32 %v16186_v11, 0.0 }
0x16ce   :  { %v16191_v46 = vmax.f32 %v16185_v4, 0.0 }
0x16cf   :  { %16198 = vst.msk [vmem:[%s21956_s8 + $0x18] sm:$0xff] %vm45_vm0, %v16192_v7 }
0x16d0   :  { %16197 = vst.msk [vmem:[%s21956_s8 + $0x10] sm:$0xff] %vm45_vm0, %v16191_v46 }
0x16d4   :  { %v17977_v54 = vpop.f32.mrb[136].mxu0 }
0x16d5   :  { %v16188_v22 = vadd.f32 %v17977_v54, %v16615_v21  ;;  %v16167_v17 = vpop.f32.mrb[137].mxu0 }
0x16d6   :  { %v16187_v51 = vadd.f32 %v16615_v21, %v16167_v17 }
0x16d7   :  { %v16194_v6 = vmax.f32 %v16188_v22, 0.0 }
0x16d8   :  { %v16193_v37 = vmax.f32 %v16187_v51, 0.0 }
0x16d9   :  { %16200 = vst.msk [vmem:[%s21956_s8 + $0x28] sm:$0xff] %vm45_vm0, %v16194_v6 }
0x16da   :  { %16199 = vst.msk [vmem:[%s21956_s8 + $0x20] sm:$0xff] %vm45_vm0, %v16193_v37 }

</bundles_post_ra>
